<compile_context>
chip_gen: v7x
topology: tpu7x:2x2x1
jax: 0.10.0
libtpu: 0.0.40
codegen_flags: <defaults>
</compile_context>

<pallas_src>
import functools

import jax
import jax.numpy as jnp
from jax import lax
from jax.experimental import pallas as pl
from jax.experimental.pallas import tpu as pltpu


# ----------------------------------------------------------------------------
# Fused Pallas kernel: whole DBB block (4 branches + sum + SiLU) per row tile
# ----------------------------------------------------------------------------
def _dbb_fused_kernel(x_ref, w1_ref, b1_ref, wk_ref, bk_ref, o_ref, xp_ref, *,
                      K, pad, H, W, Ht, Cin, C1, Ctot, Cout):
    """One grid step == one row tile (Ht output rows) of one batch image.

    x_ref  : (1, Cin, H, W)          full NCHW image (block index constant along the
                                     row-tile axis -> DMA'd once per image)
    w1_ref : (Cin, C1)       bf16    BN-folded merged 1x1 weights producing [z | u]
    b1_ref : (1, C1)         f32     merged 1x1 BN shifts (== BNAndPad pad values)
    wk_ref : (K*K*Ctot, Cout) bf16   merged BN-folded kxk weights, rows grouped per
                                     tap t = kh*K + kw (NN orientation)
    bk_ref : (1, Cout)       f32     summed output-side BN shifts of all branches
    o_ref  : (1, Cout, Ht*W)         output row tile, NCHW-flat (lane-dense)
    xp_ref : VMEM (Ht+2p, W+2p, Ctot) bf16  padded channel-concat tile buffer
    """
    i = pl.program_id(1)
    n_tiles = pl.num_programs(1)
    Hs = Ht + 2 * pad
    Wp = W + 2 * pad
    r0 = i * Ht

    # ---- 1) gather input rows for this tile + K//2-row halo (NCHW, row slices) ----
    top_row = jnp.maximum(r0 - pad, 0)
    bot_row = jnp.minimum(r0 + Ht, H - pad)
    top = x_ref[0, :, pl.ds(top_row, pad), :]                 # (Cin, pad, W)
    mid = x_ref[0, :, pl.ds(r0, Ht), :]                       # (Cin, Ht, W)
    bot = x_ref[0, :, pl.ds(bot_row, pad), :]                 # (Cin, pad, W)
    # halo rows outside the image are zero (== the origin branch's zero pad; the
    # BNAndPad pad values of the z/u channels then fall out of stage 3 automatically).
    top = jnp.where(i > 0, top, 0.0)
    bot = jnp.where(i + 1 < n_tiles, bot, 0.0)
    xwin = jnp.concatenate([top, mid, bot], axis=1)           # (Cin, Hs, W) f32

    # single in-VMEM 2-D transpose -> channels-last window (no HBM transpose pass)
    xwin_t = jnp.transpose(xwin.reshape(Cin, Hs * W))         # (Hs*W, Cin) f32

    # ---- 2) fill x-channel slab of the padded concat buffer (interior + borders) ----
    xp_ref[:, pad:pad + W, 0:Cin] = xwin_t.reshape(Hs, W, Cin).astype(jnp.bfloat16)
    zcol = jnp.zeros((Hs, pad, Cin), jnp.bfloat16)            # thin border slabs only
    xp_ref[:, 0:pad, 0:Cin] = zcol
    xp_ref[:, pad + W:Wp, 0:Cin] = zcol

    # ---- 3) merged 1x1 stage (dbb_avg.conv+bn and dbb_1x1_kxk.idconv1+bn1) ----
    # one (Hs*Wp, Cin) x (Cin, C1) bf16 matmul, f32 accumulation; computed over the
    # zero-padded window so border positions come out equal to the BNAndPad pad values.
    xflat = xp_ref[:, :, 0:Cin].reshape(Hs * Wp, Cin)
    zu = jnp.dot(xflat, w1_ref[...],
                 preferred_element_type=jnp.float32) + b1_ref[...]   # (Hs*Wp, C1) f32
    xp_ref[:, :, Cin:Ctot] = zu.reshape(Hs, Wp, C1).astype(jnp.bfloat16)

    # ---- 4) merged kxk stage: K*K shifted-window matmuls (no materialized im2col) ----
    # dbb_origin + dbb_1x1 (center tap) + avg-pool-as-conv + dbb_1x1_kxk.conv2,
    # all BN-folded, contracted over Ctot channels per tap, accumulated in f32.
    acc = jnp.zeros((Ht * W, Cout), jnp.float32)
    for kh in range(K):                                        # static, unrolled
        for kw in range(K):
            t = kh * K + kw
            win = xp_ref[kh:kh + Ht, kw:kw + W, :].reshape(Ht * W, Ctot)   # bf16
            acc = acc + jnp.dot(win, wk_ref[t * Ctot:(t + 1) * Ctot, :],
                                preferred_element_type=jnp.float32)
    s = acc + bk_ref[...]                                      # (Ht*W, Cout) f32

    # ---- 5) SiLU epilogue (EUP exp + approx reciprocal), NCHW-flat store ----
    sig = pl.reciprocal(1.0 + jnp.exp(-s), approx=True)
    y = s * sig
    o_ref[0] = jnp.transpose(y).astype(o_ref.dtype)            # (Cout, Ht*W)


def _choose_row_tile(H, W, pad):
    """Smallest row tile >= 8 that divides H and keeps Ht*W a multiple of 128 lanes
    (unmasked output stores); fall back to the whole image."""
    for ht in range(max(8, pad), H):
        if H % ht == 0 and (ht * W) % 128 == 0:
            return ht
    return H


def dbb_forward_pallas(x_nchw, FP, row_tile=None):
    """x_nchw: (N, Cin, H, W) float32 -> (N, Cout, H, W) float32 (fused DBB + SiLU)."""
    N, Cin, H, W = x_nchw.shape
    K, pad = FP['K'], FP['pad']
    Cout, C1, Ctot = FP['Cout'], FP['C1'], FP['Ctot']
    assert pad >= 1, "DBB uses k >= 3 (same padding)"

    Ht = _choose_row_tile(H, W, pad) if row_tile is None else row_tile
    assert H % Ht == 0 and Ht >= pad
    assert (Ht * W) % 128 == 0 or Ht == H
    T = H // Ht
    Hs, Wp = Ht + 2 * pad, W + 2 * pad

    kern = functools.partial(_dbb_fused_kernel, K=K, pad=pad, H=H, W=W, Ht=Ht,
                             Cin=Cin, C1=C1, Ctot=Ctot, Cout=Cout)

    # rough VMEM budget: double-buffered in/out blocks + weights + scratch + temps
    bytes_blocks = (Cin * H * W * 4 + Cout * Ht * W * 4
                    + (Cin * C1 + K * K * Ctot * Cout) * 2 + (C1 + Cout) * 4)
    bytes_work = Hs * Wp * Ctot * 2 + Ht * W * (Ctot * 2 + Cout * 4) * 2
    vmem_limit = int(min(64 * 2 ** 20,
                         max(32 * 2 ** 20, 2 * bytes_blocks + 2 * bytes_work + (4 << 20))))

    flops = N * (2 * H * W * K * K * Ctot * Cout + 2 * (H + 2 * pad) * Wp * Cin * C1)
    cost = pl.CostEstimate(
        flops=flops,
        transcendentals=N * H * W * Cout,
        bytes_accessed=N * (Cin + Cout) * H * W * 4
        + (Cin * C1 + K * K * Ctot * Cout) * 2 + (C1 + Cout) * 4)

    out_flat = pl.pallas_call(
        kern,
        out_shape=jax.ShapeDtypeStruct((N, Cout, H * W), x_nchw.dtype),
        grid=(N, T),
        in_specs=[
            pl.BlockSpec((1, Cin, H, W), lambda n, i: (n, 0, 0, 0)),
            pl.BlockSpec((Cin, C1), lambda n, i: (0, 0)),
            pl.BlockSpec((1, C1), lambda n, i: (0, 0)),
            pl.BlockSpec((K * K * Ctot, Cout), lambda n, i: (0, 0)),
            pl.BlockSpec((1, Cout), lambda n, i: (0, 0)),
        ],
        out_specs=pl.BlockSpec((1, Cout, Ht * W), lambda n, i: (n, 0, i)),
        scratch_shapes=[pltpu.VMEM((Hs, Wp, Ctot), jnp.bfloat16)],
        compiler_params=pltpu.CompilerParams(
            dimension_semantics=("parallel", "parallel"),   # batch AND row tiles
            vmem_limit_bytes=vmem_limit),
        cost_estimate=cost,
    )(x_nchw, FP['W1'], FP['b1'], FP['Wk'], FP['bk'])

    # (N, Cout, H*W) is already NCHW-flat: free reshape, no transpose pass.
    return out_flat.reshape(N, Cout, H, W)


# ----------------------------------------------------------------------------
# Parameter construction + BN folding / branch merging (build-time, plain JAX)
# ----------------------------------------------------------------------------
def bn_affine(key, c, eps=1e-5):
    """Deterministic BatchNorm2d params (eval mode) -> per-channel (scale, shift)."""
    k1, k2, k3, k4 = jax.random.split(key, 4)
    gamma = jax.random.uniform(k1, (c,), minval=0.5, maxval=1.5)
    beta = 0.1 * jax.random.normal(k2, (c,))
    mean = 0.1 * jax.random.normal(k3, (c,))
    var = jax.random.uniform(k4, (c,), minval=0.5, maxval=1.5)
    s = gamma / jnp.sqrt(var + eps)
    t = beta - mean * s
    return s.astype(jnp.float32), t.astype(jnp.float32)


def make_params(key, Cin, Cout, K):
    """Raw DBB parameters (same structure as the PyTorch module, eval-mode BN)."""
    internal = Cin  # groups(=1) < out_channels -> internal_channels_1x1_3x3 = Cin
    ks = jax.random.split(key, 12)

    def w(k, co, ci, kh, kw, sc=0.1):
        return (sc * jax.random.normal(k, (co, ci, kh, kw))).astype(jnp.float32)

    def oihw_to_hwio(a):
        return jnp.transpose(a, (2, 3, 1, 0))

    # IdentityBasedConv1x1: effective kernel = weight + identity tensor
    w_id_raw = 0.05 * jax.random.normal(ks[3], (internal, Cin, 1, 1))
    id_t = jnp.zeros((internal, Cin, 1, 1), jnp.float32).at[
        jnp.arange(internal), jnp.arange(internal) % Cin, 0, 0].set(1.0)

    # transV_avg-style averaging kernel as a dense HWIO kernel
    eye = jnp.eye(Cout, dtype=jnp.float32)
    w_avg_pool = jnp.broadcast_to(eye, (K, K, Cout, Cout)) / float(K * K)

    return {
        'k': K,
        'w_origin':   oihw_to_hwio(w(ks[0], Cout, Cin, K, K)),
        'w_1x1':      oihw_to_hwio(w(ks[1], Cout, Cin, 1, 1)),
        'w_avg_conv': oihw_to_hwio(w(ks[2], Cout, Cin, 1, 1)),
        'w_id1x1':    oihw_to_hwio((w_id_raw + id_t).astype(jnp.float32)),
        'w_kxk_2':    oihw_to_hwio(w(ks[4], Cout, internal, K, K)),
        'w_avg_pool': w_avg_pool,
        'bn_origin':  bn_affine(ks[5], Cout),
        'bn_1x1':     bn_affine(ks[6], Cout),
        'bn_avg_pad': bn_affine(ks[7], Cout),      # BNAndPadLayer inside dbb_avg
        'bn_avg_out': bn_affine(ks[8], Cout),      # dbb_avg.avgbn
        'bn_kxk_1':   bn_affine(ks[9], internal),  # dbb_1x1_kxk.bn1 (BNAndPad)
        'bn_kxk_2':   bn_affine(ks[10], Cout),     # dbb_1x1_kxk.bn2
    }


def fold_params(P):
    """Fold eval-mode BN into weights and merge branches (zero runtime cost).

    Weights are stored bf16 (MXU-native operands); BN shifts stay f32 (accumulators).
    """
    K = P['k']
    pad = K // 2
    s_o, t_o = P['bn_origin']
    s_1, t_1 = P['bn_1x1']
    s_ap, t_ap = P['bn_avg_pad']
    s_ao, t_ao = P['bn_avg_out']
    s_k1, t_k1 = P['bn_kxk_1']
    s_k2, t_k2 = P['bn_kxk_2']

    Cin, Cout = P['w_origin'].shape[2], P['w_origin'].shape[3]
    internal = P['w_id1x1'].shape[3]
    C1 = Cout + internal
    Ctot = Cin + C1

    # stage 1: the two "inner" 1x1 convs (scale folded, shift == bias == pad value)
    Wz = P['w_avg_conv'][0, 0] * s_ap[None, :]          # (Cin, Cout)
    Wu = P['w_id1x1'][0, 0] * s_k1[None, :]             # (Cin, internal)
    W1 = jnp.concatenate([Wz, Wu], axis=1)              # (Cin, C1)
    b1 = jnp.concatenate([t_ap, t_k1])                  # (C1,)

    # stage 2: three kxk convs channel-concatenated + dbb_1x1 at the center tap
    Wo = P['w_origin'] * s_o[None, None, None, :]                 # (K,K,Cin,Cout)
    Wo = Wo.at[pad, pad].add(P['w_1x1'][0, 0] * s_1[None, :])     # embed dbb_1x1
    Wa = P['w_avg_pool'] * s_ao[None, None, None, :]              # (K,K,Cout,Cout)
    W2 = P['w_kxk_2'] * s_k2[None, None, None, :]                 # (K,K,int,Cout)
    Wk = jnp.concatenate([Wo, Wa, W2], axis=2).reshape(K * K * Ctot, Cout)
    bk = (t_o + t_1 + t_ao + t_k2).reshape(1, Cout)

    # TODO(synk): at production channel counts, zero-pad Cin/Cout/internal segments up
    #             to multiples of 128 here so every concat segment is lane-aligned
    #             (skipped for the toy config, where it would only add waste).

    return dict(K=K, pad=pad, Cin=Cin, Cout=Cout, C1=C1, Ctot=Ctot,
                W1=W1.astype(jnp.bfloat16),
                b1=b1.reshape(1, C1).astype(jnp.float32),
                Wk=Wk.astype(jnp.bfloat16),
                bk=bk.astype(jnp.float32))


# ----------------------------------------------------------------------------
# Pure-JAX reference of the original multi-branch forward (for validation)
# ----------------------------------------------------------------------------
def pad_const(x, pad, values):
    """Pad spatial dims with a per-channel constant value (BNAndPadLayer)."""
    N, H, W, C = x.shape
    out = jnp.broadcast_to(values.reshape(1, 1, 1, C),
                           (N, H + 2 * pad, W + 2 * pad, C)).astype(x.dtype)
    return out.at[:, pad:pad + H, pad:pad + W, :].set(x)


def dbb_forward_ref(x_nchw, P):
    x = jnp.transpose(x_nchw, (0, 2, 3, 1))
    K = P['k']
    pad = K // 2

    def conv(xp, w, p=0):
        return lax.conv_general_dilated(
            xp, w, (1, 1), [(p, p), (p, p)],
            dimension_numbers=('NHWC', 'HWIO', 'NHWC'))

    def aff(y, st):
        return y * st[0][None, None, None, :] + st[1][None, None, None, :]

    y1 = aff(conv(x, P['w_origin'], pad), P['bn_origin'])
    y2 = aff(conv(x, P['w_1x1']), P['bn_1x1'])
    z = aff(conv(x, P['w_avg_conv']), P['bn_avg_pad'])
    z_p = pad_const(z, pad, P['bn_avg_pad'][1])
    pooled = lax.reduce_window(z_p, 0.0, lax.add,
                               (1, K, K, 1), (1, 1, 1, 1), 'VALID') / float(K * K)
    y3 = aff(pooled, P['bn_avg_out'])
    u = aff(conv(x, P['w_id1x1']), P['bn_kxk_1'])
    u_p = pad_const(u, pad, P['bn_kxk_1'][1])
    y4 = aff(conv(u_p, P['w_kxk_2']), P['bn_kxk_2'])
    s = y1 + y2 + y3 + y4
    return jnp.transpose(s * jax.nn.sigmoid(s), (0, 3, 1, 2))


# ----------------------------------------------------------------------------
if __name__ == "__main__":
    key = jax.random.PRNGKey(0)
    k_param, k_x = jax.random.split(key)

    N, Cin, Cout, H, W, K = 2, 4, 8, 16, 16, 3
    P = make_params(k_param, Cin, Cout, K)
    FP = fold_params(P)
    x = jax.random.normal(k_x, (N, Cin, H, W), jnp.float32)

    # default tiling picks Ht=8 here -> grid (2, 2): exercises row tiling + halos
    out = jax.block_until_ready(dbb_forward_pallas(x, FP))
    ref = dbb_forward_ref(x, P)

    assert out.shape == (N, Cout, H, W), out.shape
    max_err = float(jnp.max(jnp.abs(out - ref)))
    # bf16 MXU operands (f32 accumulation) + approx-reciprocal sigmoid vs f32 reference
    assert max_err < 5e-2, f"max abs error too large: {max_err}"
    print("KERNEL_OK")
</pallas_src>

<mosaic_0001>
module attributes {stable_mosaic.version = 11 : i64} {
  func.func @_dbb_fused_kernel(%arg0: i32, %arg1: i32, %arg2: memref<1x4x16x16xf32, #tpu.memory_space<vmem>>, %arg3: memref<4x12xbf16, #tpu.memory_space<vmem>>, %arg4: memref<1x12xf32, #tpu.memory_space<vmem>>, %arg5: memref<144x8xbf16, #tpu.memory_space<vmem>>, %arg6: memref<1x8xf32, #tpu.memory_space<vmem>>, %arg7: memref<1x8x128xf32, #tpu.memory_space<vmem>>, %arg8: memref<10x18x16xbf16, #tpu.memory_space<vmem>>) attributes {dimension_semantics = [#tpu.dimension_semantics<parallel>, #tpu.dimension_semantics<parallel>], iteration_bounds = array<i64: 2, 2>, scalar_prefetch = 0 : i64, scratch_operands = 1 : i64, tpu.core_type = #tpu.core_type<tc>, window_params = [{transform_indices = @transform_0, window_bounds = array<i64: 1, 4, 16, 16>}, {pipeline_mode = #tpu.pipeline_mode<synchronous>, transform_indices = @transform_1, window_bounds = array<i64: 4, 12>}, {pipeline_mode = #tpu.pipeline_mode<synchronous>, transform_indices = @transform_2, window_bounds = array<i64: 1, 12>}, {pipeline_mode = #tpu.pipeline_mode<synchronous>, transform_indices = @transform_3, window_bounds = array<i64: 144, 8>}, {pipeline_mode = #tpu.pipeline_mode<synchronous>, transform_indices = @transform_4, window_bounds = array<i64: 1, 8>}, {transform_indices = @transform_5, window_bounds = array<i64: 1, 8, 128>}]} {
    %c8_i32 = arith.constant 8 : i32
    %0 = arith.muli %arg1, %c8_i32 : i32
    %c1_i32 = arith.constant 1 : i32
    %1 = arith.subi %0, %c1_i32 : i32
    %c0_i32 = arith.constant 0 : i32
    %2 = arith.maxsi %1, %c0_i32 : i32
    %c8_i32_0 = arith.constant 8 : i32
    %3 = arith.addi %0, %c8_i32_0 : i32
    %c15_i32 = arith.constant 15 : i32
    %4 = arith.minsi %3, %c15_i32 : i32
    %c0 = arith.constant 0 : index
    %c0_1 = arith.constant 0 : index
    %5 = arith.index_cast %2 : i32 to index
    %c0_2 = arith.constant 0 : index
    %6 = vector.load %arg2[%c0, %c0_1, %5, %c0_2] : memref<1x4x16x16xf32, #tpu.memory_space<vmem>>, vector<1x4x1x16xf32>
    %7 = vector.shape_cast %6 : vector<1x4x1x16xf32> to vector<4x1x16xf32>
    %c0_3 = arith.constant 0 : index
    %c0_4 = arith.constant 0 : index
    %8 = arith.index_cast %0 : i32 to index
    %c0_5 = arith.constant 0 : index
    %9 = vector.load %arg2[%c0_3, %c0_4, %8, %c0_5] : memref<1x4x16x16xf32, #tpu.memory_space<vmem>>, vector<1x4x8x16xf32>
    %10 = vector.shape_cast %9 : vector<1x4x8x16xf32> to vector<4x8x16xf32>
    %c0_6 = arith.constant 0 : index
    %c0_7 = arith.constant 0 : index
    %11 = arith.index_cast %4 : i32 to index
    %c0_8 = arith.constant 0 : index
    %12 = vector.load %arg2[%c0_6, %c0_7, %11, %c0_8] : memref<1x4x16x16xf32, #tpu.memory_space<vmem>>, vector<1x4x1x16xf32>
    %13 = vector.shape_cast %12 : vector<1x4x1x16xf32> to vector<4x1x16xf32>
    %c0_i32_9 = arith.constant 0 : i32
    %14 = arith.cmpi sgt, %arg1, %c0_i32_9 : i32
    %cst = arith.constant 0.000000e+00 : f32
    %15 = vector.broadcast %cst : f32 to vector<4x1x16xf32>
    %16 = arith.select %14, %7, %15 : vector<4x1x16xf32>
    %c1_i32_10 = arith.constant 1 : i32
    %17 = arith.addi %arg1, %c1_i32_10 : i32
    %c2_i32 = arith.constant 2 : i32
    %18 = arith.cmpi slt, %17, %c2_i32 : i32
    %cst_11 = arith.constant 0.000000e+00 : f32
    %19 = vector.broadcast %cst_11 : f32 to vector<4x1x16xf32>
    %20 = arith.select %18, %13, %19 : vector<4x1x16xf32>
    %21 = tpu.concatenate %16, %10, %20 in 1 : vector<4x1x16xf32>, vector<4x8x16xf32>, vector<4x1x16xf32> -> vector<4x10x16xf32>
    %22 = vector.shape_cast %21 : vector<4x10x16xf32> to vector<4x160xf32>
    %23 = tpu.transpose %22, [1, 0] : vector<4x160xf32> -> vector<160x4xf32>
    %24 = vector.shape_cast %23 : vector<160x4xf32> to vector<10x16x4xf32>
    %25 = arith.truncf %24 : vector<10x16x4xf32> to vector<10x16x4xbf16>
    %c0_12 = arith.constant 0 : index
    %c1 = arith.constant 1 : index
    %c0_13 = arith.constant 0 : index
    %26 = vector.load %arg8[%c0_12, %c1, %c0_13] : memref<10x18x16xbf16, #tpu.memory_space<vmem>>, vector<10x16x4xbf16>
    tpu.vector_store %arg8[%c0_12, %c1, %c0_13], %25 {strides = array<i32>} : memref<10x18x16xbf16, #tpu.memory_space<vmem>>, vector<10x16x4xbf16>,
    %cst_14 = arith.constant 0.000000e+00 : bf16
    %27 = vector.broadcast %cst_14 : bf16 to vector<10x1x4xbf16>
    %c0_15 = arith.constant 0 : index
    %c0_16 = arith.constant 0 : index
    %c0_17 = arith.constant 0 : index
    %28 = vector.load %arg8[%c0_15, %c0_16, %c0_17] : memref<10x18x16xbf16, #tpu.memory_space<vmem>>, vector<10x1x4xbf16>
    tpu.vector_store %arg8[%c0_15, %c0_16, %c0_17], %27 {strides = array<i32>} : memref<10x18x16xbf16, #tpu.memory_space<vmem>>, vector<10x1x4xbf16>,
    %c0_18 = arith.constant 0 : index
    %c17 = arith.constant 17 : index
    %c0_19 = arith.constant 0 : index
    %29 = vector.load %arg8[%c0_18, %c17, %c0_19] : memref<10x18x16xbf16, #tpu.memory_space<vmem>>, vector<10x1x4xbf16>
    tpu.vector_store %arg8[%c0_18, %c17, %c0_19], %27 {strides = array<i32>} : memref<10x18x16xbf16, #tpu.memory_space<vmem>>, vector<10x1x4xbf16>,
    %c0_20 = arith.constant 0 : index
    %c0_21 = arith.constant 0 : index
    %c0_22 = arith.constant 0 : index
    %30 = vector.load %arg8[%c0_20, %c0_21, %c0_22] : memref<10x18x16xbf16, #tpu.memory_space<vmem>>, vector<10x18x4xbf16>
    %31 = vector.shape_cast %30 : vector<10x18x4xbf16> to vector<180x4xbf16>
    %c0_23 = arith.constant 0 : index
    %c0_24 = arith.constant 0 : index
    %32 = vector.load %arg3[%c0_23, %c0_24] : memref<4x12xbf16, #tpu.memory_space<vmem>>, vector<4x12xbf16>
    %cst_25 = arith.constant dense<0.000000e+00> : vector<180x12xf32>
    %33 = tpu.matmul %31, %32, %cst_25 {dimension_numbers = #tpu.dot_dimension_numbers<[1], [0], [0], [1], [0, 0, 1, 1], [], []>} : vector<180x4xbf16>, vector<4x12xbf16>, vector<180x12xf32> -> vector<180x12xf32>
    %c0_26 = arith.constant 0 : index
    %c0_27 = arith.constant 0 : index
    %34 = vector.load %arg4[%c0_26, %c0_27] : memref<1x12xf32, #tpu.memory_space<vmem>>, vector<1x12xf32>
    %35 = vector.broadcast %34 : vector<1x12xf32> to vector<180x12xf32>
    %36 = arith.addf %33, %35 : vector<180x12xf32>
    %37 = vector.shape_cast %36 : vector<180x12xf32> to vector<10x18x12xf32>
    %38 = arith.truncf %37 : vector<10x18x12xf32> to vector<10x18x12xbf16>
    %c0_28 = arith.constant 0 : index
    %c0_29 = arith.constant 0 : index
    %c4 = arith.constant 4 : index
    %39 = vector.load %arg8[%c0_28, %c0_29, %c4] : memref<10x18x16xbf16, #tpu.memory_space<vmem>>, vector<10x18x12xbf16>
    tpu.vector_store %arg8[%c0_28, %c0_29, %c4], %38 {strides = array<i32>} : memref<10x18x16xbf16, #tpu.memory_space<vmem>>, vector<10x18x12xbf16>,
    %cst_30 = arith.constant 0.000000e+00 : f32
    %40 = vector.broadcast %cst_30 : f32 to vector<128x8xf32>
    %c0_31 = arith.constant 0 : index
    %c0_32 = arith.constant 0 : index
    %c0_33 = arith.constant 0 : index
    %41 = vector.load %arg8[%c0_31, %c0_32, %c0_33] : memref<10x18x16xbf16, #tpu.memory_space<vmem>>, vector<8x16x16xbf16>
    %42 = vector.shape_cast %41 : vector<8x16x16xbf16> to vector<128x16xbf16>
    %c0_34 = arith.constant 0 : index
    %c0_35 = arith.constant 0 : index
    %43 = vector.load %arg5[%c0_34, %c0_35] : memref<144x8xbf16, #tpu.memory_space<vmem>>, vector<16x8xbf16>
    %cst_36 = arith.constant dense<0.000000e+00> : vector<128x8xf32>
    %44 = tpu.matmul %42, %43, %cst_36 {dimension_numbers = #tpu.dot_dimension_numbers<[1], [0], [0], [1], [0, 0, 1, 1], [], []>} : vector<128x16xbf16>, vector<16x8xbf16>, vector<128x8xf32> -> vector<128x8xf32>
    %45 = arith.addf %40, %44 : vector<128x8xf32>
    %c0_37 = arith.constant 0 : index
    %c1_38 = arith.constant 1 : index
    %c0_39 = arith.constant 0 : index
    %46 = vector.load %arg8[%c0_37, %c1_38, %c0_39] : memref<10x18x16xbf16, #tpu.memory_space<vmem>>, vector<8x16x16xbf16>
    %47 = vector.shape_cast %46 : vector<8x16x16xbf16> to vector<128x16xbf16>
    %c16 = arith.constant 16 : index
    %c0_40 = arith.constant 0 : index
    %48 = vector.load %arg5[%c16, %c0_40] : memref<144x8xbf16, #tpu.memory_space<vmem>>, vector<16x8xbf16>
    %cst_41 = arith.constant dense<0.000000e+00> : vector<128x8xf32>
    %49 = tpu.matmul %47, %48, %cst_41 {dimension_numbers = #tpu.dot_dimension_numbers<[1], [0], [0], [1], [0, 0, 1, 1], [], []>} : vector<128x16xbf16>, vector<16x8xbf16>, vector<128x8xf32> -> vector<128x8xf32>
    %50 = arith.addf %45, %49 : vector<128x8xf32>
    %c0_42 = arith.constant 0 : index
    %c2 = arith.constant 2 : index
    %c0_43 = arith.constant 0 : index
    %51 = vector.load %arg8[%c0_42, %c2, %c0_43] : memref<10x18x16xbf16, #tpu.memory_space<vmem>>, vector<8x16x16xbf16>
    %52 = vector.shape_cast %51 : vector<8x16x16xbf16> to vector<128x16xbf16>
    %c32 = arith.constant 32 : index
    %c0_44 = arith.constant 0 : index
    %53 = vector.load %arg5[%c32, %c0_44] : memref<144x8xbf16, #tpu.memory_space<vmem>>, vector<16x8xbf16>
    %cst_45 = arith.constant dense<0.000000e+00> : vector<128x8xf32>
    %54 = tpu.matmul %52, %53, %cst_45 {dimension_numbers = #tpu.dot_dimension_numbers<[1], [0], [0], [1], [0, 0, 1, 1], [], []>} : vector<128x16xbf16>, vector<16x8xbf16>, vector<128x8xf32> -> vector<128x8xf32>
    %55 = arith.addf %50, %54 : vector<128x8xf32>
    %c1_46 = arith.constant 1 : index
    %c0_47 = arith.constant 0 : index
    %c0_48 = arith.constant 0 : index
    %56 = vector.load %arg8[%c1_46, %c0_47, %c0_48] : memref<10x18x16xbf16, #tpu.memory_space<vmem>>, vector<8x16x16xbf16>
    %57 = vector.shape_cast %56 : vector<8x16x16xbf16> to vector<128x16xbf16>
    %c48 = arith.constant 48 : index
    %c0_49 = arith.constant 0 : index
    %58 = vector.load %arg5[%c48, %c0_49] : memref<144x8xbf16, #tpu.memory_space<vmem>>, vector<16x8xbf16>
    %cst_50 = arith.constant dense<0.000000e+00> : vector<128x8xf32>
    %59 = tpu.matmul %57, %58, %cst_50 {dimension_numbers = #tpu.dot_dimension_numbers<[1], [0], [0], [1], [0, 0, 1, 1], [], []>} : vector<128x16xbf16>, vector<16x8xbf16>, vector<128x8xf32> -> vector<128x8xf32>
    %60 = arith.addf %55, %59 : vector<128x8xf32>
    %c1_51 = arith.constant 1 : index
    %c1_52 = arith.constant 1 : index
    %c0_53 = arith.constant 0 : index
    %61 = vector.load %arg8[%c1_51, %c1_52, %c0_53] : memref<10x18x16xbf16, #tpu.memory_space<vmem>>, vector<8x16x16xbf16>
    %62 = vector.shape_cast %61 : vector<8x16x16xbf16> to vector<128x16xbf16>
    %c64 = arith.constant 64 : index
    %c0_54 = arith.constant 0 : index
    %63 = vector.load %arg5[%c64, %c0_54] : memref<144x8xbf16, #tpu.memory_space<vmem>>, vector<16x8xbf16>
    %cst_55 = arith.constant dense<0.000000e+00> : vector<128x8xf32>
    %64 = tpu.matmul %62, %63, %cst_55 {dimension_numbers = #tpu.dot_dimension_numbers<[1], [0], [0], [1], [0, 0, 1, 1], [], []>} : vector<128x16xbf16>, vector<16x8xbf16>, vector<128x8xf32> -> vector<128x8xf32>
    %65 = arith.addf %60, %64 : vector<128x8xf32>
    %c1_56 = arith.constant 1 : index
    %c2_57 = arith.constant 2 : index
    %c0_58 = arith.constant 0 : index
    %66 = vector.load %arg8[%c1_56, %c2_57, %c0_58] : memref<10x18x16xbf16, #tpu.memory_space<vmem>>, vector<8x16x16xbf16>
    %67 = vector.shape_cast %66 : vector<8x16x16xbf16> to vector<128x16xbf16>
    %c80 = arith.constant 80 : index
    %c0_59 = arith.constant 0 : index
    %68 = vector.load %arg5[%c80, %c0_59] : memref<144x8xbf16, #tpu.memory_space<vmem>>, vector<16x8xbf16>
    %cst_60 = arith.constant dense<0.000000e+00> : vector<128x8xf32>
    %69 = tpu.matmul %67, %68, %cst_60 {dimension_numbers = #tpu.dot_dimension_numbers<[1], [0], [0], [1], [0, 0, 1, 1], [], []>} : vector<128x16xbf16>, vector<16x8xbf16>, vector<128x8xf32> -> vector<128x8xf32>
    %70 = arith.addf %65, %69 : vector<128x8xf32>
    %c2_61 = arith.constant 2 : index
    %c0_62 = arith.constant 0 : index
    %c0_63 = arith.constant 0 : index
    %71 = vector.load %arg8[%c2_61, %c0_62, %c0_63] : memref<10x18x16xbf16, #tpu.memory_space<vmem>>, vector<8x16x16xbf16>
    %72 = vector.shape_cast %71 : vector<8x16x16xbf16> to vector<128x16xbf16>
    %c96 = arith.constant 96 : index
    %c0_64 = arith.constant 0 : index
    %73 = vector.load %arg5[%c96, %c0_64] : memref<144x8xbf16, #tpu.memory_space<vmem>>, vector<16x8xbf16>
    %cst_65 = arith.constant dense<0.000000e+00> : vector<128x8xf32>
    %74 = tpu.matmul %72, %73, %cst_65 {dimension_numbers = #tpu.dot_dimension_numbers<[1], [0], [0], [1], [0, 0, 1, 1], [], []>} : vector<128x16xbf16>, vector<16x8xbf16>, vector<128x8xf32> -> vector<128x8xf32>
    %75 = arith.addf %70, %74 : vector<128x8xf32>
    %c2_66 = arith.constant 2 : index
    %c1_67 = arith.constant 1 : index
    %c0_68 = arith.constant 0 : index
    %76 = vector.load %arg8[%c2_66, %c1_67, %c0_68] : memref<10x18x16xbf16, #tpu.memory_space<vmem>>, vector<8x16x16xbf16>
    %77 = vector.shape_cast %76 : vector<8x16x16xbf16> to vector<128x16xbf16>
    %c112 = arith.constant 112 : index
    %c0_69 = arith.constant 0 : index
    %78 = vector.load %arg5[%c112, %c0_69] : memref<144x8xbf16, #tpu.memory_space<vmem>>, vector<16x8xbf16>
    %cst_70 = arith.constant dense<0.000000e+00> : vector<128x8xf32>
    %79 = tpu.matmul %77, %78, %cst_70 {dimension_numbers = #tpu.dot_dimension_numbers<[1], [0], [0], [1], [0, 0, 1, 1], [], []>} : vector<128x16xbf16>, vector<16x8xbf16>, vector<128x8xf32> -> vector<128x8xf32>
    %80 = arith.addf %75, %79 : vector<128x8xf32>
    %c2_71 = arith.constant 2 : index
    %c2_72 = arith.constant 2 : index
    %c0_73 = arith.constant 0 : index
    %81 = vector.load %arg8[%c2_71, %c2_72, %c0_73] : memref<10x18x16xbf16, #tpu.memory_space<vmem>>, vector<8x16x16xbf16>
    %82 = vector.shape_cast %81 : vector<8x16x16xbf16> to vector<128x16xbf16>
    %c128 = arith.constant 128 : index
    %c0_74 = arith.constant 0 : index
    %83 = vector.load %arg5[%c128, %c0_74] : memref<144x8xbf16, #tpu.memory_space<vmem>>, vector<16x8xbf16>
    %cst_75 = arith.constant dense<0.000000e+00> : vector<128x8xf32>
    %84 = tpu.matmul %82, %83, %cst_75 {dimension_numbers = #tpu.dot_dimension_numbers<[1], [0], [0], [1], [0, 0, 1, 1], [], []>} : vector<128x16xbf16>, vector<16x8xbf16>, vector<128x8xf32> -> vector<128x8xf32>
    %85 = arith.addf %80, %84 : vector<128x8xf32>
    %c0_76 = arith.constant 0 : index
    %c0_77 = arith.constant 0 : index
    %86 = vector.load %arg6[%c0_76, %c0_77] : memref<1x8xf32, #tpu.memory_space<vmem>>, vector<1x8xf32>
    %87 = vector.broadcast %86 : vector<1x8xf32> to vector<128x8xf32>
    %88 = arith.addf %85, %87 : vector<128x8xf32>
    %cst_78 = arith.constant 0.000000e+00 : f32
    %89 = vector.broadcast %cst_78 : f32 to vector<128x8xf32>
    %90 = arith.subf %89, %88 : vector<128x8xf32>
    %91 = math.exp %90 : vector<128x8xf32>
    %cst_79 = arith.constant 1.000000e+00 : f32
    %92 = vector.broadcast %cst_79 : f32 to vector<128x8xf32>
    %93 = arith.addf %92, %91 : vector<128x8xf32>
    %94 = tpu.reciprocal %93 {approx = true} : vector<128x8xf32> -> vector<128x8xf32>
    %95 = arith.mulf %88, %94 : vector<128x8xf32>
    %96 = tpu.transpose %95, [1, 0] : vector<128x8xf32> -> vector<8x128xf32>
    %c0_80 = arith.constant 0 : index
    %c0_81 = arith.constant 0 : index
    %c0_82 = arith.constant 0 : index
    %97 = vector.load %arg7[%c0_80, %c0_81, %c0_82] : memref<1x8x128xf32, #tpu.memory_space<vmem>>, vector<1x8x128xf32>
    %98 = vector.shape_cast %97 : vector<1x8x128xf32> to vector<8x128xf32>
    %99 = vector.shape_cast %96 : vector<8x128xf32> to vector<1x8x128xf32>
    tpu.vector_store %arg7[%c0_80, %c0_81, %c0_82], %99 {strides = array<i32>} : memref<1x8x128xf32, #tpu.memory_space<vmem>>, vector<1x8x128xf32>,
    return
  }
  func.func @transform_0(%arg0: i32, %arg1: i32) -> (i32, i32, i32, i32) {
    %c0_i32 = arith.constant 0 : i32
    %c0_i32_0 = arith.constant 0 : i32
    %c0_i32_1 = arith.constant 0 : i32
    %c0_i32_2 = arith.constant 0 : i32
    return %arg0, %c0_i32, %c0_i32_0, %c0_i32_1 : i32, i32, i32, i32
  }
  func.func @transform_1(%arg0: i32, %arg1: i32) -> (i32, i32) {
    %c0_i32 = arith.constant 0 : i32
    %c0_i32_0 = arith.constant 0 : i32
    %c0_i32_1 = arith.constant 0 : i32
    return %c0_i32, %c0_i32_0 : i32, i32
  }
  func.func @transform_2(%arg0: i32, %arg1: i32) -> (i32, i32) {
    %c0_i32 = arith.constant 0 : i32
    %c0_i32_0 = arith.constant 0 : i32
    %c0_i32_1 = arith.constant 0 : i32
    return %c0_i32, %c0_i32_0 : i32, i32
  }
  func.func @transform_3(%arg0: i32, %arg1: i32) -> (i32, i32) {
    %c0_i32 = arith.constant 0 : i32
    %c0_i32_0 = arith.constant 0 : i32
    %c0_i32_1 = arith.constant 0 : i32
    return %c0_i32, %c0_i32_0 : i32, i32
  }
  func.func @transform_4(%arg0: i32, %arg1: i32) -> (i32, i32) {
    %c0_i32 = arith.constant 0 : i32
    %c0_i32_0 = arith.constant 0 : i32
    %c0_i32_1 = arith.constant 0 : i32
    return %c0_i32, %c0_i32_0 : i32, i32
  }
  func.func @transform_5(%arg0: i32, %arg1: i32) -> (i32, i32, i32) {
    %c0_i32 = arith.constant 0 : i32
    %c0_i32_0 = arith.constant 0 : i32
    return %arg0, %c0_i32, %arg1 : i32, i32, i32
  }
}

</mosaic_0001>

<bundles_post_ra>
// kernel: tpu_custom_call.1
= control target key start
LH: loop header
LB: loop body
LE: loop exit
PB: predicated region body
PF: predicated region fallthrough
CT: control target
= control target key end

     0   :  { %10 = vsyncpa [#allocation4], 0  ;;  %s9058_s0 = inlined_call_operand.hbm [shape: f32[2,4,16,16], index: 0, kind: input, shape index: {}]   ;;  %s9059_s1 = inlined_call_operand.vmem [shape: bf16[4,12], index: 1, kind: input, shape index: {}]   ;;  %s9060_s2 = inlined_call_operand.vmem [shape: f32[1,12], index: 2, kind: input, shape index: {}]   ;;  %s9061_s3 = inlined_call_operand.vmem [shape: bf16[144,8], index: 3, kind: input, shape index: {}]   ;;  %s9062_s4 = inlined_call_operand.vmem [shape: f32[1,8], index: 4, kind: input, shape index: {}]   ;;  %s9063_s5 = inlined_call_operand.hbm [shape: f32[2,8,256], index: 5, kind: output, shape index: {}]  }
   0x1   :  { %12 = vsyncpa [#allocation4 + $0x1], 0 }
   0x2   :  { %13 = vsyncpa [#allocation5], 0 }
   0x3   :  { %15 = vsyncpa [#allocation5 + $0x1], 0  ;;  %s7326_s18 = smov 0   ;;  %s7328_s19 = smov 0  }
   0x4   :  { %s7330_s20 = smov 0   ;;  %s7332_s21 = smov 0  }
   0x5   :  { %s7334_s22 = smov 0   ;;  %s7336_s23 = smov 0  }
   0x6   :  { %s7338_s24 = smov 0   ;;  %s7340_s25 = smov 0  }
   0x7   :  { %s7342_s26 = smov 0   ;;  %s7344_s27 = smov 0  }
   0x8   :  { %s7346_s28 = smov 0  }
   0x9 LB: > { %9078 = sst [smem:[#allocation9_spill]] %s7274_s27  ;;  %s6148_s29 = sadd.s32 4294967295, %s7278_s28   ;;  %s7278_s28 = sphi %s7346_s28, %s21_s28   ;;  %s7274_s27 = sphi %s7344_s27, %s9126_s27   ;;  %s7270_s26 = sphi %s7342_s26, %s9134_s26   ;;  %s7266_s25 = sphi %s7340_s25, %s9124_s25   ;;  %s7262_s24 = sphi %s7338_s24, %s9133_s24   ;;  %s7258_s23 = sphi %s7336_s23, %s9132_s23   ;;  %s7254_s22 = sphi %s7334_s22, %s9131_s22   ;;  %s7250_s21 = sphi %s7332_s21, %s9130_s21   ;;  %s7246_s20 = sphi %s7330_s20, %s9129_s20   ;;  %s7242_s19 = sphi %s7328_s19, %s9128_s19   ;;  %s7238_s18 = sphi %s7326_s18, %s9127_s18  }
   0xa   : > { %s6149_s30 = sadd.s32 4294967294, %s7278_s28   ;;  %s30_s6 = sadd.s32 1, %s7270_s26 }
   0xb   : > { %s33_s7 = sadd.s32 1, %s7274_s27  ;;  %p31_p0 = scmp.ge.s32.totalorder %s30_s6, 2 }
   0xc   : > { %s40_s8 = sadd.s32 1, %s7258_s23  ;;  %p47_p1 = scmp.ne.s32.totalorder %s7258_s23, %s7254_s22 }
   0xd   : > { %p48_p2 = scmp.eq.s32.totalorder %s7278_s28, 0  ;;  %s9136_s6 = smov (%p31_p0, %s30_s6), 0 }
   0xe   : > { %9079 = sst [smem:[#allocation10_spill]] %s9136_s6  ;;  %s9138_s7 = smov (!%p31_p0, %s33_s7), %s7274_s27 }
   0xf   : > { %p7390_p3 = por %p48_p2, %p47_p1  ;;  %p53_p4 = scmp.ne.s32.totalorder %s7254_s22, %s7250_s21 }
  0x10   : > { %p35_p5 = scmp.ge.s32.totalorder %s9138_s7, 2  ;;  %p54_p6 = scmp.eq.s32.totalorder %s6148_s29, 0 }
  0x11   : > { %s148_s10 = ssub.s32 %s7270_s26, %s9136_s6  ;;  %s152_s11 = sadd.s32 1, %s7246_s20 }
  0x12   : > { %s9140_s7 = smov (%p35_p5, %s9138_s7), 0  ;;  %p7400_p7 = por %p54_p6, %p53_p4 }
  0x13   : > { %9081 = sst [smem:[#allocation11_spill]] %s9140_s7  ;;  %p162_p8 = scmp.ne.s32.totalorder %s7246_s20, %s7242_s19 }
  0x14   : > { %s37_s13 = ssub.s32 %s7274_s27, %s9140_s7  ;;  %p163_p9 = scmp.eq.s32.totalorder %s6148_s29, 3 }
  0x15   : > { %p38_p10 = scmp.eq.s32.totalorder %s37_s13, 0  ;;  %s149_s14 = sor.u32 %s148_s10, %s37_s13 }
  0x16   : > { %p150_p11 = scmp.eq.s32.totalorder %s149_s14, 0  ;;  %p7408_p12 = por %p163_p9, %p162_p8 }
  0x17   : > { %s7413_s16 = scalar_select %p38_p10, %s7258_s23, %s40_s8  }
  0x18   : > { %s9083_s15 = scalar_select %p7408_p12, 1, 0 }
  0x19   : > { %s7416_s17 = scalar_select %p150_p11, %s7246_s20, %s152_s11  }
  0x1a   : > { %p168_p13 = scmp.ne.s32.totalorder %s7242_s19, %s7238_s18  ;;  %p169_p0 = scmp.eq.s32.totalorder %s6149_s30, 3 }
  0x1b   : > { %p6922_p1 = scmp.lt.s32.totalorder %s7278_s28, 4  ;;  %s201_s29 = sand.u32 1, %s7258_s23  }
  0x1c   : > { %p7421_p2 = por %p169_p0, %p168_p13  ;;  %s6152_s10 = sshll.u32 %s201_s29, 6 }
  0x1d   : > { %s6446_s13 = sshll.u32 %s7274_s27, 10  ;;  %s205_s8 = scalar_lea.vmem [#allocation3], %s6152_s10 }
  0x1e   : > { %s9084_s21 = scalar_select %p7421_p2, 1, 0 }
  0x1f   : > { %s7430_s6 = scalar_lea.hbm %s9058_s0, %s6446_s13  ;;  %s212_s11 = sshll.u32 %s205_s8, 4  ;;  %s7432_s11 = int_to_ptr.vmem [resolvable:$true] %s212_s11 }
  0x20   : > { %p7436_p4 = pnand %p6922_p1, %p7390_p3  ;;  %s7441_s27 = scalar_lea.sflag [#allocation4], %s201_s29 }
  0x21   : > { %s7126_s7 = scalar_lea.hbm %s7430_s6, 1024  ;;  %s7131_s9 = scalar_lea.hbm %s9058_s0, 2048 }
  0x22   : > { %p7127_p6 = scmp.ne.s32.totalorder %s7430_s6, %s7126_s7  ;;  %p7128_p8 = pneg %p7436_p4 }
  0x23   : > { %p7132_p3 = scmp.lt.u32.totalorder %s7430_s6, %s9058_s0  ;;  %p7133_p11 = scmp.lt.u32.totalorder %s7131_s9, %s7126_s7 }
  0x24   : > { %p7129_p9 = pnand %p7128_p8, %p7127_p6  ;;  %p7135_p0 = scmp.lt.u32.totalorder %s7126_s7, %s7430_s6 }
  0x25   : > { %p7134_p13 = por %p7133_p11, %p7132_p3 }
  0x26   : > { %p7130_p10 = pneg %p7129_p9 }
  0x27   : > { %p7136_p1 = por %p7135_p0, %p7134_p13 }
  0x29   : > { %p7137_p5 = pnand %p7136_p1, %p7130_p10 }
  0x2b   : > { %7140 = shalt.err (!%p7137_p5)
}
  0x2c   : > { %s7141_s29 = scalar_lea.vmem %s7432_s11, 1024  ;;  %s7280_s10 = smov [#allocation3]  }
  0x2d   : > { %p7142_p6 = scmp.ne.s32.totalorder %s7432_s11, %s7141_s29  ;;  %s7146_s13 = sshll.u32 %s7280_s10, 4  ;;  %s7147_s13 = int_to_ptr.vmem [resolvable:$false] %s7146_s13 }
  0x2e   : > { %s7148_s14 = scalar_lea.vmem %s7147_s13, 2048  ;;  %p7149_p12 = scmp.lt.s32.totalorder %s7432_s11, %s7147_s13 }
  0x2f   : > { %p7144_p9 = pnand %p7142_p6, %p7128_p8  ;;  %p7150_p3 = scmp.lt.s32.totalorder %s7148_s14, %s7141_s29 }
  0x31   : > { %p7145_p2 = pneg %p7144_p9  ;;  %p7151_p11 = por %p7150_p3, %p7149_p12 }
  0x33   : > { %p7152_p13 = pnand %p7151_p11, %p7145_p2 }
  0x35   : > { %7155 = shalt.err (!%p7152_p13)
}
  0x36   : > { %s7281_s7 = smov 128   ;;  %s7282_s9 = smov 8  }
  0x37   : > { %6917 = dma.hbm_to_vmem [thread:$0]  (!%p7436_p4), %s7430_s6, 1024, %s7432_s11, %s7441_s27, %s7281_s7, %s7281_s7, %s7282_s9  }
  0x38   : > { %p220_p5 = scmp.lt.s32.totalorder %s7278_s28, 5  ;;  %p9086_p8 = scmp.ge.s32.totalorder %s7278_s28, 1 }
  0x3a   : > { %p221_p10 = pnand %p9086_p8, %p220_p5 }
  0x3c   : > { %224 = sbr.rel (%p221_p10) target bundleno = 1350 (0x546), region = 40 }
  0x43   : > { %s226_s8 = sand.u32 1, %s7254_s22  }
  0x44   : > { %s6156_s29 = sshll.u32 %s226_s8, 6  ;;  %s227_s10 = scalar_lea.sflag [#allocation4], %s226_s8 }
  0x45   : > { %s7473_s13 = scalar_lea.vmem [#allocation3], %s6156_s29 }
  0x46   : > { %7229 = dma.done.wait (%p7400_p7), %s227_s10, 1024  }
  0x47   : > { %7231 = vsyncadd (%p7400_p7), %s227_s10, 4294966272  ;;  %s6158_s27 = sshll.u32 %s7262_s24, 3  ;;  %p280_p2 = scmp.gt.s32.totalorder %s7262_s24, 0  ;;  %v7283_v0 = vmov 1983009808   ;;  %v335_v2 = vlaneseq  ;;  %vm321_vm0 = vcmask 1040384  }
  0x48   : > { %s6159_s6 = sadd.s32 4294967295, %s6158_s27  ;;  %s262_s11 = sadd.s32 8, %s6158_s27  ;;  %v333_v1 = vunpack.c.l.s4 %v7283_v0  ;;  %v7284_v7 = vmov 1934713408   ;;  %v7286_v51 = vmov 0.0   ;;  %vm455_vm3 = vcmask 130048  }
  0x49   : > { %p260_p12 = scmp.gt.s32.totalorder %s6159_s6, 0  ;;  %s270_s30 = scalar_lea.vmem %s7473_s13, %s6158_s27 [#allocation3]  ;;  %v7487_v6 = vshrl.u32 %v335_v2, 7  ;;  %v365_v8 = vunpack.c.l.s4 %v7284_v7  ;;  %vm457_vm4 = vcmask 261120   ;;  %vm459_vm5 = vcmask 392192  }
  0x4a   : > { %p7482_p4 = scmp.lt.s32.totalorder %s262_s11, 15  ;;  %v334_v5 = vunpack.c.0.s8 %v333_v1  ;;  %v7489_v10 = vld [vmem:[%s270_s30] sm:$0xff]  ;;  %v7491_v11 = vld [vmem:[%s270_s30 + $0x10] sm:$0xff]  ;;  %s288_s9 = sadd.s32 1, %s7262_s24  ;;  %vm461_vm6 = vcmask 523264   ;;  %vm463_vm7 = vcmask 654336  }
  0x4b   : > { %s9142_s6 = smov (!%p260_p12, %s6159_s6), 0  ;;  %v7495_v13 = vld [vmem:[%s270_s30 + $0x20] sm:$0xff]  ;;  %v7497_v14 = vld [vmem:[%s270_s30 + $0x30] sm:$0xff]  ;;  %v301_v15 = vrot.slane %v7489_v10, 7  ;;  %v302_v16 = vrot.slane %v7491_v11, 7  ;;  %v366_v21 = vunpack.c.0.s8 %v365_v8  ;;  %p7522_p7 = scmp.lt.s32.totalorder %s288_s9, 2 }
  0x4c   : > { %s265_s12 = scalar_lea.vmem %s7473_s13, %s9142_s6 [#allocation3]  ;;  %s9144_s11 = smov (!%p7482_p4, %s262_s11), 15  ;;  %v303_v18 = vrot.slane %v7495_v13, 7  ;;  %v304_v19 = vrot.slane %v7497_v14, 7  ;;  %v7506_v20 = vsub.s32 %v334_v5, %v7487_v6  ;;  %vm465_vm8 = vcmask 785408  }
  0x4d   : > { %v266_v3 = vld [vmem:[%s265_s12] sm:$0x1]  ;;  %v267_v4 = vld [vmem:[%s265_s12 + $0x10] sm:$0x1]  ;;  %s281_s7 = scalar_select %p280_p2, 1, 0  ;;  %v369_v34 = vsub.s32 %v366_v21, %v7487_v6 }
  0x4e   : > { %v268_v9 = vld [vmem:[%s265_s12 + $0x20] sm:$0x1]  ;;  %v269_v12 = vld [vmem:[%s265_s12 + $0x30] sm:$0x1]  ;;  %s275_s8 = scalar_lea.vmem %s7473_s13, %s9144_s11 [#allocation3]  ;;  %s7285_s13 = smov 32   ;;  %vm467_vm9 = vcmask 916480  }
  0x4f   : > { %v282_v17 = vstv %s281_s7  ;;  %s290_s10 = scalar_select %p7522_p7, 1, 0  ;;  %v276_v39 = vld [vmem:[%s275_s8] sm:$0x1]  ;;  %v277_v43 = vld [vmem:[%s275_s8 + $0x10] sm:$0x1] }
  0x50   : > { %vm283_vm1 = vcmp.eq.s32.totalorder %v282_v17, 1  ;;  %v278_v44 = vld [vmem:[%s275_s8 + $0x20] sm:$0x1]  ;;  %v279_v45 = vld [vmem:[%s275_s8 + $0x30] sm:$0x1]  ;;  %s7287_s27 = smov 64  }
  0x51   : > { %v284_v22 = vsel %vm283_vm1, %v266_v3, 0.0  ;;  %v285_v23 = vsel %vm283_vm1, %v267_v4, 0.0  ;;  %v286_v24 = vsel %vm283_vm1, %v268_v9, 0.0  ;;  %v287_v25 = vsel %vm283_vm1, %v269_v12, 0.0  ;;  %s7288_s6 = smov 16   ;;  %s7289_s11 = smov 48  }
  0x52   : > { %v322_v26 = vsel %vm321_vm0, %v284_v22, %v301_v15  ;;  %v323_v27 = vsel %vm321_vm0, %v285_v23, %v302_v16  ;;  %v324_v28 = vsel %vm321_vm0, %v286_v24, %v303_v18  ;;  %v325_v29 = vsel %vm321_vm0, %v287_v25, %v304_v19  ;;  %s7290_s30 = smov 80   ;;  %s7291_s14 = smov 96  }
  0x53   : > { %v330_v30 = vcombine.low %v322_v26, %v324_v28  ;;  %v346_v31 = vcombine.low %v323_v27, %v325_v29  ;;  %v331_v32 = vcombine.high %v322_v26, %v324_v28  ;;  %v347_v33 = vcombine.high %v323_v27, %v325_v29  ;;  %s7292_s12 = smov 112   ;;  %s254_s29 = sand.u32 1, %s7242_s19  }
  0x54   : > { %v291_v46 = vstv %s290_s10  ;;  %vm2213_vm10 = vcmask 1041408   ;;  %vm797_vm11 = vcmask 27648   ;;  %vm798_vm12 = vsmask.f32 7938  ;;  %s7294_s10 = smov 4   ;;  %s6046_s9 = scalar_lea.sflag [#allocation5], %s254_s29 }
  0x55   : > { %v338_v35 = vrot.slane %v330_v30, %v7506_v20  ;;  %v354_v36 = vrot.slane %v346_v31, %v7506_v20  ;;  %v345_v37 = vrot.slane %v331_v32, %v7506_v20  ;;  %v361_v38 = vrot.slane %v347_v33, %v7506_v20  ;;  %v1614_v30 = vld [vmem:[%s9059_s1] sm:$0x3]  ;;  %vm7554_vm14 = vmand %vm797_vm11, %vm798_vm12  ;;  %p9122_p1 = scmp.ne.s32.totalorder %s9083_s15, 0 }
  0x56   : > { %vm292_vm2 = vcmp.eq.s32.totalorder %v291_v46, 1  ;;  %6909 = vmatprep.subr.msk.bf16.mxu0 %vm2213_vm10, %v1614_v30  ;;  %v2215_v31 = vsel %vm2213_vm10, %v1614_v30, 0  ;;  %vm594_vm13 = vsmask.f32 256  ;;  %vm805_vm15 = vcmask 24576  }
  0x57   : > { %v363_v40 = vcombine.high %v338_v35, %v354_v36  ;;  %v362_v41 = vcombine.low %v338_v35, %v354_v36  ;;  %v378_v42 = vcombine.low %v345_v37, %v361_v38  ;;  %v379_v50 = vcombine.high %v345_v37, %v361_v38  ;;  %6592 = vmatpush3.bf16.msra.mxu0 %v2215_v31  ;;  %vm7560_vm1 = vmand %vm805_vm15, %vm594_vm13 }
  0x58   : > { %v293_v54 = vsel %vm292_vm2, %v276_v39, 0.0  ;;  %v294_v55 = vsel %vm292_vm2, %v277_v43, 0.0  ;;  %v295_v56 = vsel %vm292_vm2, %v278_v44, 0.0  ;;  %v296_v57 = vsel %vm292_vm2, %v279_v45, 0.0  ;;  %v800_v45 = vld [vmem:[#allocation2] sm:$0xf] }
  0x59   : > { %v377_v47 = vrot.slane %v363_v40, %v369_v34  ;;  %v386_v48 = vrot.slane %v378_v42, %v369_v34  ;;  %v370_v49 = vrot.slane %v362_v41, %v369_v34  ;;  %v313_v58 = vrot.slane %v293_v54, 7 }
  0x5a   : > { %v314_v59 = vrot.slane %v294_v55, 7  ;;  %v315_v60 = vrot.slane %v295_v56, 7  ;;  %v316_v61 = vrot.slane %v296_v57, 7  ;;  %v393_v63 = vrot.slane %v379_v50, %v369_v34 }
  0x5b   : > { %428 = vrot.lane.b32.xlu0 %v377_v47, %s7285_s13  ;;  %v395_v52 = vcombine.high %v377_v47, %v7286_v51  ;;  %436 = vrot.lane.b32.xlu1 %v386_v48, %s7287_s27  ;;  %v394_v53 = vcombine.high %v370_v49, %v7286_v51  ;;  %v396_v62 = vcombine.high %v386_v48, %v7286_v51  ;;  %vm3977_vm10 = vcmask 1042432   ;;  %s6442_s13 = sshll.u32 %s7266_s25, 1 }
  0x5c   : > { %v326_v0 = vsel %vm321_vm0, %v301_v15, %v313_v58  ;;  %v327_v1 = vsel %vm321_vm0, %v302_v16, %v314_v59  ;;  %v328_v2 = vsel %vm321_vm0, %v303_v18, %v315_v60  ;;  %v329_v3 = vsel %vm321_vm0, %v304_v19, %v316_v61  ;;  %v807_v60 = vld [vmem:[#allocation2 + $0x8] sm:$0x1]  ;;  %s6057_s27 = sadd.s32 %s7262_s24, %s6442_s13  ;;  %s7295_s24 = smov [#allocation6]  }
  0x5d   : > { %v398_v4 = vcombine.low %v326_v0, %v328_v2  ;;  %v406_v5 = vcombine.low %v327_v1, %v329_v3  ;;  %v397_v8 = vcombine.high %v393_v63, %v7286_v51  ;;  %vm595_vm0 = vsmask.f32 4368  ;;  %v859_v2 = vld [vmem:[#allocation2 + $0x60] sm:$0xf]  ;;  %s7160_s25 = sshll.u32 %s7295_s24, 4  ;;  %s7161_s25 = int_to_ptr.vmem [resolvable:$false] %s7160_s25 }
  0x5e   : > { %vm7570_vm2 = vmor %vm594_vm13, %vm595_vm0 }
  0x5f   : > { %424 = vrot.lane.b32.xlu0 %v394_v53, %s7288_s6  ;;  %432 = vrot.lane.b32.xlu1 %v395_v52, %s7289_s11  ;;  %v405_v7 = vrot.slane %v398_v4, %v7506_v20  ;;  %v413_v9 = vrot.slane %v406_v5, %v7506_v20 }
  0x61   : > { %v414_v10 = vcombine.low %v405_v7, %v413_v9 }
  0x63   : > { %440 = vrot.lane.b32.xlu0 %v396_v62, %s7290_s30  ;;  %444 = vrot.lane.b32.xlu1 %v393_v63, %s7291_s14  ;;  %v421_v11 = vrot.slane %v414_v10, %v369_v34  ;;  %v7293_v34 = vmov 1966171168   ;;  %s6443_s30 = sshll.u32 %s6057_s27, 7 }
  0x64   : > { %v1003_v35 = vunpack.c.l.s4 %v7293_v34  ;;  %s8998_s7 = scalar_lea.hbm %s9063_s5, %s6443_s30 }
  0x65   : > { %v422_v12 = vcombine.high %v421_v11, %v7286_v51 }
  0x66   : > { %v1004_v43 = vunpack.c.0.s8 %v1003_v35 }
  0x67   : > { %448 = vrot.lane.b32.xlu0 %v397_v8, %s7292_s12  ;;  %452 = vrot.lane.b32.xlu1 %v422_v12, %s7288_s6 }
  0x68   : > { %v7567_v58 = vsub.s32 %v1004_v43, %v7487_v6 }
  0xcd   : > { %v429_v13 = vpop.permute.xlu0 %428  ;;  %v437_v14 = vpop.permute.xlu1 %436 }
  0xd1   : > { %v425_v15 = vpop.permute.xlu0 %424  ;;  %v433_v16 = vpop.permute.xlu1 %432 }
  0xd2   : > { %v456_v17 = vsel %vm455_vm3, %v370_v49, %v425_v15 }
  0xd3   : > { %v458_v18 = vsel %vm457_vm4, %v456_v17, %v429_v13  ;;  %v810_v13 = vld [vmem:[#allocation2 + $0xc] sm:$0xf]  ;;  %vm7591_vm4 = vmand %vm805_vm15, %vm798_vm12 }
  0xd4   : > { %v460_v19 = vsel %vm459_vm5, %v458_v18, %v433_v16  ;;  %vm2176_vm5 = vcmask 31744  }
  0xd5   : > { %v462_v21 = vsel %vm461_vm6, %v460_v19, %v437_v14  ;;  %v441_v22 = vpop.permute.xlu0 %440  ;;  %v445_v24 = vpop.permute.xlu1 %444  ;;  %vm3380_vm6 = vcmask 125984  }
  0xd6   : > { %v464_v23 = vsel %vm463_vm7, %v462_v21, %v441_v22  ;;  %vm3383_vm7 = vcmask 122912  }
  0xd7   : > { %v466_v25 = vsel %vm465_vm8, %v464_v23, %v445_v24  ;;  %v863_v23 = vld [vmem:[#allocation2 + $0x68] sm:$0x1]  ;;  %vm3438_vm8 = vsmask.f32 3328 }
  0xd9   : > { %v449_v26 = vpop.permute.xlu0 %448  ;;  %v453_v28 = vpop.permute.xlu1 %452 }
  0xda   : > { %v468_v27 = vsel %vm467_vm9, %v466_v25, %v449_v26  ;;  %v469_v29 = vsel %vm455_vm3, %v421_v11, %v453_v28  ;;  %vm3439_vm9 = vsmask.f32 7440 }
  0xdb   : > { %470 = vxpose.xlu0.b32.start.end [1/1] (short) %v468_v27, 128  ;;  %502 = vxpose.xlu1.b32.start.end [1/1] (short) (narrow) %v469_v29, 32  ;;  %vm8157_vm13 = vmor %vm3438_vm8, %vm3439_vm9 }
 0x15b   : > { %v486_v32 = vpop.trf.xlu0  ;;  %v518_v38 = vpop.trf.xlu1 }
 0x15c   : > { %v6447_v33 = vpack.c.bf16 %v486_v32, %v486_v32  ;;  %v6463_v42 = vpack.c.bf16 %v518_v38, %v518_v38 }
 0x15e   : > { %v598_v36 = vshrl.u32 %v6447_v33, 16  ;;  %v601_v40 = vshll.u32 %v6447_v33, 16  ;;  %v734_v50 = vshrl.u32 %v6463_v42, 16  ;;  %v737_v51 = vshll.u32 %v6463_v42, 16 }
 0x15f   : > { %v487_v37 = vpop.trf.xlu0  ;;  %v519_v52 = vpop.trf.xlu1 }
 0x160   : > { %v600_v39 = vrot.slane %v598_v36, 7  ;;  %v6448_v41 = vpack.c.bf16 %v487_v37, %v487_v37  ;;  %v6464_v57 = vpack.c.bf16 %v519_v52, %v519_v52  ;;  %v736_v61 = vrot.slane %v734_v50, 7  ;;  %v814_v36 = vld [vmem:[#allocation2 + $0x14] sm:$0x1] }
 0x162   : > { %v603_v46 = vor.u32 %v601_v40, %v600_v39  ;;  %v606_v47 = vshrl.u32 %v6448_v41, 16  ;;  %v609_v48 = vshll.u32 %v6448_v41, 16  ;;  %v604_v62 = vrot.slane %v600_v39, 4 }
 0x163   : > { %v488_v49 = vpop.trf.xlu0  ;;  %v739_v5 = vor.u32 %v737_v51, %v736_v61  ;;  %v742_v7 = vshrl.u32 %v6464_v57, 16  ;;  %v745_v8 = vshll.u32 %v6464_v57, 16  ;;  %v520_v6 = vpop.trf.xlu1  ;;  %v740_v14 = vrot.slane %v736_v61, 4 }
 0x164   : > { %v801_v54 = vsel %vm7554_vm14, %v603_v46, %v800_v45  ;;  %v608_v55 = vrot.slane %v606_v47, 7  ;;  %v6449_v56 = vpack.c.bf16 %v488_v49, %v488_v49  ;;  %v6465_v17 = vpack.c.bf16 %v520_v6, %v520_v6  ;;  %v866_v46 = vld [vmem:[#allocation2 + $0x6c] sm:$0xf] }
 0x165   : > { %802 = vst [vmem:[#allocation2] sm:$0xf] %v801_v54  ;;  %v860_v15 = vsel %vm7554_vm14, %v739_v5, %v859_v2  ;;  %v744_v16 = vrot.slane %v742_v7, 7 }
 0x166   : > { %v611_v63 = vor.u32 %v609_v48, %v608_v55  ;;  %v613_v0 = vrot.slane %v608_v55, 4  ;;  %v615_v1 = vshrl.u32 %v6449_v56, 16  ;;  %v618_v3 = vshll.u32 %v6449_v56, 16  ;;  %861 = vst [vmem:[#allocation2 + $0x60] sm:$0xf] %v860_v15 }
 0x167   : > { %v489_v4 = vpop.trf.xlu0  ;;  %v747_v25 = vor.u32 %v745_v8, %v744_v16  ;;  %v749_v26 = vrot.slane %v744_v16, 4  ;;  %v751_v27 = vshrl.u32 %v6465_v17, 16  ;;  %v754_v28 = vshll.u32 %v6465_v17, 16  ;;  %v521_v29 = vpop.trf.xlu1  ;;  %v817_v56 = vld [vmem:[#allocation2 + $0x18] sm:$0xf] }
 0x168   : > { %v612_v9 = vsel %vm7570_vm2, %v604_v62, %v611_v63  ;;  %v808_v10 = vsel %vm7560_vm1, %v613_v0, %v807_v60  ;;  %v617_v11 = vrot.slane %v615_v1, 7  ;;  %v6450_v12 = vpack.c.bf16 %v489_v4, %v489_v4 }
 0x169   : > { %804 = vst.msk [vmem:[#allocation2 + $0x4] sm:$0xf] %vm797_vm11, %v612_v9  ;;  %809 = vst [vmem:[#allocation2 + $0x8] sm:$0x1] %v808_v10  ;;  %v6466_v34 = vpack.c.bf16 %v521_v29, %v521_v29  ;;  %v748_v37 = vsel %vm7570_vm2, %v740_v14, %v747_v25  ;;  %v864_v38 = vsel %vm7560_vm1, %v749_v26, %v863_v23  ;;  %v753_v39 = vrot.slane %v751_v27, 7 }
 0x16a   : > { %v620_v18 = vor.u32 %v618_v3, %v617_v11  ;;  %v621_v19 = vrot.slane %v617_v11, 4  ;;  %v623_v21 = vshrl.u32 %v6450_v12, 16  ;;  %v626_v22 = vshll.u32 %v6450_v12, 16  ;;  %862 = vst.msk [vmem:[#allocation2 + $0x64] sm:$0xf] %vm797_vm11, %v748_v37 }
 0x16b   : > { %v490_v24 = vpop.trf.xlu0  ;;  %865 = vst [vmem:[#allocation2 + $0x68] sm:$0x1] %v864_v38  ;;  %v756_v48 = vor.u32 %v754_v28, %v753_v39  ;;  %v757_v49 = vrot.slane %v753_v39, 4  ;;  %v759_v50 = vshrl.u32 %v6466_v34, 16  ;;  %v762_v51 = vshll.u32 %v6466_v34, 16 }
 0x16c   : > { %v873_v30 = vld [vmem:[#allocation2] sm:$0x1]  ;;  %v811_v31 = vsel %vm7554_vm14, %v620_v18, %v810_v13  ;;  %v625_v32 = vrot.slane %v623_v21, 7  ;;  %v6451_v33 = vpack.c.bf16 %v490_v24, %v490_v24  ;;  %v824_v34 = vld [vmem:[#allocation2 + $0x24] sm:$0xf] }
 0x16d   : > { %v874_v35 = vsel %vm7560_vm1, 0, %v873_v30  ;;  %812 = vst [vmem:[#allocation2 + $0xc] sm:$0xf] %v811_v31  ;;  %v867_v63 = vsel %vm7554_vm14, %v756_v48, %v866_v46  ;;  %v7605_v0 = vrot.slane %v759_v50, 7  ;;  %v897_v4 = vld [vmem:[#allocation2 + $0x60] sm:$0x1] }
 0x16e   : > { %875 = vst [vmem:[#allocation2] sm:$0x1] %v874_v35  ;;  %v628_v41 = vor.u32 %v626_v22, %v625_v32  ;;  %v630_v42 = vrot.slane %v625_v32, 4  ;;  %v632_v43 = vshrl.u32 %v6451_v33, 16  ;;  %v635_v45 = vshll.u32 %v6451_v33, 16 }
 0x16f   : > { %v491_v47 = vpop.trf.xlu0  ;;  %868 = vst [vmem:[#allocation2 + $0x6c] sm:$0xf] %v867_v63  ;;  %v898_v6 = vsel %vm7560_vm1, 0, %v897_v4  ;;  %v764_v9 = vor.u32 %v762_v51, %v7605_v0  ;;  %v821_v12 = vld [vmem:[#allocation2 + $0x20] sm:$0x1]  ;;  %v766_v21 = vrot.slane %v7605_v0, 4 }
 0x170   : > { %v904_v52 = vld [vmem:[#allocation2 + $0x8] sm:$0x1]  ;;  %v629_v54 = vsel %vm7570_vm2, %v621_v19, %v628_v41  ;;  %v815_v55 = vsel %vm7560_vm1, %v630_v42, %v814_v36  ;;  %v634_v57 = vrot.slane %v632_v43, 7  ;;  %v6452_v60 = vpack.c.bf16 %v491_v47, %v491_v47  ;;  %899 = vst [vmem:[#allocation2 + $0x60] sm:$0x1] %v898_v6 }
 0x171   : > { %v905_v61 = vsel %vm7591_vm4, 0, %v904_v52  ;;  %813 = vst.msk [vmem:[#allocation2 + $0x10] sm:$0xf] %vm797_vm11, %v629_v54  ;;  %816 = vst [vmem:[#allocation2 + $0x14] sm:$0x1] %v815_v55  ;;  %v765_v19 = vsel %vm7570_vm2, %v757_v49, %v764_v9 }
 0x172   : > { %v6181_v62 = vld.sshfl [vmem:[#allocation2 + $0x4] sm:$0x33 pattern:$0x75316420]  ;;  %906 = vst [vmem:[#allocation2 + $0x8] sm:$0x1] %v905_v61  ;;  %v637_v1 = vor.u32 %v635_v45, %v634_v57 }
 0x173   : > { %v638_v2 = vrot.slane %v634_v57, 4  ;;  %v640_v3 = vshrl.u32 %v6452_v60, 16  ;;  %v643_v5 = vshll.u32 %v6452_v60, 16  ;;  %v492_v7 = vpop.trf.xlu0  ;;  %v1025_v8 = vcombine.high %v6181_v62, %v6181_v62  ;;  %869 = vst.msk [vmem:[#allocation2 + $0x70] sm:$0xf] %vm797_vm11, %v765_v19 }
 0x174   : > { %v876_v10 = vld [vmem:[#allocation2 + $0xc] sm:$0x1]  ;;  %v818_v11 = vsel %vm7554_vm14, %v637_v1, %v817_v56  ;;  %v6453_v14 = vpack.c.bf16 %v492_v7, %v492_v7  ;;  %v1032_v15 = vrot.slane %v6181_v62, %v7567_v58 }
 0x175   : > { %v642_v13 = vrot.slane %v640_v3, 7  ;;  %v877_v16 = vsel %vm7560_vm1, 0, %v876_v10  ;;  %819 = vst [vmem:[#allocation2 + $0x18] sm:$0xf] %v818_v11  ;;  %v1039_v18 = vrot.slane %v1025_v8, %v7567_v58  ;;  %v828_v57 = vld [vmem:[#allocation2 + $0x2c] sm:$0x1] }
 0x176   : > { %v6180_v17 = vld.sshfl [vmem:[#allocation2] sm:$0x33 pattern:$0x75316420]  ;;  %878 = vst [vmem:[#allocation2 + $0xc] sm:$0x1] %v877_v16 }
 0x177   : > { %v645_v22 = vor.u32 %v643_v5, %v642_v13  ;;  %v647_v23 = vrot.slane %v642_v13, 4  ;;  %v649_v24 = vshrl.u32 %v6453_v14, 16  ;;  %v652_v25 = vshll.u32 %v6453_v14, 16  ;;  %v493_v26 = vpop.trf.xlu0 }
 0x178   : > { %v1001_v27 = vcombine.high %v6180_v17, %v6180_v17  ;;  %v1008_v28 = vrot.slane %v6180_v17, %v7567_v58  ;;  %v1624_v29 = vcombine.low %v1032_v15, %v1039_v18  ;;  %v6212_v30 = vcombine.high %v1032_v15, %v1039_v18  ;;  %v907_v31 = vld [vmem:[#allocation2 + $0x14] sm:$0x1]  ;;  %v6184_v52 = vld.sshfl [vmem:[#allocation2 + $0x10] sm:$0x33 pattern:$0x75316420] }
 0x179   : > { %v646_v32 = vsel %vm7570_vm2, %v638_v2, %v645_v22  ;;  %v822_v33 = vsel %vm7560_vm1, %v647_v23, %v821_v12  ;;  %v651_v35 = vrot.slane %v649_v24, 7  ;;  %v6454_v36 = vpack.c.bf16 %v493_v26, %v493_v26  ;;  %v6182_v42 = vld.sshfl [vmem:[#allocation2 + $0x8] sm:$0x1 pattern:$0x75316420] }
 0x17a   : > { %v908_v37 = vsel %vm7591_vm4, 0, %v907_v31  ;;  %820 = vst.msk [vmem:[#allocation2 + $0x1c] sm:$0xf] %vm797_vm11, %v646_v32  ;;  %823 = vst [vmem:[#allocation2 + $0x20] sm:$0x1] %v822_v33  ;;  %v1015_v38 = vrot.slane %v1001_v27, %v7567_v58  ;;  %v1646_v39 = vrot.slane %v1624_v29, %v7567_v58  ;;  %v1653_v41 = vrot.slane %v6212_v30, %v7567_v58 }
 0x17b   : > { %909 = vst [vmem:[#allocation2 + $0x14] sm:$0x1] %v908_v37  ;;  %v654_v43 = vor.u32 %v652_v25, %v651_v35  ;;  %v655_v45 = vrot.slane %v651_v35, 4  ;;  %v657_v46 = vshrl.u32 %v6454_v36, 16  ;;  %v660_v47 = vshll.u32 %v6454_v36, 16  ;;  %v494_v48 = vpop.trf.xlu0 }
 0x17c   : > { %v1622_v49 = vcombine.low %v1008_v28, %v1015_v38  ;;  %v6211_v50 = vcombine.high %v1008_v28, %v1015_v38  ;;  %v1655_v51 = vcombine.low %v1646_v39, %v1653_v41  ;;  %v1055_v54 = vrot.slane %v6182_v42, %v7567_v58  ;;  %v879_v55 = vld [vmem:[#allocation2 + $0x18] sm:$0x1]  ;;  %v831_v22 = vld [vmem:[#allocation2 + $0x30] sm:$0xf] }
 0x17d   : > { %v825_v56 = vsel %vm7554_vm14, %v654_v43, %v824_v34  ;;  %v659_v60 = vrot.slane %v657_v46, 7  ;;  %v6455_v61 = vpack.c.bf16 %v494_v48, %v494_v48  ;;  %v1087_v62 = vcombine.high %v6184_v52, %v6184_v52  ;;  %v6183_v4 = vld.sshfl [vmem:[#allocation2 + $0xc] sm:$0x33 pattern:$0x75316420] }
 0x17e   : > { %v880_v63 = vsel %vm7560_vm1, 0, %v879_v55  ;;  %826 = vst [vmem:[#allocation2 + $0x24] sm:$0xf] %v825_v56  ;;  %v1632_v1 = vrot.slane %v1622_v49, %v7567_v58  ;;  %v1639_v2 = vrot.slane %v6211_v50, %v7567_v58  ;;  %v1669_v3 = vrot.slane %v1655_v51, %v7567_v58  ;;  %v835_v42 = vld [vmem:[#allocation2 + $0x38] sm:$0x1] }
 0x17f   : > { %881 = vst [vmem:[#allocation2 + $0x18] sm:$0x1] %v880_v63  ;;  %v662_v5 = vor.u32 %v660_v47, %v659_v60  ;;  %v664_v7 = vrot.slane %v659_v60, 4  ;;  %v666_v8 = vshrl.u32 %v6455_v61, 16  ;;  %v669_v6 = vshll.u32 %v6455_v61, 16  ;;  %v495_v9 = vpop.trf.xlu0 }
 0x180   : > { %v1654_v10 = vcombine.low %v1632_v1, %v1639_v2  ;;  %v1063_v11 = vcombine.high %v6183_v4, %v6183_v4  ;;  %v1070_v12 = vrot.slane %v6183_v4, %v7567_v58  ;;  %v1094_v13 = vrot.slane %v6184_v52, %v7567_v58  ;;  %v838_v1 = vld [vmem:[#allocation2 + $0x3c] sm:$0xf] }
 0x181   : > { %v910_v14 = vld [vmem:[#allocation2 + $0x20] sm:$0x1]  ;;  %v663_v15 = vsel %vm7570_vm2, %v655_v45, %v662_v5  ;;  %v829_v16 = vsel %vm7560_vm1, %v664_v7, %v828_v57  ;;  %v668_v17 = vrot.slane %v666_v8, 7  ;;  %v6456_v18 = vpack.c.bf16 %v495_v9, %v495_v9 }
 0x182   : > { %v911_v19 = vsel %vm7591_vm4, 0, %v910_v14  ;;  %827 = vst.msk [vmem:[#allocation2 + $0x28] sm:$0xf] %vm797_vm11, %v663_v15  ;;  %830 = vst [vmem:[#allocation2 + $0x2c] sm:$0x1] %v829_v16  ;;  %v1662_v23 = vrot.slane %v1654_v10, %v7567_v58  ;;  %v1077_v24 = vrot.slane %v1063_v11, %v7567_v58  ;;  %v1078_v25 = vcombine.high %v1070_v12, %v1070_v12 }
 0x183   : > { %912 = vst [vmem:[#allocation2 + $0x20] sm:$0x1] %v911_v19  ;;  %v671_v26 = vor.u32 %v669_v6, %v668_v17  ;;  %v672_v27 = vrot.slane %v668_v17, 4  ;;  %v674_v28 = vshrl.u32 %v6456_v18, 16  ;;  %v677_v29 = vshll.u32 %v6456_v18, 16  ;;  %v496_v30 = vpop.trf.xlu0 }
 0x184   : > { %v1670_v31 = vcombine.low %v1662_v23, %v1669_v3  ;;  %v1079_v32 = vcombine.high %v1077_v24, %v1077_v24  ;;  %v7651_v33 = vrot.slane %v1087_v62, %v7567_v58  ;;  %v1102_v34 = vcombine.high %v1094_v13, %v1094_v13  ;;  %v6185_v51 = vld.sshfl [vmem:[#allocation2 + $0x14] sm:$0x1 pattern:$0x75316420] }
 0x185   : > { %v882_v35 = vld [vmem:[#allocation2 + $0x24] sm:$0x1]  ;;  %v832_v36 = vsel %vm7554_vm14, %v671_v26, %v831_v22  ;;  %v676_v37 = vrot.slane %v674_v28, 7  ;;  %v6457_v38 = vpack.c.bf16 %v496_v30, %v496_v30  ;;  %v1671_v39 = vcombine.low %v1055_v54, %v1070_v12 }
 0x186   : > { %v883_v41 = vsel %vm7560_vm1, 0, %v882_v35  ;;  %833 = vst [vmem:[#allocation2 + $0x30] sm:$0xf] %v832_v36  ;;  %6593 = vmatprep.mubr.msk.bf16.mxu0 %vm2176_vm5, %v1670_v31  ;;  %v1672_v43 = vcombine.low %v1077_v24, %v1078_v25  ;;  %v1673_v45 = vcombine.low %v1079_v32, %v1094_v13  ;;  %v1674_v46 = vcombine.low %v7651_v33, %v1102_v34  ;;  %v842_v26 = vld [vmem:[#allocation2 + $0x44] sm:$0x1] }
 0x187   : > { %884 = vst [vmem:[#allocation2 + $0x24] sm:$0x1] %v883_v41  ;;  %v679_v47 = vor.u32 %v677_v29, %v676_v37  ;;  %v681_v48 = vrot.slane %v676_v37, 4  ;;  %v683_v49 = vshrl.u32 %v6457_v38, 16  ;;  %v686_v50 = vshll.u32 %v6457_v38, 16  ;;  %v497_v52 = vpop.trf.xlu0 }
 0x188   : > { %v1681_v54 = vrot.slane %v1671_v39, %v7567_v58  ;;  %v1688_v55 = vrot.slane %v1672_v43, %v7567_v58  ;;  %v1695_v56 = vrot.slane %v1673_v45, %v7567_v58  ;;  %v1702_v57 = vrot.slane %v1674_v46, %v7567_v58  ;;  %v6186_v60 = vld.sshfl [vmem:[#allocation2 + $0x18] sm:$0x33 pattern:$0x75316420]  ;;  %v845_v34 = vld [vmem:[#allocation2 + $0x48] sm:$0xf] }
 0x189   : > { %v913_v61 = vld [vmem:[#allocation2 + $0x2c] sm:$0x1]  ;;  %v680_v62 = vsel %vm7570_vm2, %v672_v27, %v679_v47  ;;  %v836_v63 = vsel %vm7560_vm1, %v681_v48, %v835_v42  ;;  %v685_v2 = vrot.slane %v683_v49, 7  ;;  %v6458_v3 = vpack.c.bf16 %v497_v52, %v497_v52  ;;  %v928_v41 = vld [vmem:[#allocation2 + $0x68] sm:$0x1] }
 0x18a   : > { %v914_v4 = vsel %vm7591_vm4, 0, %v913_v61  ;;  %834 = vst.msk [vmem:[#allocation2 + $0x34] sm:$0xf] %vm797_vm11, %v680_v62  ;;  %837 = vst [vmem:[#allocation2 + $0x38] sm:$0x1] %v836_v63  ;;  %v1703_v5 = vcombine.low %v1681_v54, %v1688_v55  ;;  %v1704_v7 = vcombine.low %v1695_v56, %v1702_v57  ;;  %v1103_v6 = vcombine.high %v7651_v33, %v7651_v33 }
 0x18b   : > { %v6187_v8 = vld.sshfl [vmem:[#allocation2 + $0x1c] sm:$0x33 pattern:$0x75316420]  ;;  %915 = vst [vmem:[#allocation2 + $0x2c] sm:$0x1] %v914_v4  ;;  %v688_v9 = vor.u32 %v686_v50, %v685_v2  ;;  %v498_v13 = vpop.trf.xlu0  ;;  %v1117_v16 = vrot.slane %v6185_v51, %v7567_v58  ;;  %v1125_v17 = vcombine.high %v6186_v60, %v6186_v60  ;;  %v1132_v24 = vrot.slane %v6186_v60, %v7567_v58 }
 0x18c   : > { %v689_v10 = vrot.slane %v685_v2, 4  ;;  %v691_v11 = vshrl.u32 %v6458_v3, 16  ;;  %v694_v12 = vshll.u32 %v6458_v3, 16  ;;  %v1711_v14 = vrot.slane %v1703_v5, %v7567_v58  ;;  %v900_v48 = vld [vmem:[#allocation2 + $0x6c] sm:$0x1] }
 0x18d   : > { %v1718_v15 = vrot.slane %v1704_v7, %v7567_v58  ;;  %v885_v18 = vld [vmem:[#allocation2 + $0x30] sm:$0x1]  ;;  %v839_v19 = vsel %vm7554_vm14, %v688_v9, %v838_v1  ;;  %v6459_v23 = vpack.c.bf16 %v498_v13, %v498_v13  ;;  %v1139_v28 = vrot.slane %v1125_v17, %v7567_v58  ;;  %v6188_v54 = vld.sshfl [vmem:[#allocation2 + $0x20] sm:$0x1 pattern:$0x75316420] }
 0x18e   : > { %v693_v22 = vrot.slane %v691_v11, 7  ;;  %v886_v25 = vsel %vm7560_vm1, 0, %v885_v18  ;;  %840 = vst [vmem:[#allocation2 + $0x3c] sm:$0xf] %v839_v19  ;;  %v1149_v29 = vcombine.high %v6187_v8, %v6187_v8  ;;  %v7683_v36 = vrot.slane %v6187_v8, %v7567_v58 }
 0x18f   : > { %v1719_v27 = vcombine.low %v1711_v14, %v1718_v15  ;;  %887 = vst [vmem:[#allocation2 + $0x30] sm:$0x1] %v886_v25  ;;  %v700_v32 = vshrl.u32 %v6459_v23, 16  ;;  %v703_v33 = vshll.u32 %v6459_v23, 16  ;;  %v499_v35 = vpop.trf.xlu0  ;;  %v1720_v38 = vcombine.low %v1103_v6, %v1117_v16 }
 0x190   : > { %v696_v30 = vor.u32 %v694_v12, %v693_v22  ;;  %v698_v31 = vrot.slane %v693_v22, 4  ;;  %v7686_v37 = vrot.slane %v1149_v29, %v7567_v58  ;;  %v1721_v39 = vcombine.low %v1132_v24, %v1139_v28  ;;  %v6189_v3 = vld.sshfl [vmem:[#allocation2 + $0x24] sm:$0x33 pattern:$0x75316420] }
 0x191   : > { %6594 = vmatmul.mubr.msk.bf16.vlgmr.msra.gmra.mrb[0].mxu0 %vm2176_vm5, %v1719_v27  ;;  %v916_v42 = vld [vmem:[#allocation2 + $0x38] sm:$0x1]  ;;  %v702_v46 = vrot.slane %v700_v32, 7  ;;  %v6460_v47 = vpack.c.bf16 %v499_v35, %v499_v35  ;;  %v6213_v50 = vcombine.high %v1132_v24, %v1139_v28  ;;  %v1730_v52 = vrot.slane %v1720_v38, %v7567_v58  ;;  %v852_v32 = vld [vmem:[#allocation2 + $0x54] sm:$0xf] }
 0x192   : > { %v697_v43 = vsel %vm7570_vm2, %v689_v10, %v696_v30  ;;  %v843_v45 = vsel %vm7560_vm1, %v698_v31, %v842_v26  ;;  %v917_v49 = vsel %vm7591_vm4, 0, %v916_v42  ;;  %v1723_v51 = vcombine.low %v7683_v36, %v7686_v37  ;;  %v849_v10 = vld [vmem:[#allocation2 + $0x50] sm:$0x1] }
 0x193   : > { %841 = vst.msk [vmem:[#allocation2 + $0x40] sm:$0xf] %vm797_vm11, %v697_v43  ;;  %844 = vst [vmem:[#allocation2 + $0x44] sm:$0x1] %v843_v45  ;;  %v705_v55 = vor.u32 %v703_v33, %v702_v46  ;;  %v706_v56 = vrot.slane %v702_v46, 4  ;;  %v708_v57 = vshrl.u32 %v6460_v47, 16  ;;  %v500_v61 = vpop.trf.xlu0  ;;  %v1737_v62 = vrot.slane %v1721_v39, %v7567_v58 }
 0x194   : > { %918 = vst [vmem:[#allocation2 + $0x38] sm:$0x1] %v917_v49  ;;  %v711_v60 = vshll.u32 %v6460_v47, 16  ;;  %v1744_v63 = vrot.slane %v6213_v50, %v7567_v58  ;;  %v1751_v1 = vrot.slane %v1723_v51, %v7567_v58  ;;  %v929_v2 = vsel %vm7591_vm4, 0, %v928_v41  ;;  %v856_v51 = vld [vmem:[#allocation2 + $0x5c] sm:$0x1] }
 0x195   : > { %v888_v4 = vld [vmem:[#allocation2 + $0x3c] sm:$0x1]  ;;  %v846_v5 = vsel %vm7554_vm14, %v705_v55, %v845_v34  ;;  %v710_v7 = vrot.slane %v708_v57, 7  ;;  %v6461_v8 = vpack.c.bf16 %v500_v61, %v500_v61  ;;  %930 = vst [vmem:[#allocation2 + $0x68] sm:$0x1] %v929_v2  ;;  %v901_v6 = vsel %vm7560_vm1, 0, %v900_v48 }
 0x196   : > { %v889_v9 = vsel %vm7560_vm1, 0, %v888_v4  ;;  %847 = vst [vmem:[#allocation2 + $0x48] sm:$0xf] %v846_v5  ;;  %v1752_v11 = vcombine.low %v1730_v52, %v1737_v62  ;;  %v1753_v12 = vcombine.low %v1744_v63, %v1751_v1  ;;  %902 = vst [vmem:[#allocation2 + $0x6c] sm:$0x1] %v901_v6  ;;  %v1179_v13 = vrot.slane %v6188_v54, %v7567_v58 }
 0x197   : > { %890 = vst [vmem:[#allocation2 + $0x3c] sm:$0x1] %v889_v9  ;;  %v713_v14 = vor.u32 %v711_v60, %v710_v7  ;;  %v715_v15 = vrot.slane %v710_v7, 4  ;;  %v717_v16 = vshrl.u32 %v6461_v8, 16  ;;  %v720_v17 = vshll.u32 %v6461_v8, 16  ;;  %v501_v22 = vpop.trf.xlu0 }
 0x198   : > { %v1760_v18 = vrot.slane %v1752_v11, %v7567_v58  ;;  %v1767_v19 = vrot.slane %v1753_v12, %v7567_v58  ;;  %v6190_v23 = vld.sshfl [vmem:[#allocation2 + $0x28] sm:$0x33 pattern:$0x75316420]  ;;  %v1187_v24 = vcombine.high %v6189_v3, %v6189_v3  ;;  %v1194_v25 = vrot.slane %v6189_v3, %v7567_v58  ;;  %v870_v5 = vld [vmem:[#allocation2 + $0x74] sm:$0x1] }
 0x199   : > { %v714_v27 = vsel %vm7570_vm2, %v706_v56, %v713_v14  ;;  %v850_v28 = vsel %vm7560_vm1, %v715_v15, %v849_v10  ;;  %v719_v29 = vrot.slane %v717_v16, 7  ;;  %v6462_v30 = vpack.c.bf16 %v501_v22, %v501_v22  ;;  %v6191_v48 = vld.sshfl [vmem:[#allocation2 + $0x2c] sm:$0x1 pattern:$0x75316420] }
 0x19a   : > { %v919_v26 = vld [vmem:[#allocation2 + $0x44] sm:$0x1]  ;;  %848 = vst.msk [vmem:[#allocation2 + $0x4c] sm:$0xf] %vm797_vm11, %v714_v27  ;;  %851 = vst [vmem:[#allocation2 + $0x50] sm:$0x1] %v850_v28  ;;  %v1768_v33 = vcombine.low %v1760_v18, %v1767_v19  ;;  %v1201_v34 = vrot.slane %v1187_v24, %v7567_v58  ;;  %v1202_v35 = vcombine.high %v1194_v25, %v1194_v25 }
 0x19b   : > { %v920_v31 = vsel %vm7591_vm4, 0, %v919_v26  ;;  %v722_v38 = vor.u32 %v720_v17, %v719_v29  ;;  %v723_v39 = vrot.slane %v719_v29, 4  ;;  %v725_v41 = vshrl.u32 %v6462_v30, 16 }
 0x19c   : > { %921 = vst [vmem:[#allocation2 + $0x44] sm:$0x1] %v920_v31  ;;  %v728_v42 = vshll.u32 %v6462_v30, 16  ;;  %6597 = vmatprep.mubr.msk.bf16.mxu0 %vm2176_vm5, %v1768_v33  ;;  %v1203_v43 = vcombine.high %v1201_v34, %v1201_v34  ;;  %v1218_v45 = vrot.slane %v6190_v23, %v7567_v58  ;;  %v6214_v46 = vcombine.high %v7683_v36, %v7686_v37 }
 0x19d   : > { %v1770_v47 = vcombine.low %v1179_v13, %v1194_v25  ;;  %v891_v49 = vld [vmem:[#allocation2 + $0x48] sm:$0x1]  ;;  %v853_v50 = vsel %vm7554_vm14, %v722_v38, %v852_v32  ;;  %v727_v52 = vrot.slane %v725_v41, 7  ;;  %v1771_v54 = vcombine.low %v1201_v34, %v1202_v35 }
 0x19e   : > { %v1211_v55 = vcombine.high %v6190_v23, %v6190_v23  ;;  %v892_v56 = vsel %vm7560_vm1, 0, %v891_v49  ;;  %854 = vst [vmem:[#allocation2 + $0x54] sm:$0xf] %v853_v50  ;;  %v1772_v57 = vcombine.low %v1203_v43, %v1218_v45  ;;  %v1779_v60 = vrot.slane %v6214_v46, %v7567_v58 }
 0x19f   : > { %v1786_v61 = vrot.slane %v1770_v47, %v7567_v58  ;;  %v6192_v36 = vld.sshfl [vmem:[#allocation2 + $0x30] sm:$0x33 pattern:$0x75316420]  ;;  %893 = vst [vmem:[#allocation2 + $0x48] sm:$0x1] %v892_v56  ;;  %v730_v37 = vor.u32 %v728_v42, %v727_v52  ;;  %v1793_v44 = vrot.slane %v1771_v54, %v7567_v58  ;;  %v1226_v3 = vcombine.high %v1218_v45, %v1218_v45 }
 0x1a0   : > { %v732_v62 = vrot.slane %v727_v52, 4  ;;  %v1225_v63 = vrot.slane %v1211_v55, %v7567_v58  ;;  %v1800_v1 = vrot.slane %v1772_v57, %v7567_v58  ;;  %v1241_v4 = vrot.slane %v6191_v48, %v7567_v58  ;;  %v6193_v7 = vld.sshfl [vmem:[#allocation2 + $0x34] sm:$0x33 pattern:$0x75316420] }
 0x1a1   : > { %v1801_v2 = vcombine.low %v1779_v60, %v1786_v61  ;;  %v922_v8 = vld [vmem:[#allocation2 + $0x50] sm:$0x1]  ;;  %v731_v6 = vsel %vm7570_vm2, %v723_v39, %v730_v37  ;;  %v1249_v11 = vcombine.high %v6192_v36, %v6192_v36  ;;  %v6194_v12 = vld.sshfl [vmem:[#allocation2 + $0x38] sm:$0x1 pattern:$0x75316420]  ;;  %v1256_v16 = vrot.slane %v6192_v36, %v7567_v58 }
 0x1a2   : > { %v857_v9 = vsel %vm7560_vm1, %v732_v62, %v856_v51  ;;  %v1227_v10 = vcombine.high %v1225_v63, %v1225_v63  ;;  %v923_v13 = vsel %vm7591_vm4, 0, %v922_v8  ;;  %855 = vst.msk [vmem:[#allocation2 + $0x58] sm:$0xf] %vm797_vm11, %v731_v6  ;;  %v1802_v14 = vcombine.low %v1793_v44, %v1800_v1 }
 0x1a3   : > { %858 = vst [vmem:[#allocation2 + $0x5c] sm:$0x1] %v857_v9  ;;  %v1809_v15 = vrot.slane %v1801_v2, %v7567_v58  ;;  %924 = vst [vmem:[#allocation2 + $0x50] sm:$0x1] %v923_v13  ;;  %v1263_v59 = vrot.slane %v1249_v11, %v7567_v58  ;;  %v1818_v17 = vcombine.low %v1225_v63, %v1226_v3  ;;  %vm3978_vm11 = vcmask 1046532  }
 0x1a4   : > { %v1819_v18 = vcombine.low %v1227_v10, %v1241_v4  ;;  %v871_v19 = vsel %vm7560_vm1, %v766_v21, %v870_v5  ;;  %v6195_v22 = vld.sshfl [vmem:[#allocation2 + $0x3c] sm:$0x33 pattern:$0x75316420]  ;;  %v1816_v23 = vrot.slane %v1802_v14, %v7567_v58  ;;  %v1273_v24 = vcombine.high %v6193_v7, %v6193_v7  ;;  %vm8129_vm12 = vmor %vm3977_vm10, %vm3978_vm11 }
 0x1a5   : > { %872 = vst [vmem:[#allocation2 + $0x74] sm:$0x1] %v871_v19  ;;  %v1280_v25 = vrot.slane %v6193_v7, %v7567_v58  ;;  %v1303_v26 = vrot.slane %v6194_v12, %v7567_v58  ;;  %v894_v27 = vld [vmem:[#allocation2 + $0x54] sm:$0x1]  ;;  %v1820_v28 = vcombine.low %v1256_v16, %v1263_v59  ;;  %v6215_v29 = vcombine.high %v1256_v16, %v1263_v59 }
 0x1a6   : > { %v1828_v30 = vrot.slane %v1818_v17, %v7567_v58  ;;  %v1835_v31 = vrot.slane %v1819_v18, %v7567_v58  ;;  %v6196_v0 = vld.sshfl [vmem:[#allocation2 + $0x40] sm:$0x33 pattern:$0x75316420]  ;;  %v895_v21 = vsel %vm7560_vm1, 0, %v894_v27  ;;  %v1817_v32 = vcombine.low %v1809_v15, %v1816_v23 }
 0x1a7   : > { %v1287_v33 = vrot.slane %v1273_v24, %v7567_v58  ;;  %v1311_v34 = vcombine.high %v6195_v22, %v6195_v22  ;;  %896 = vst [vmem:[#allocation2 + $0x54] sm:$0x1] %v895_v21  ;;  %v1842_v35 = vrot.slane %v1820_v28, %v7567_v58  ;;  %v1849_v38 = vrot.slane %v6215_v29, %v7567_v58  ;;  %v6197_v51 = vld.sshfl [vmem:[#allocation2 + $0x44] sm:$0x1 pattern:$0x75316420] }
 0x1a8   : > { %v1850_v39 = vcombine.low %v1828_v30, %v1835_v31  ;;  %v1318_v41 = vrot.slane %v6195_v22, %v7567_v58  ;;  %6598 = vmatmul.mubr.msk.bf16.gmra.mrb[4].mxu0 %vm2176_vm5, %v1817_v32  ;;  %v1335_v53 = vcombine.high %v6196_v0, %v6196_v0  ;;  %v6198_v56 = vld.sshfl [vmem:[#allocation2 + $0x48] sm:$0x33 pattern:$0x75316420]  ;;  %v1342_v62 = vrot.slane %v6196_v0, %v7567_v58 }
 0x1a9   : > { %v1325_v42 = vrot.slane %v1311_v34, %v7567_v58  ;;  %v1867_v43 = vcombine.low %v1280_v25, %v1287_v33  ;;  %v6216_v45 = vcombine.high %v1280_v25, %v1287_v33  ;;  %v1851_v47 = vcombine.low %v1842_v35, %v1849_v38  ;;  %v6199_v3 = vld.sshfl [vmem:[#allocation2 + $0x4c] sm:$0x33 pattern:$0x75316420] }
 0x1aa   : > { %v925_v46 = vld [vmem:[#allocation2 + $0x5c] sm:$0x1]  ;;  %v1858_v48 = vrot.slane %v1850_v39, %v7567_v58  ;;  %v1326_v49 = vcombine.high %v1318_v41, %v1318_v41  ;;  %v1869_v50 = vcombine.low %v1303_v26, %v1318_v41  ;;  %v1349_v1 = vrot.slane %v1335_v53, %v7567_v58  ;;  %v6200_v6 = vld.sshfl [vmem:[#allocation2 + $0x50] sm:$0x1 pattern:$0x75316420] }
 0x1ab   : > { %v926_v52 = vsel %vm7591_vm4, 0, %v925_v46  ;;  %v1877_v54 = vrot.slane %v1867_v43, %v7567_v58  ;;  %v1884_v55 = vrot.slane %v6216_v45, %v7567_v58  ;;  %v1327_v57 = vcombine.high %v1325_v42, %v1325_v42  ;;  %v6202_v32 = vld.sshfl [vmem:[#allocation2 + $0x58] sm:$0x33 pattern:$0x75316420] }
 0x1ac   : > { %927 = vst [vmem:[#allocation2 + $0x5c] sm:$0x1] %v926_v52  ;;  %v1865_v60 = vrot.slane %v1851_v47, %v7567_v58  ;;  %v931_v61 = vld [vmem:[#allocation2 + $0x74] sm:$0x1]  ;;  %v1870_v36 = vcombine.low %v1325_v42, %v1326_v49  ;;  %v1891_v37 = vrot.slane %v1869_v50, %v7567_v58  ;;  %v1365_v2 = vrot.slane %v6197_v51, %v7567_v58 }
 0x1ad   : > { %v932_v44 = vsel %vm7591_vm4, 0, %v931_v61  ;;  %v1899_v63 = vcombine.low %v1877_v54, %v1884_v55  ;;  %v1350_v7 = vcombine.high %v1342_v62, %v1342_v62  ;;  %v1373_v8 = vcombine.high %v6198_v56, %v6198_v56  ;;  %v6204_v53 = vld.sshfl [vmem:[#allocation2 + $0x60] sm:$0x33 pattern:$0x75316420] }
 0x1ae   : > { %v1866_v4 = vcombine.low %v1858_v48, %v1865_v60  ;;  %933 = vst [vmem:[#allocation2 + $0x74] sm:$0x1] %v932_v44  ;;  %v1898_v5 = vrot.slane %v1870_v36, %v7567_v58  ;;  %v1351_v10 = vcombine.high %v1349_v1, %v1349_v1  ;;  %v1380_v11 = vrot.slane %v6198_v56, %v7567_v58  ;;  %v6201_v15 = vld.sshfl [vmem:[#allocation2 + $0x54] sm:$0x33 pattern:$0x75316420] }
 0x1af   : > { %v1907_v9 = vrot.slane %v1899_v63, %v7567_v58  ;;  %v1916_v40 = vcombine.low %v1327_v57, %v1342_v62  ;;  %v1387_v13 = vrot.slane %v1373_v8, %v7567_v58  ;;  %v1917_v14 = vcombine.low %v1349_v1, %v1350_v7  ;;  %v6205_v60 = vld.sshfl [vmem:[#allocation2 + $0x64] sm:$0x33 pattern:$0x75316420] }
 0x1b0   : > { %6601 = vmatprep.mubr.msk.bf16.mxu0 %vm2176_vm5, %v1866_v4  ;;  %v1900_v12 = vcombine.low %v1891_v37, %v1898_v5  ;;  %v1397_v16 = vcombine.high %v6199_v3, %v6199_v3  ;;  %v1918_v59 = vcombine.low %v1351_v10, %v1365_v2  ;;  %v1404_v18 = vrot.slane %v6199_v3, %v7567_v58  ;;  %v6206_v63 = vld.sshfl [vmem:[#allocation2 + $0x68] sm:$0x1 pattern:$0x75316420] }
 0x1b1   : > { %v1926_v17 = vrot.slane %v1916_v40, %v7567_v58  ;;  %v1427_v19 = vrot.slane %v6200_v6, %v7567_v58  ;;  %v1919_v23 = vcombine.low %v1380_v11, %v1387_v13  ;;  %v1933_v24 = vrot.slane %v1917_v14, %v7567_v58 }
 0x1b2   : > { %v1914_v22 = vrot.slane %v1900_v12, %v7567_v58  ;;  %v1411_v25 = vrot.slane %v1397_v16, %v7567_v58  ;;  %v1940_v26 = vrot.slane %v1918_v59, %v7567_v58  ;;  %v1442_v27 = vrot.slane %v6201_v15, %v7567_v58 }
 0x1b3   : > { %v6217_v28 = vcombine.high %v1380_v11, %v1387_v13  ;;  %v1435_v29 = vcombine.high %v6201_v15, %v6201_v15  ;;  %v1947_v31 = vrot.slane %v1919_v23, %v7567_v58  ;;  %v1948_v0 = vcombine.low %v1926_v17, %v1933_v24  ;;  %v6203_v38 = vld.sshfl [vmem:[#allocation2 + $0x5c] sm:$0x1 pattern:$0x75316420] }
 0x1b4   : > { %v1915_v30 = vcombine.low %v1907_v9, %v1914_v22  ;;  %v1966_v21 = vcombine.low %v1404_v18, %v1411_v25  ;;  %v6218_v33 = vcombine.high %v1404_v18, %v1411_v25  ;;  %v1968_v34 = vcombine.low %v1427_v19, %v1442_v27  ;;  %v6207_v9 = vld.sshfl [vmem:[#allocation2 + $0x6c] sm:$0x33 pattern:$0x75316420] }
 0x1b5   : > { %v1975_v35 = vrot.slane %v6217_v28, %v7567_v58  ;;  %v1449_v39 = vrot.slane %v1435_v29, %v7567_v58  ;;  %v1949_v41 = vcombine.low %v1940_v26, %v1947_v31  ;;  %v1956_v42 = vrot.slane %v1948_v0, %v7567_v58  ;;  %v6208_v18 = vld.sshfl [vmem:[#allocation2 + $0x70] sm:$0x33 pattern:$0x75316420] }
 0x1b6   : > { %6602 = vmatmul.mubr.msk.bf16.gmra.mrb[8].mxu0 %vm2176_vm5, %v1915_v30  ;;  %v1982_v43 = vrot.slane %v1966_v21, %v7567_v58  ;;  %v1450_v45 = vcombine.high %v1442_v27, %v1442_v27  ;;  %v1989_v46 = vrot.slane %v6218_v33, %v7567_v58  ;;  %v1996_v47 = vrot.slane %v1968_v34, %v7567_v58 }
 0x1b7   : > { %v1451_v48 = vcombine.high %v1449_v39, %v1449_v39  ;;  %v1459_v49 = vcombine.high %v6202_v32, %v6202_v32  ;;  %v1963_v50 = vrot.slane %v1949_v41, %v7567_v58  ;;  %v1466_v52 = vrot.slane %v6202_v32, %v7567_v58 }
 0x1b8   : > { %v1997_v51 = vcombine.low %v1975_v35, %v1982_v43  ;;  %v1489_v54 = vrot.slane %v6203_v38, %v7567_v58  ;;  %v1998_v55 = vcombine.low %v1989_v46, %v1996_v47  ;;  %v2014_v57 = vcombine.low %v1449_v39, %v1450_v45  ;;  %v6209_v45 = vld.sshfl [vmem:[#allocation2 + $0x74] sm:$0x1 pattern:$0x75316420] }
 0x1b9   : > { %v1473_v56 = vrot.slane %v1459_v49, %v7567_v58  ;;  %v1497_v61 = vcombine.high %v6204_v53, %v6204_v53  ;;  %v1964_v36 = vcombine.low %v1956_v42, %v1963_v50  ;;  %v1474_v62 = vcombine.high %v1466_v52, %v1466_v52 }
 0x1ba   : > { %v2005_v37 = vrot.slane %v1997_v51, %v7567_v58  ;;  %v2015_v44 = vcombine.low %v1451_v48, %v1466_v52  ;;  %v2012_v1 = vrot.slane %v1998_v55, %v7567_v58  ;;  %v2024_v3 = vrot.slane %v2014_v57, %v7567_v58 }
 0x1bb   : > { %v1475_v2 = vcombine.high %v1473_v56, %v1473_v56  ;;  %v1504_v4 = vrot.slane %v6204_v53, %v7567_v58  ;;  %6605 = vmatprep.mubr.msk.bf16.mxu0 %vm2176_vm5, %v1964_v36  ;;  %v2016_v5 = vcombine.low %v1473_v56, %v1474_v62  ;;  %v1511_v8 = vrot.slane %v1497_v61, %v7567_v58 }
 0x1bc   : > { %v2031_v7 = vrot.slane %v2015_v44, %v7567_v58  ;;  %v1521_v6 = vcombine.high %v6205_v60, %v6205_v60  ;;  %v2013_v10 = vcombine.low %v2005_v37, %v2012_v1  ;;  %v1528_v40 = vrot.slane %v6205_v60, %v7567_v58 }
 0x1bd   : > { %v2017_v11 = vcombine.low %v1475_v2, %v1489_v54  ;;  %v1551_v12 = vrot.slane %v6206_v63, %v7567_v58  ;;  %v2038_v13 = vrot.slane %v2016_v5, %v7567_v58  ;;  %v2063_v16 = vcombine.low %v1504_v4, %v1511_v8  ;;  %v7840_v2 = vld [vmem:[%s9060_s2] ss:$0 sm:$0xff] }
 0x1be   : > { %v2046_v14 = vcombine.low %v2024_v3, %v2031_v7  ;;  %v1535_v15 = vrot.slane %v1521_v6, %v7567_v58  ;;  %6606 = vmatmul.mubr.msk.bf16.gmra.mrb[12].mxu0 %vm2176_vm5, %v2013_v10  ;;  %v6219_v17 = vcombine.high %v1504_v4, %v1511_v8  ;;  %v1559_v19 = vcombine.high %v6207_v9, %v6207_v9 }
 0x1bf   : > { %v2045_v59 = vrot.slane %v2017_v11, %v7567_v58  ;;  %v1566_v22 = vrot.slane %v6207_v9, %v7567_v58  ;;  %v2073_v26 = vrot.slane %v2063_v16, %v7567_v58  ;;  %v1583_v21 = vcombine.high %v6208_v18, %v6208_v18 }
 0x1c0   : > { %v2054_v23 = vrot.slane %v2046_v14, %v7567_v58  ;;  %v2065_v24 = vcombine.low %v1528_v40, %v1535_v15  ;;  %v6220_v25 = vcombine.high %v1528_v40, %v1535_v15  ;;  %v2080_v28 = vrot.slane %v6219_v17, %v7567_v58 }
 0x1c1   : > { %v2047_v27 = vcombine.low %v2038_v13, %v2045_v59  ;;  %v1573_v29 = vrot.slane %v1559_v19, %v7567_v58  ;;  %v1574_v30 = vcombine.high %v1566_v22, %v1566_v22  ;;  %v1590_v32 = vrot.slane %v6208_v18, %v7567_v58 }
 0x1c2   : > { %v2087_v31 = vrot.slane %v2065_v24, %v7567_v58  ;;  %v2094_v0 = vrot.slane %v6220_v25, %v7567_v58  ;;  %v2095_v34 = vcombine.low %v2073_v26, %v2080_v28  ;;  %v2112_v38 = vcombine.low %v1551_v12, %v1566_v22 }
 0x1c3   : > { %v2061_v33 = vrot.slane %v2047_v27, %v7567_v58  ;;  %v1575_v35 = vcombine.high %v1573_v29, %v1573_v29  ;;  %v1597_v41 = vrot.slane %v1583_v21, %v7567_v58  ;;  %v1598_v42 = vcombine.high %v1590_v32, %v1590_v32 }
 0x1c4   : > { %v2096_v39 = vcombine.low %v2087_v31, %v2094_v0  ;;  %v2113_v43 = vcombine.low %v1573_v29, %v1574_v30  ;;  %v2103_v46 = vrot.slane %v2095_v34, %v7567_v58  ;;  %v2122_v48 = vrot.slane %v2112_v38, %v7567_v58 }
 0x1c5   : > { %v2062_v53 = vcombine.low %v2054_v23, %v2061_v33  ;;  %v2114_v47 = vcombine.low %v1575_v35, %v1590_v32  ;;  %v2115_v50 = vcombine.low %v1597_v41, %v1598_v42  ;;  %v1599_v52 = vcombine.high %v1597_v41, %v1597_v41 }
 0x1c6   : > { %v2110_v49 = vrot.slane %v2096_v39, %v7567_v58  ;;  %v2129_v51 = vrot.slane %v2113_v43, %v7567_v58  ;;  %v1613_v55 = vrot.slane %v6209_v45, %v7567_v58 }
 0x1c7   : > { %6609 = vmatprep.mubr.msk.bf16.mxu0 %vm2176_vm5, %v2062_v53  ;;  %v2136_v54 = vrot.slane %v2114_v47, %v7567_v58  ;;  %v2143_v57 = vrot.slane %v2115_v50, %v7567_v58 }
 0x1c8   : > { %v2111_v56 = vcombine.low %v2103_v46, %v2110_v49  ;;  %v2144_v60 = vcombine.low %v2122_v48, %v2129_v51  ;;  %v2161_v61 = vcombine.low %v1599_v52, %v1613_v55 }
 0x1c9   : > { %v2145_v36 = vcombine.low %v2136_v54, %v2143_v57 }
 0x1ca   : > { %6610 = vmatmul.mubr.msk.bf16.gmra.mrb[16].mxu0 %vm2176_vm5, %v2111_v56  ;;  %v2152_v37 = vrot.slane %v2144_v60, %v7567_v58  ;;  %v2168_v62 = vrot.slane %v2161_v61, %v7567_v58 }
 0x1cb   : > { %v2159_v44 = vrot.slane %v2145_v36, %v7567_v58 }
 0x1cc   : > { %v2175_v1 = vrot.slane %v2168_v62, %v7567_v58 }
 0x1cd   : > { %v2160_v63 = vcombine.low %v2152_v37, %v2159_v44 }
 0x1cf   : > { %6613 = vmatprep.mubr.msk.bf16.mxu0 %vm2176_vm5, %v2160_v63 }
 0x1d2   : > { %6614 = vmatmul.mubr.msk.bf16.gmra.mrb[20].mxu0 %vm2176_vm5, %v2175_v1 }
 0x264   : > { %v6595_v3 = vpop.f32.mrb[0].mxu0 }
 0x265   : > { %v2260_v4 = vadd.f32 %v6595_v3, %v7840_v2  ;;  %v2251_v5 = vpop.f32.mrb[1].mxu0 }
 0x266   : > { %v6596_v7 = vpop.f32.mrb[2].mxu0  ;;  %v2252_v17 = vadd.f32 %v7840_v2, %v2251_v5 }
 0x267   : > { %v2402_v8 = vcombine.high %v2260_v4, %v2260_v4  ;;  %v7844_v6 = vrot.slane %v2260_v4, %v7506_v20  ;;  %v2263_v58 = vadd.f32 %v6596_v7, %v7840_v2  ;;  %v7847_v9 = vpop.f32.mrb[3].mxu0 }
 0x268   : > { %v2368_v19 = vcombine.high %v2252_v17, %v2252_v17  ;;  %v2375_v23 = vrot.slane %v2252_v17, %v7506_v20 }
 0x269   : > { %v2416_v10 = vrot.slane %v2402_v8, %v7506_v20  ;;  %v2417_v11 = vcombine.high %v7844_v6, %v7844_v6  ;;  %v2426_v13 = vrot.slane %v2263_v58, %v7506_v20  ;;  %v2419_v22 = vcombine.high %v2263_v58, %v2263_v58 }
 0x26a   : > { %v2382_v24 = vrot.slane %v2368_v19, %v7506_v20  ;;  %v2383_v30 = vcombine.high %v2375_v23, %v2375_v23 }
 0x26b   : > { %v2791_v40 = vcombine.low %v2417_v11, %v2416_v10  ;;  %v2418_v12 = vcombine.high %v2416_v10, %v2416_v10  ;;  %v2433_v25 = vrot.slane %v2419_v22, %v7506_v20  ;;  %v2434_v27 = vcombine.high %v2426_v13, %v2426_v13 }
 0x26c   : > { %v2384_v21 = vcombine.high %v2382_v24, %v2382_v24 }
 0x26d   : > { %v2792_v14 = vcombine.low %v2418_v12, %v2426_v13  ;;  %v2799_v15 = vrot.slane %v2791_v40, %v7506_v20  ;;  %v2435_v38 = vcombine.high %v2433_v25, %v2433_v25  ;;  %v2808_v43 = vcombine.low %v2434_v27, %v2433_v25 }
 0x26e   : > { %v7880_v12 = vcombine.low %v2375_v23, %v2383_v30  ;;  %v7885_v22 = vcombine.low %v2382_v24, %v2384_v21 }
 0x26f   : > { %v2806_v16 = vrot.slane %v2792_v14, %v7506_v20  ;;  %v2816_v44 = vrot.slane %v2808_v43, %v7506_v20 }
 0x271   : > { %v2807_v59 = vcombine.low %v2799_v15, %v2806_v16 }
 0x273   : > { %v6470_v18 = vpack.c.bf16 %v2807_v59, %v2807_v59 }
 0x275   : > { %3296 = vrot.lane.b32.xlu0 %v6470_v18, %s7294_s10 }
 0x27b   : > { %v6599_v26 = vpop.f32.mrb[4].mxu0 }
 0x27c   : > { %v2276_v28 = vadd.f32 %v6599_v26, %v7840_v2  ;;  %v2267_v29 = vpop.f32.mrb[5].mxu0 }
 0x27d   : > { %v2268_v31 = vadd.f32 %v7840_v2, %v2267_v29  ;;  %v6600_v0 = vpop.f32.mrb[6].mxu0 }
 0x27e   : > { %v2470_v32 = vcombine.high %v2276_v28, %v2276_v28  ;;  %v2477_v33 = vrot.slane %v2276_v28, %v7506_v20  ;;  %v2279_v34 = vadd.f32 %v6600_v0, %v7840_v2  ;;  %v2270_v35 = vpop.f32.mrb[7].mxu0 }
 0x27f   : > { %v2436_v39 = vcombine.high %v2268_v31, %v2268_v31  ;;  %v2443_v41 = vrot.slane %v2268_v31, %v7506_v20  ;;  %v2271_v42 = vadd.f32 %v7840_v2, %v2270_v35 }
 0x280   : > { %v2484_v45 = vrot.slane %v2470_v32, %v7506_v20  ;;  %v2487_v53 = vcombine.high %v2279_v34, %v2279_v34  ;;  %v2494_v46 = vrot.slane %v2279_v34, %v7506_v20  ;;  %v2485_v51 = vcombine.high %v2477_v33, %v2477_v33 }
 0x281   : > { %v2450_v47 = vrot.slane %v2436_v39, %v7506_v20  ;;  %v2451_v48 = vcombine.high %v2443_v41, %v2443_v41  ;;  %v2809_v49 = vcombine.low %v2435_v38, %v2443_v41  ;;  %v2453_v50 = vcombine.high %v2271_v42, %v2271_v42 }
 0x282   : > { %v2486_v52 = vcombine.high %v2484_v45, %v2484_v45  ;;  %v2501_v54 = vrot.slane %v2487_v53, %v7506_v20  ;;  %v2502_v55 = vcombine.high %v2494_v46, %v2494_v46  ;;  %v2460_v57 = vrot.slane %v2271_v42, %v7506_v20 }
 0x283   : > { %v2452_v56 = vcombine.high %v2450_v47, %v2450_v47  ;;  %v2467_v60 = vrot.slane %v2453_v50, %v7506_v20  ;;  %v2872_v61 = vrot.slane %v2484_v45, %v7506_v20  ;;  %v2831_v62 = vrot.slane %v2451_v48, %v7506_v20 }
 0x284   : > { %v2873_v36 = vcombine.low %v2486_v52, %v2494_v46  ;;  %v2874_v37 = vcombine.low %v2502_v55, %v2501_v54  ;;  %v2468_v1 = vcombine.high %v2460_v57, %v2460_v57  ;;  %v2850_v5 = vcombine.low %v2477_v33, %v2485_v51 }
 0x285   : > { %v2832_v63 = vcombine.low %v2450_v47, %v2452_v56  ;;  %v2469_v3 = vcombine.high %v2467_v60, %v2467_v60  ;;  %v6475_v4 = vpack.c.bf16 %v2872_v61, %v2872_v61  ;;  %v2823_v7 = vrot.slane %v2809_v49, %v7506_v20 }
 0x286   : > { %v2881_v8 = vrot.slane %v2873_v36, %v7506_v20  ;;  %v2888_v58 = vrot.slane %v2874_v37, %v7506_v20  ;;  %v2833_v10 = vcombine.low %v2460_v57, %v2468_v1  ;;  %v6472_v59 = vpack.c.bf16 %v2831_v62, %v2831_v62 }
 0x287   : > { %v2849_v11 = vcombine.low %v2467_v60, %v2469_v3  ;;  %3306 = vrot.lane.b32.xlu1 %v6475_v4, %s7294_s10  ;;  %v2840_v40 = vrot.slane %v2832_v63, %v7506_v20  ;;  %v2824_v14 = vcombine.low %v2816_v44, %v2823_v7  ;;  %v2503_v26 = vcombine.high %v2501_v54, %v2501_v54 }
 0x288   : > { %v2889_v15 = vcombine.low %v2881_v8, %v2888_v58  ;;  %v2847_v18 = vrot.slane %v2833_v10, %v7506_v20  ;;  %v2864_v23 = vrot.slane %v2850_v5, %v7506_v20  ;;  %v2758_v46 = vrot.slane %v7880_v12, %v7506_v20 }
 0x289   : > { %v6603_v13 = vpop.f32.mrb[8].mxu0  ;;  %v2857_v19 = vrot.slane %v2849_v11, %v7506_v20  ;;  %v6471_v31 = vpack.c.bf16 %v2824_v14, %v2824_v14  ;;  %v2765_v50 = vrot.slane %v7885_v22, %v7506_v20 }
 0x28a   : > { %v2292_v16 = vadd.f32 %v6603_v13, %v7840_v2  ;;  %v2283_v17 = vpop.f32.mrb[9].mxu0  ;;  %v2848_v0 = vcombine.low %v2840_v40, %v2847_v18  ;;  %v6476_v54 = vpack.c.bf16 %v2889_v15, %v2889_v15 }
 0x28b   : > { %v2284_v25 = vadd.f32 %v7840_v2, %v2283_v17  ;;  %v6604_v27 = vpop.f32.mrb[10].mxu0  ;;  %3300 = vrot.lane.b32.xlu1 %v6472_v59, %s7294_s10  ;;  %v7893_v21 = vcombine.low %v2857_v19, %v2864_v23 }
 0x28c   : > { %v2538_v28 = vcombine.high %v2292_v16, %v2292_v16  ;;  %v2295_v29 = vadd.f32 %v6604_v27, %v7840_v2  ;;  %v2286_v30 = vpop.f32.mrb[11].mxu0  ;;  %v2545_v34 = vrot.slane %v2292_v16, %v7506_v20  ;;  %v6473_v61 = vpack.c.bf16 %v2848_v0, %v2848_v0 }
 0x28d   : > { %v2504_v32 = vcombine.high %v2284_v25, %v2284_v25  ;;  %v2511_v33 = vrot.slane %v2284_v25, %v7506_v20  ;;  %v2287_v24 = vadd.f32 %v7840_v2, %v2286_v30  ;;  %v6474_v14 = vpack.c.bf16 %v7893_v21, %v7893_v21 }
 0x28e   : > { %v2552_v35 = vrot.slane %v2538_v28, %v7506_v20  ;;  %v2555_v38 = vcombine.high %v2295_v29, %v2295_v29  ;;  %v7898_v39 = vrot.slane %v2295_v29, %v7506_v20  ;;  %v2553_v51 = vcombine.high %v2545_v34, %v2545_v34 }
 0x28f   : > { %v2518_v41 = vrot.slane %v2504_v32, %v7506_v20  ;;  %v2519_v42 = vcombine.high %v2511_v33, %v2511_v33  ;;  %v2890_v43 = vcombine.low %v2503_v26, %v2511_v33  ;;  %v2521_v45 = vcombine.high %v2287_v24, %v2287_v24  ;;  %3298 = vrot.lane.b32.xlu1 %v6471_v31, %s7294_s10 }
 0x290   : > { %v2569_v53 = vrot.slane %v2555_v38, %v7506_v20  ;;  %v2528_v48 = vrot.slane %v2287_v24, %v7506_v20  ;;  %v2554_v52 = vcombine.high %v2552_v35, %v2552_v35  ;;  %v2570_v57 = vcombine.high %v7898_v39, %v7898_v39 }
 0x291   : > { %v2891_v47 = vcombine.low %v2519_v42, %v2518_v41  ;;  %v2535_v49 = vrot.slane %v2521_v45, %v7506_v20  ;;  %v2520_v55 = vcombine.high %v2518_v41, %v2518_v41  ;;  %v6607_v56 = vpop.f32.mrb[12].mxu0  ;;  %v2898_v58 = vrot.slane %v2890_v43, %v7506_v20 }
 0x292   : > { %v2536_v60 = vcombine.high %v2528_v48, %v2528_v48  ;;  %v2308_v36 = vadd.f32 %v6607_v56, %v7840_v2  ;;  %v2299_v37 = vpop.f32.mrb[13].mxu0  ;;  %v2571_v63 = vcombine.high %v2569_v53, %v2569_v53  ;;  %v7937_v30 = vcombine.low %v2545_v34, %v2553_v51 }
 0x293   : > { %3308 = vrot.lane.b32.xlu1 %v6476_v54, %s7294_s10  ;;  %v2913_v62 = vrot.slane %v2520_v55, %v7506_v20  ;;  %v2300_v44 = vadd.f32 %v7840_v2, %v2299_v37  ;;  %v6608_v1 = vpop.f32.mrb[14].mxu0  ;;  %v2905_v3 = vrot.slane %v2891_v47, %v7506_v20  ;;  %v2537_v4 = vcombine.high %v2535_v49, %v2535_v49 }
 0x294   : > { %v2606_v5 = vcombine.high %v2308_v36, %v2308_v36  ;;  %v2613_v7 = vrot.slane %v2308_v36, %v7506_v20  ;;  %v2302_v8 = vpop.f32.mrb[15].mxu0  ;;  %v2311_v12 = vadd.f32 %v6608_v1, %v7840_v2  ;;  %v2914_v13 = vcombine.low %v2528_v48, %v2536_v60 }
 0x295   : > { %v6478_v10 = vpack.c.bf16 %v2913_v62, %v2913_v62  ;;  %v2572_v11 = vcombine.high %v2300_v44, %v2300_v44  ;;  %v2579_v40 = vrot.slane %v2300_v44, %v7506_v20  ;;  %v2303_v15 = vadd.f32 %v7840_v2, %v2302_v8 }
 0x296   : > { %v2906_v16 = vcombine.low %v2898_v58, %v2905_v3  ;;  %v7926_v59 = vrot.slane %v2606_v5, %v7506_v20  ;;  %v2915_v19 = vcombine.low %v2535_v49, %v2537_v4  ;;  %v2621_v22 = vcombine.high %v2613_v7, %v2613_v7 }
 0x297   : > { %3302 = vrot.lane.b32.xlu1 %v6473_v61, %s7294_s10  ;;  %3312 = vrot.lane.b32.xlu0 %v6478_v10, %s7294_s10  ;;  %v2586_v17 = vrot.slane %v2572_v11, %v7506_v20  ;;  %v7929_v18 = vcombine.low %v2571_v63, %v2579_v40  ;;  %v2587_v25 = vcombine.high %v2579_v40, %v2579_v40 }
 0x298   : > { %v2623_v26 = vcombine.high %v2311_v12, %v2311_v12  ;;  %v7932_v27 = vrot.slane %v2311_v12, %v7506_v20  ;;  %v2589_v28 = vcombine.high %v2303_v15, %v2303_v15  ;;  %v7935_v29 = vrot.slane %v2303_v15, %v7506_v20 }
 0x299   : > { %v2588_v23 = vcombine.high %v2586_v17, %v2586_v17  ;;  %v7939_v31 = vcombine.low %v2552_v35, %v2554_v52  ;;  %v7944_v32 = vcombine.low %v2758_v46, %v2765_v50  ;;  %v2955_v33 = vcombine.low %v2570_v57, %v2569_v53 }
 0x29a   : > { %v7942_v0 = vrot.slane %v2623_v26, %v7506_v20  ;;  %v2622_v24 = vcombine.high %v7926_v59, %v7926_v59  ;;  %v2603_v21 = vrot.slane %v2589_v28, %v7506_v20  ;;  %v2997_v34 = vcombine.low %v2613_v7, %v2621_v22 }
 0x29b   : > { %3304 = vrot.lane.b32.xlu1 %v6474_v14, %s7294_s10  ;;  %v7951_v38 = vcombine.low %v2588_v23, %v7935_v29  ;;  %v7953_v41 = vcombine.low %v2587_v25, %v2586_v17  ;;  %v2922_v42 = vrot.slane %v2914_v13, %v7506_v20  ;;  %v2929_v43 = vrot.slane %v2915_v19, %v7506_v20 }
 0x29c   : > { %v2638_v45 = vcombine.high %v7932_v27, %v7932_v27  ;;  %v2605_v53 = vcombine.high %v2603_v21, %v2603_v21  ;;  %v6477_v46 = vpack.c.bf16 %v2906_v16, %v2906_v16  ;;  %v2604_v49 = vcombine.high %v7935_v29, %v7935_v29 }
 0x29d   : > { %v6611_v35 = vpop.f32.mrb[16].mxu0  ;;  %v2639_v51 = vcombine.high %v7942_v0, %v7942_v0  ;;  %v2930_v54 = vcombine.low %v2922_v42, %v2929_v43  ;;  %v2970_v61 = vrot.slane %v7929_v18, %v7506_v20  ;;  %v2963_v12 = vrot.slane %v2955_v33, %v7506_v20 }
 0x29e   : > { %v2324_v47 = vadd.f32 %v6611_v35, %v7840_v2  ;;  %v2315_v48 = vpop.f32.mrb[17].mxu0  ;;  %v2996_v36 = vcombine.low %v2603_v21, %v2605_v53  ;;  %v3011_v25 = vrot.slane %v2997_v34, %v7506_v20  ;;  %v2995_v42 = vrot.slane %v2604_v49, %v7506_v20 }
 0x29f   : > { %v2316_v50 = vadd.f32 %v7840_v2, %v2315_v48  ;;  %v6612_v52 = vpop.f32.mrb[18].mxu0  ;;  %3310 = vrot.lane.b32.xlu1 %v6477_v46, %s7294_s10  ;;  %v6479_v4 = vpack.c.bf16 %v2930_v54, %v2930_v54  ;;  %v2971_v22 = vcombine.low %v2963_v12, %v2970_v61 }
 0x2a0   : > { %v2674_v55 = vcombine.high %v2324_v47, %v2324_v47  ;;  %v2681_v56 = vrot.slane %v2324_v47, %v7506_v20  ;;  %v2327_v57 = vadd.f32 %v6612_v52, %v7840_v2  ;;  %v2318_v60 = vpop.f32.mrb[19].mxu0  ;;  %v3004_v21 = vrot.slane %v2996_v36, %v7506_v20 }
 0x2a1   : > { %v2640_v37 = vcombine.high %v2316_v50, %v2316_v50  ;;  %v2647_v62 = vrot.slane %v2316_v50, %v7506_v20  ;;  %v2319_v44 = vadd.f32 %v7840_v2, %v2318_v60  ;;  %v6482_v33 = vpack.c.bf16 %v2971_v22, %v2971_v22 }
 0x2a2   : > { %v2688_v63 = vrot.slane %v2674_v55, %v7506_v20  ;;  %v2689_v1 = vcombine.high %v2681_v56, %v2681_v56  ;;  %v2691_v3 = vcombine.high %v2327_v57, %v2327_v57  ;;  %v2698_v11 = vrot.slane %v2327_v57, %v7506_v20 }
 0x2a3   : > { %v2654_v5 = vrot.slane %v2640_v37, %v7506_v20  ;;  %v2655_v7 = vcombine.high %v2647_v62, %v2647_v62  ;;  %v3037_v8 = vcombine.low %v2639_v51, %v2647_v62  ;;  %v2657_v58 = vcombine.high %v2319_v44, %v2319_v44  ;;  %3314 = vrot.lane.b32.xlu1 %v6479_v4, %s7294_s10 }
 0x2a4   : > { %v2690_v10 = vcombine.high %v2688_v63, %v2688_v63  ;;  %v2705_v40 = vrot.slane %v2691_v3, %v7506_v20  ;;  %v2664_v15 = vrot.slane %v2319_v44, %v7506_v20  ;;  %v3078_v18 = vcombine.low %v2681_v56, %v2689_v1  ;;  %3320 = vrot.lane.b32.xlu0 %v6482_v33, %s7294_s10 }
 0x2a5   : > { %v3038_v13 = vcombine.low %v2655_v7, %v2654_v5  ;;  %v2656_v14 = vcombine.high %v2654_v5, %v2654_v5  ;;  %v2671_v16 = vrot.slane %v2657_v58, %v7506_v20  ;;  %v6615_v17 = vpop.f32.mrb[20].mxu0  ;;  %v3045_v43 = vrot.slane %v3037_v8, %v7506_v20 }
 0x2a6   : > { %v3079_v19 = vcombine.low %v2688_v63, %v2690_v10  ;;  %v2331_v26 = vpop.f32.mrb[21].mxu0  ;;  %v2707_v23 = vcombine.high %v2705_v40, %v2705_v40  ;;  %v2672_v28 = vcombine.high %v2664_v15, %v2664_v15  ;;  %v2706_v47 = vcombine.high %v2698_v11, %v2698_v11 }
 0x2a7   : > { %v3054_v29 = vcombine.low %v2656_v14, %v2664_v15  ;;  %v6616_v35 = vpop.f32.mrb[22].mxu0  ;;  %v3052_v53 = vrot.slane %v3038_v13, %v7506_v20  ;;  %v3012_v50 = vcombine.low %v3004_v21, %v3011_v25  ;;  %v2673_v51 = vcombine.high %v2671_v16, %v2671_v16 }
 0x2a8   : > { %v2334_v46 = vpop.f32.mrb[23].mxu0  ;;  %v3055_v48 = vcombine.low %v2672_v28, %v2671_v16  ;;  %v3086_v52 = vrot.slane %v3078_v18, %v7506_v20  ;;  %v3093_v54 = vrot.slane %v3079_v19, %v7506_v20  ;;  %v3096_v56 = vcombine.low %v2705_v40, %v2707_v23  ;;  %v7027_v18 = vld [vmem:[%s9061_s3 + $0x18] sm:$0xff]  }
 0x2a9   : > { %v3053_v34 = vcombine.low %v3045_v43, %v3052_v53  ;;  %v3062_v55 = vrot.slane %v3054_v29, %v7506_v20  ;;  %v6485_v49 = vpack.c.bf16 %v3012_v50, %v3012_v50  ;;  %v2332_v60 = vadd.f32 %v7840_v2, %v2331_v26  ;;  %6779 = vmatprep.subr.bf16.mxu1 %v7027_v18 }
 0x2aa   : > { %v3069_v57 = vrot.slane %v3055_v48, %v7506_v20  ;;  %v3094_v36 = vcombine.low %v3086_v52, %v3093_v54  ;;  %v2340_v37 = vadd.f32 %v6615_v17, %v7840_v2  ;;  %v2335_v62 = vadd.f32 %v7840_v2, %v2334_v46  ;;  %v7026_v17 = vld [vmem:[%s9061_s3 + $0x8] sm:$0xff]   ;;  %6780 = vmatpush3.bf16.msra.mxu1 %v7027_v18 }
 0x2ab   : > { %v6488_v61 = vpack.c.bf16 %v3053_v34, %v3053_v34  ;;  %v3077_v44 = vrot.slane %v2673_v51, %v7506_v20  ;;  %v2708_v1 = vcombine.high %v2332_v60, %v2332_v60  ;;  %v7995_v3 = vrot.slane %v2332_v60, %v7506_v20  ;;  %3326 = vrot.lane.b32.xlu0 %v6485_v49, %s7294_s10 }
 0x2ac   : > { %v3070_v63 = vcombine.low %v3062_v55, %v3069_v57  ;;  %v3013_v4 = vcombine.low %v7926_v59, %v2622_v24  ;;  %v3095_v5 = vcombine.low %v2698_v11, %v2706_v47  ;;  %v2725_v7 = vcombine.high %v2335_v62, %v2335_v62  ;;  %6617 = vmatprep.subr.bf16.mxu0 %v7026_v17 }
 0x2ad   : > { %3332 = vrot.lane.b32.xlu1 %v6488_v61, %s7294_s10  ;;  %v6484_v8 = vpack.c.bf16 %v2995_v42, %v2995_v42  ;;  %v2722_v58 = vrot.slane %v2708_v1, %v7506_v20  ;;  %v2723_v10 = vcombine.high %v7995_v3, %v7995_v3  ;;  %v2732_v40 = vrot.slane %v2335_v62, %v7506_v20 }
 0x2ae   : > { %v6491_v12 = vpack.c.bf16 %v3094_v36, %v3094_v36  ;;  %v8008_v13 = vrot.slane %v2340_v37, %v7506_v20  ;;  %v2739_v59 = vrot.slane %v2725_v7, %v7506_v20  ;;  %v3110_v24 = vrot.slane %v3096_v56, %v7506_v20  ;;  %6618 = vmatpush3.bf16.msra.mxu0 %v7026_v17 }
 0x2af   : > { %v3014_v11 = vcombine.low %v7932_v27, %v2638_v45  ;;  %v6490_v14 = vpack.c.bf16 %v3077_v44, %v3077_v44  ;;  %v2724_v15 = vcombine.high %v2722_v58, %v2722_v58  ;;  %v2740_v16 = vcombine.high %v2732_v40, %v2732_v40  ;;  %3324 = vrot.lane.b32.xlu0 %v6484_v8, %s7294_s10 }
 0x2b0   : > { %v6489_v19 = vpack.c.bf16 %v3070_v63, %v3070_v63  ;;  %v2741_v22 = vcombine.high %v2739_v59, %v2739_v59  ;;  %v3103_v25 = vrot.slane %v3095_v5, %v7506_v20  ;;  %v3119_v27 = vcombine.low %v2723_v10, %v2722_v58 }
 0x2b1   : > { %3338 = vrot.lane.b32.xlu1 %v6491_v12, %s7294_s10  ;;  %v3120_v45 = vcombine.low %v2724_v15, %v2732_v40  ;;  %v3136_v26 = vcombine.low %v2740_v16, %v2739_v59  ;;  %v2946_v23 = vrot.slane %v7939_v31, %v7506_v20  ;;  %v2980_v29 = vrot.slane %v7953_v41, %v7506_v20  ;;  %v8083_v59 = vld [vmem:[%s9061_s3] sm:$0xff]  }
 0x2b2   : > { %v3111_v28 = vcombine.low %v3103_v25, %v3110_v24  ;;  %v2987_v21 = vrot.slane %v7951_v38, %v7506_v20  ;;  %v3137_v35 = vcombine.low %v2741_v22, %v8008_v13  ;;  %v2255_v33 = vadd.f32 %v7840_v2, %v7847_v9  ;;  %v8045_v2 = vld [vmem:[%s9061_s3 + $0x20] sm:$0xff]   ;;  %6635 = vmatprep.subr.bf16.mxu0 %v8083_v59 }
 0x2b3   : > { %v3144_v42 = vrot.slane %v3136_v26, %v7506_v20  ;;  %v3021_v43 = vrot.slane %v3013_v4, %v7506_v20  ;;  %v3028_v31 = vrot.slane %v3014_v11, %v7506_v20  ;;  %3336 = vrot.lane.b32.xlu0 %v6490_v14, %s7294_s10  ;;  %v2939_v38 = vrot.slane %v7937_v30, %v7506_v20 }
 0x2b4   : > { %v2988_v41 = vcombine.low %v2980_v29, %v2987_v21  ;;  %v3151_v53 = vrot.slane %v3137_v35, %v7506_v20  ;;  %v2790_v9 = vrot.slane %v7844_v6, %v7506_v20  ;;  %v3127_v47 = vrot.slane %v3119_v27, %v7506_v20  ;;  %6689 = vmatprep.subr.bf16.mxu1 %v8045_v2 }
 0x2b5   : > { %3334 = vrot.lane.b32.xlu1 %v6489_v19, %s7294_s10  ;;  %v3029_v46 = vcombine.low %v3021_v43, %v3028_v31  ;;  %v3134_v48 = vrot.slane %v3120_v45, %v7506_v20  ;;  %v6467_v30 = vpack.c.bf16 %v7944_v32, %v7944_v32  ;;  %v6492_v50 = vpack.c.bf16 %v3111_v28, %v3111_v28 }
 0x2b6   : > { %v2947_v51 = vcombine.low %v2939_v38, %v2946_v23  ;;  %v3152_v34 = vcombine.low %v3144_v42, %v3151_v53  ;;  %v2385_v6 = vcombine.high %v2255_v33, %v2255_v33  ;;  %v6469_v54 = vpack.c.bf16 %v2790_v9, %v2790_v9 }
 0x2b7   : > { %v3135_v52 = vcombine.low %v3127_v47, %v3134_v48  ;;  %3290 = vrot.lane.b32.xlu0 %v6467_v30, %s7294_s10  ;;  %v2954_v56 = vrot.slane %v7898_v39, %v7506_v20  ;;  %v2392_v60 = vrot.slane %v2255_v33, %v7506_v20  ;;  %v6483_v36 = vpack.c.bf16 %v2988_v41, %v2988_v41 }
 0x2b8   : > { %v6480_v55 = vpack.c.bf16 %v2947_v51, %v2947_v51  ;;  %v6495_v32 = vpack.c.bf16 %v3152_v34, %v3152_v34  ;;  %v2399_v49 = vrot.slane %v2385_v6, %v7506_v20  ;;  %v6486_v62 = vpack.c.bf16 %v3029_v46, %v3029_v46 }
 0x2b9   : > { %3340 = vrot.lane.b32.xlu1 %v6492_v50, %s7294_s10  ;;  %v6481_v57 = vpack.c.bf16 %v2954_v56, %v2954_v56  ;;  %v2400_v37 = vcombine.high %v2392_v60, %v2392_v60  ;;  %v3036_v44 = vrot.slane %v7942_v0, %v7506_v20  ;;  %v3118_v4 = vrot.slane %v7995_v3, %v7506_v20 }
 0x2ba   : > { %v2401_v61 = vcombine.high %v2399_v49, %v2399_v49  ;;  %v2749_v0 = vcombine.high %v8008_v13, %v8008_v13  ;;  %v6494_v40 = vpack.c.bf16 %v3135_v52, %v3135_v52 }
 0x2bb   : > { %3294 = vrot.lane.b32.xlu0 %v6469_v54, %s7294_s10  ;;  %v2767_v63 = vcombine.low %v2392_v60, %v2400_v37  ;;  %v6487_v1 = vpack.c.bf16 %v3036_v44, %v3036_v44  ;;  %v6493_v8 = vpack.c.bf16 %v3118_v4, %v3118_v4 }
 0x2bc   : > { %v2768_v39 = vcombine.low %v2399_v49, %v2401_v61  ;;  %v3159_v12 = vrot.slane %v2749_v0, %v7506_v20 }
 0x2bd   : > { %3316 = vrot.lane.b32.xlu1 %v6480_v55, %s7294_s10  ;;  %v2775_v7 = vrot.slane %v2767_v63, %v7506_v20 }
 0x2be   : > { %v2782_v5 = vrot.slane %v2768_v39, %v7506_v20  ;;  %v6496_v3 = vpack.c.bf16 %v3159_v12, %v3159_v12 }
 0x2bf   : > { %3346 = vrot.lane.b32.xlu0 %v6495_v32, %s7294_s10 }
 0x2c0   : > { %v2783_v58 = vcombine.low %v2775_v7, %v2782_v5 }
 0x2c1   : > { %3318 = vrot.lane.b32.xlu1 %v6481_v57, %s7294_s10 }
 0x2c2   : > { %v6468_v10 = vpack.c.bf16 %v2783_v58, %v2783_v58 }
 0x2c5   : > { %3322 = vrot.lane.b32.xlu1 %v6483_v36, %s7294_s10 }
 0x2c9   : > { %3328 = vrot.lane.b32.xlu1 %v6486_v62, %s7294_s10 }
 0x2cd   : > { %3330 = vrot.lane.b32.xlu1 %v6487_v1, %s7294_s10 }
 0x2d1   : > { %3342 = vrot.lane.b32.xlu1 %v6493_v8, %s7294_s10  ;;  %v8908_v8 = vld [vmem:[%s9062_s4] ss:$0 sm:$0xff] }
 0x2d5   : > { %3292 = vrot.lane.b32.xlu1 %v6468_v10, %s7294_s10 }
 0x2d9   : > { %3344 = vrot.lane.b32.xlu1 %v6494_v40, %s7294_s10 }
 0x2dd   : > { %3348 = vrot.lane.b32.xlu1 %v6496_v3, %s7294_s10  ;;  %s6157_s10 = sshll.u32 %s254_s29, 3 }
 0x2de   : > { %s256_s6 = scalar_lea.vmem [#allocation6], %s6157_s10  ;;  %s7162_s10 = scalar_lea.vmem %s7161_s25, 256 }
 0x2df   : > { %s6061_s11 = sshll.u32 %s256_s6, 4  ;;  %s8993_s11 = int_to_ptr.vmem [resolvable:$true] %s6061_s11 }
 0x2e0   : > { %s7156_s8 = scalar_lea.vmem %s8993_s11, 128  ;;  %p7163_p3 = scmp.lt.s32.totalorder %s8993_s11, %s7161_s25 }
 0x2e1   : > { %p7157_p0 = scmp.ne.s32.totalorder %s8993_s11, %s7156_s8  ;;  %p7164_p11 = scmp.lt.s32.totalorder %s7162_s10, %s7156_s8 }
 0x2e3   : > { %p7158_p6 = pnand %p7157_p0, %p9122_p1  ;;  %p7165_p13 = por %p7164_p11, %p7163_p3 }
 0x2e5   : > { %p7159_p9 = pneg %p7158_p6 }
 0x2e7   : > { %v3297_v13 = vpop.permute.xlu0 %3296  ;;  %p7166_p5 = pnand %p7165_p13, %p7159_p9 }
 0x2e8   : > { %3385 = vst.msk [vmem:[#allocation2 + $0xc] sm:$0xf] %vm3380_vm6, %v3297_v13 }
 0x2ef   : > { %v4407_v18 = vld [vmem:[#allocation2 + $0xc] sm:$0xf] }
 0x2f0   : > { %v3414_v19 = vld [vmem:[#allocation2 + $0xc] sm:$0xf]  ;;  %v4432_v25 = vshrl.u32 %v4407_v18, 16  ;;  %v4435_v27 = vshll.u32 %v4407_v18, 16 }
 0x2f1   : > { %v3466_v45 = vshrl.u32 %v3414_v19, 16  ;;  %v3469_v26 = vshll.u32 %v3414_v19, 16  ;;  %v4792_v38 = vld [vmem:[#allocation2 + $0xc] sm:$0xe] }
 0x2f2   : > { %v4434_v28 = vrot.slane %v4432_v25, 4  ;;  %v4437_v29 = vrot.slane %v4435_v27, 5  ;;  %v3954_v9 = vld [vmem:[#allocation2 + $0xc] sm:$0xe]  ;;  %v6356_v6 = vrot.slane %v4792_v38, 9 }
 0x2f3   : > { %v3468_v21 = vrot.slane %v3466_v45, 4  ;;  %v3471_v35 = vrot.slane %v3469_v26, 5  ;;  %v6298_v55 = vrot.slane %v3954_v9, 9 }
 0x2f4   : > { %v4438_v31 = vor.u32 %v4437_v29, %v4434_v28 }
 0x2f5   : > { %v3472_v41 = vor.u32 %v3471_v35, %v3468_v21 }
 0x2f6   : > { %v8106_v52 = vrot.slane %v4438_v31, 4 }
 0x2f7   : > { %v8108_v54 = vrot.slane %v3472_v41, 4 }
 0x2f9   : > { %v3307_v24 = vpop.permute.xlu1 %3306 }
 0x2fa   : > { %3390 = vst.msk [vmem:[#allocation2 + $0x20] sm:$0x1] %vm3383_vm7, %v3307_v24 }
 0x2fd   : > { %v3301_v20 = vpop.permute.xlu1 %3300 }
 0x2fe   : > { %3387 = vst.msk [vmem:[#allocation2 + $0x14] sm:$0x1] %vm3383_vm7, %v3301_v20 }
 0x301   : > { %v3299_v11 = vpop.permute.xlu1 %3298  ;;  %v8096_v33 = vld [vmem:[#allocation2 + $0x20] sm:$0x1] }
 0x302   : > { %3386 = vst.msk [vmem:[#allocation2 + $0x10] sm:$0xf] %vm3380_vm6, %v3299_v11  ;;  %v3432_v42 = vld [vmem:[#allocation2 + $0x20] sm:$0x1]  ;;  %v4475_v53 = vshll.u32 %v8096_v33, 16  ;;  %v4836_v32 = vrot.slane %v8096_v33, 5 }
 0x303   : > { %v3509_v48 = vshll.u32 %v3432_v42, 16 }
 0x304   : > { %v8110_v56 = vrot.slane %v4475_v53, 5 }
 0x305   : > { %v3309_v14 = vpop.permute.xlu1 %3308  ;;  %v8102_v30 = vld [vmem:[#allocation2 + $0x14] sm:$0x1]  ;;  %v8117_v62 = vrot.slane %v3509_v48, 5 }
 0x306   : > { %3391 = vst.msk [vmem:[#allocation2 + $0x24] sm:$0xf] %vm3380_vm6, %v3309_v14  ;;  %v8104_v34 = vld [vmem:[#allocation2 + $0x14] sm:$0x1]  ;;  %v4451_v36 = vshll.u32 %v8102_v30, 16  ;;  %v4829_v1 = vrot.slane %v8102_v30, 5 }
 0x307   : > { %v3485_v39 = vshll.u32 %v8104_v34, 16 }
 0x308   : > { %v8135_v12 = vrot.slane %v4451_v36, 5 }
 0x309   : > { %v3303_v15 = vpop.permute.xlu1 %3302  ;;  %v3313_v16 = vpop.permute.xlu0 %3312  ;;  %v4408_v43 = vld [vmem:[#allocation2 + $0x10] sm:$0xf]  ;;  %v8139_v24 = vrot.slane %v3485_v39, 5 }
 0x30a   : > { %3388 = vst.msk [vmem:[#allocation2 + $0x18] sm:$0xf] %vm3380_vm6, %v3303_v15  ;;  %v8099_v47 = vld [vmem:[#allocation2 + $0x10] sm:$0xf]  ;;  %v4441_v50 = vshll.u32 %v4408_v43, 16  ;;  %v4445_v51 = vshrl.u32 %v4408_v43, 16 }
 0x30b   : > { %3393 = vst.msk [vmem:[#allocation2 + $0x2c] sm:$0x1] %vm3383_vm7, %v3313_v16  ;;  %v3475_v49 = vshll.u32 %v8099_v47, 16  ;;  %v3479_v57 = vshrl.u32 %v8099_v47, 16  ;;  %v4826_v37 = vrot.slane %v4408_v43, 5  ;;  %v9068_v4 = vrot.slane %v8099_v47, 5 }
 0x30c   : > { %v8121_v44 = vrot.slane %v4441_v50, 5  ;;  %v4447_v63 = vrot.slane %v4445_v51, 4 }
 0x30d   : > { %v3305_v17 = vpop.permute.xlu1 %3304  ;;  %v4413_v7 = vld [vmem:[#allocation2 + $0x24] sm:$0xf]  ;;  %v8133_v58 = vrot.slane %v3475_v49, 5  ;;  %v3481_v0 = vrot.slane %v3479_v57, 4  ;;  %v4828_v13 = vrot.slane %v4826_v37, 4  ;;  %v8168_v28 = vsel %vm8129_vm12, %v6298_v55, %v9068_v4 }
 0x30e   : > { %3389 = vst.msk [vmem:[#allocation2 + $0x1c] sm:$0xf] %vm3380_vm6, %v3305_v17  ;;  %v4448_v17 = vor.u32 %v4447_v63, %v8121_v44  ;;  %v4480_v18 = vshrl.u32 %v4413_v7, 16  ;;  %v4483_v19 = vshll.u32 %v4413_v7, 16  ;;  %v4444_v48 = vsel %vm8157_vm13, %v8106_v52, %v8121_v44 }
 0x30f   : > { %v3478_v52 = vsel %vm8157_vm13, %v8108_v54, %v8133_v58 }
 0x310   : > { %v4449_v30 = vrot.slane %v4448_v17, 4  ;;  %v4482_v50 = vrot.slane %v4480_v18, 4  ;;  %v4485_v51 = vrot.slane %v4483_v19, 5 }
 0x311   : > { %v3311_v22 = vpop.permute.xlu1 %3310  ;;  %v4410_v11 = vld [vmem:[#allocation2 + $0x18] sm:$0xf] }
 0x312   : > { %3392 = vst.msk [vmem:[#allocation2 + $0x28] sm:$0xf] %vm3380_vm6, %v3311_v22  ;;  %v8146_v16 = vld [vmem:[#allocation2 + $0x18] sm:$0xf]  ;;  %v8151_v22 = vsel %vm8129_vm12, %v6356_v6, %v4826_v37  ;;  %v4456_v35 = vshrl.u32 %v4410_v11, 16  ;;  %v4459_v42 = vshll.u32 %v4410_v11, 16 }
 0x313   : > { %9099 = vst [vmem:[#allocation12_spill] sm:$0xff] %v8146_v16  ;;  %v3490_v43 = vshrl.u32 %v8146_v16, 16  ;;  %v3493_v31 = vshll.u32 %v8146_v16, 16  ;;  %v8184_v6 = vld [vmem:[#allocation2 + $0x24] sm:$0xf] }
 0x314   : > { %9103 = vst [vmem:[#allocation14_spill] sm:$0xff] %v8184_v6  ;;  %v8186_v55 = vld [vmem:[#allocation2 + $0x2c] sm:$0x1]  ;;  %v4458_v39 = vrot.slane %v4456_v35, 4  ;;  %v4461_v44 = vrot.slane %v4459_v42, 5  ;;  %v3514_v18 = vshrl.u32 %v8184_v6, 16 }
 0x315   : > { %v3315_v23 = vpop.permute.xlu1 %3314  ;;  %v8125_v5 = vld [vmem:[#allocation2 + $0x1c] sm:$0xf]  ;;  %v3492_v63 = vrot.slane %v3490_v43, 4  ;;  %v3495_v7 = vrot.slane %v3493_v31, 5  ;;  %v4499_v17 = vshll.u32 %v8186_v55, 16 }
 0x316   : > { %3394 = vst.msk [vmem:[#allocation2 + $0x30] sm:$0xf] %vm3380_vm6, %v3315_v23  ;;  %v3321_v46 = vpop.permute.xlu0 %3320  ;;  %v4465_v14 = vshll.u32 %v8125_v5, 16  ;;  %v4469_v15 = vshrl.u32 %v8125_v5, 16  ;;  %v8153_v25 = vld [vmem:[#allocation2 + $0x1c] sm:$0xf]  ;;  %v3482_v23 = vor.u32 %v3481_v0, %v8133_v58  ;;  %v4454_v58 = vsel %vm8157_vm13, %v4449_v30, %v8135_v12 }
 0x317   : > { %3397 = vst.msk [vmem:[#allocation2 + $0x3c] sm:$0xf] %vm3380_vm6, %v3321_v46  ;;  %9100 = vst [vmem:[#allocation13_spill] sm:$0xff] %v8153_v25  ;;  %v3499_v53 = vshll.u32 %v8153_v25, 16  ;;  %v3503_v9 = vshrl.u32 %v8153_v25, 16  ;;  %v3496_v35 = vor.u32 %v3495_v7, %v3492_v63 }
 0x318   : > { %v8174_v38 = vrot.slane %v4465_v14, 5  ;;  %v4471_v41 = vrot.slane %v4469_v15, 4  ;;  %v8178_v46 = vld [vmem:[#allocation2 + $0x24] sm:$0xe]  ;;  %v4793_v42 = vld [vmem:[#allocation2 + $0x18] sm:$0xe] }
 0x319   : > { %v8137_v3 = vld [vmem:[#allocation2 + $0x28] sm:$0xf] }
 0x31a   : > { %v4489_v45 = vshll.u32 %v8137_v3, 16  ;;  %v4493_v26 = vshrl.u32 %v8137_v3, 16  ;;  %v4472_v0 = vor.u32 %v4471_v41, %v8174_v38  ;;  %v9069_v41 = vrot.slane %v8137_v3, 5 }
 0x31c   : > { %v8188_v49 = vrot.slane %v4489_v45, 5  ;;  %v4495_v57 = vrot.slane %v4493_v26, 4  ;;  %v4473_v12 = vrot.slane %v4472_v0, 4  ;;  %v8233_v0 = vrot.slane %v3496_v35, 4 }
 0x31d   : > { %v3327_v60 = vpop.permute.xlu0 %3326 }
 0x31e   : > { %3400 = vst.msk [vmem:[#allocation2 + $0x48] sm:$0xf] %vm3380_vm6, %v3327_v60  ;;  %v4416_v60 = vld [vmem:[#allocation2 + $0x30] sm:$0xf]  ;;  %v4496_v15 = vor.u32 %v4495_v57, %v8188_v49 }
 0x31f   : > { %v3333_v61 = vpop.permute.xlu1 %3332  ;;  %v4504_v11 = vshrl.u32 %v4416_v60, 16  ;;  %v4507_v14 = vshll.u32 %v4416_v60, 16  ;;  %v4501_v60 = vrot.slane %v4499_v17, 5 }
 0x320   : > { %3403 = vst.msk [vmem:[#allocation2 + $0x54] sm:$0xf] %vm3380_vm6, %v3333_v61  ;;  %v8192_v61 = vsel %vm8129_vm12, %v4828_v13, %v4829_v1  ;;  %v8201_v1 = vrot.slane %v3499_v53, 5  ;;  %v4486_v13 = vor.u32 %v4485_v51, %v4482_v50  ;;  %v8224_v53 = vld [vmem:[%s9061_s3 + $0x28] sm:$0xff]   ;;  %v4497_v57 = vrot.slane %v4496_v15, 4 }
 0x321   : > { %v3325_v10 = vpop.permute.xlu0 %3324  ;;  %v4506_v30 = vrot.slane %v4504_v11, 4  ;;  %v4509_v50 = vrot.slane %v4507_v14, 5  ;;  %v8226_v51 = vld [vmem:[#allocation2 + $0x2c] sm:$0x1] }
 0x322   : > { %3399 = vst.msk [vmem:[#allocation2 + $0x44] sm:$0x1] %vm3383_vm7, %v3325_v10  ;;  %v3483_v10 = vrot.slane %v3482_v23, 4  ;;  %v4462_v23 = vor.u32 %v4461_v44, %v4458_v39  ;;  %9104 = vst [vmem:[#allocation15_spill] sm:$0xff] %v8226_v51 }
 0x323   : > { %v3339_v40 = vpop.permute.xlu1 %3338 }
 0x324   : > { %3406 = vst.msk [vmem:[#allocation2 + $0x60] sm:$0xf] %vm3380_vm6, %v3339_v40  ;;  %v3505_v40 = vrot.slane %v3503_v9, 4  ;;  %v3488_v43 = vsel %vm8157_vm13, %v3483_v10, %v8139_v24  ;;  %v4487_v9 = vrot.slane %v4486_v13, 4  ;;  %v6357_v24 = vrot.slane %v4793_v42, 9 }
 0x325   : > { %v3337_v29 = vpop.permute.xlu0 %3336  ;;  %v4463_v63 = vrot.slane %v4462_v23, 4  ;;  %v8231_v7 = vcombine.low %v3478_v52, %v3488_v43  ;;  %v4419_v13 = vld [vmem:[#allocation2 + $0x3c] sm:$0xf]  ;;  %v8248_v52 = vrot.slane %v9069_v41, 4  ;;  %v3533_v23 = vshll.u32 %v8226_v51, 16 }
 0x326   : > { %3405 = vst.msk [vmem:[#allocation2 + $0x5c] sm:$0x1] %vm3383_vm7, %v3337_v29  ;;  %v4833_v29 = vrot.slane %v8125_v5, 5  ;;  %v3506_v31 = vor.u32 %v3505_v40, %v8201_v1  ;;  %v6339_v5 = vcombine.low %v4444_v48, %v4454_v58  ;;  %v4478_v40 = vsel %vm8157_vm13, %v4473_v12, %v8110_v56 }
 0x327   : > { %v3335_v21 = vpop.permute.xlu1 %3334  ;;  %v4510_v58 = vor.u32 %v4509_v50, %v4506_v30  ;;  %v4468_v42 = vsel %vm8157_vm13, %v4463_v63, %v8174_v38  ;;  %v4531_v43 = vshll.u32 %v4419_v13, 16  ;;  %v4492_v38 = vsel %vm8157_vm13, %v4487_v9, %v8188_v49  ;;  %v8288_v49 = vld [vmem:[%s9061_s3 + $0x30] sm:$0xff]  }
 0x328   : > { %3404 = vst.msk [vmem:[#allocation2 + $0x58] sm:$0xf] %vm3380_vm6, %v3335_v21  ;;  %v4835_v10 = vrot.slane %v4833_v29, 4  ;;  %v8240_v11 = vrot.slane %v3506_v31, 4  ;;  %v8244_v14 = vsel %vm8129_vm12, %v6357_v24, %v4833_v29  ;;  %v8259_v29 = vld [vmem:[#allocation2 + $0x30] sm:$0xf] }
 0x329   : > { %v3291_v36 = vpop.permute.xlu0 %3290  ;;  %v4422_v31 = vld [vmem:[#allocation2 + $0x48] sm:$0xf]  ;;  %v4511_v24 = vrot.slane %v4510_v58, 4  ;;  %v8294_v58 = vrot.slane %v3533_v23, 5  ;;  %v8303_v20 = vld [vmem:[#allocation2 + $0x44] sm:$0x1] }
 0x32a   : > { %3381 = vst.msk [vmem:[#allocation2] sm:$0xf] %vm3380_vm6, %v3291_v36  ;;  %v8228_v36 = vld [vmem:[#allocation2 + $0x28] sm:$0xf] }
 0x32b   : > { %v3341_v37 = vpop.permute.xlu1 %3340  ;;  %9105 = vst [vmem:[#allocation16_spill] sm:$0xff] %v8228_v36  ;;  %v3523_v17 = vshll.u32 %v8228_v36, 16  ;;  %v3527_v56 = vshrl.u32 %v8228_v36, 16 }
 0x32c   : > { %3407 = vst.msk [vmem:[#allocation2 + $0x64] sm:$0xf] %vm3380_vm6, %v3341_v37  ;;  %v3517_v37 = vshll.u32 %v8184_v6, 16 }
 0x32d   : > { %v3295_v19 = vpop.permute.xlu0 %3294  ;;  %v8281_v33 = vrot.slane %v3523_v17, 5  ;;  %v8326_v15 = vld [vmem:[#allocation2 + $0x5c] sm:$0x1] }
 0x32e   : > { %3384 = vst.msk [vmem:[#allocation2 + $0x8] sm:$0x1] %vm3383_vm7, %v3295_v19  ;;  %v4502_v19 = vsel %vm8157_vm13, %v4497_v57, %v4501_v60 }
 0x32f   : > { %v3317_v45 = vpop.permute.xlu1 %3316  ;;  %v7028_v26 = vld [vmem:[#allocation2 + $0x54] sm:$0xff]   ;;  %v6341_v60 = vcombine.low %v4492_v38, %v4502_v19 }
 0x330   : > { %3395 = vst.msk [vmem:[#allocation2 + $0x34] sm:$0xf] %vm3380_vm6, %v3317_v45  ;;  %6685 = vmatprep.mubr.msk.bf16.mxu1 %vm455_vm3, %v7028_v26  ;;  %v3516_v45 = vrot.slane %v3514_v18, 4  ;;  %v3519_v26 = vrot.slane %v3517_v37, 5  ;;  %v8271_v18 = vsel %vm8129_vm12, %v4835_v10, %v4836_v32  ;;  %v8279_v57 = vld [vmem:[#allocation2 + $0x58] sm:$0xf] }
 0x331   : > { %v3347_v48 = vpop.permute.xlu0 %3346  ;;  %v8283_v37 = vrot.slane %v3527_v56, 4  ;;  %v8338_v36 = vld [vmem:[#allocation2] sm:$0xf] }
 0x332   : > { %3410 = vst.msk [vmem:[#allocation2 + $0x70] sm:$0xf] %vm3380_vm6, %v3347_v48  ;;  %v4425_v48 = vld [vmem:[#allocation2 + $0x54] sm:$0xf]  ;;  %v3520_v9 = vor.u32 %v3519_v26, %v3516_v45  ;;  %v4555_v45 = vshll.u32 %v4422_v31, 16 }
 0x333   : > { %v3319_v39 = vpop.permute.xlu1 %3318  ;;  %v7029_v44 = vld [vmem:[#allocation2 + $0x60] sm:$0xff]   ;;  %v4576_v26 = vshrl.u32 %v4425_v48, 16  ;;  %v4579_v38 = vshll.u32 %v4425_v48, 16 }
 0x334   : > { %3396 = vst.msk [vmem:[#allocation2 + $0x38] sm:$0x1] %vm3383_vm7, %v3319_v39  ;;  %6686 = vmatmul.mubr.msk.bf16.vlgmr.msra.gmra.mrb[0].mxu1 %vm455_vm3, %v7029_v44  ;;  %v4552_v44 = vshrl.u32 %v4422_v31, 16  ;;  %v4428_v48 = vld [vmem:[#allocation2 + $0x60] sm:$0xf]  ;;  %v4557_v4 = vrot.slane %v4555_v45, 5 }
 0x335   : > { %6690 = vmatpush3.bf16.msra.mxu1 %v8045_v2  ;;  %6691 = vmatprep.mubr.msk.bf16.mxu1 %vm455_vm3, %v6339_v5  ;;  %v4528_v2 = vshrl.u32 %v4419_v13, 16  ;;  %v6340_v5 = vcombine.low %v4468_v42, %v4478_v40  ;;  %v4585_v40 = vshll.u32 %v8279_v57, 16  ;;  %v4589_v13 = vshrl.u32 %v8279_v57, 16 }
 0x336   : > { %6707 = vmatprep.subr.bf16.mxu1 %v8224_v53  ;;  %v4533_v42 = vrot.slane %v4531_v43, 5  ;;  %v4578_v21 = vrot.slane %v4576_v26, 4 }
 0x337   : > { %v3323_v35 = vpop.permute.xlu1 %3322  ;;  %v8265_v12 = vld [vmem:[#allocation2 + $0x34] sm:$0xf]  ;;  %v4591_v31 = vrot.slane %v4589_v13, 4  ;;  %v8321_v13 = vld [vmem:[#allocation2 + $0x64] sm:$0xf] }
 0x338   : > { %3398 = vst.msk [vmem:[#allocation2 + $0x40] sm:$0xf] %vm3380_vm6, %v3323_v35  ;;  %v4513_v30 = vshll.u32 %v8265_v12, 16  ;;  %v4517_v50 = vshrl.u32 %v8265_v12, 16  ;;  %v4530_v35 = vrot.slane %v4528_v2, 4  ;;  %9106 = vst [vmem:[#allocation17_spill] sm:$0xff] %v8321_v13 }
 0x339   : > { %v4609_v41 = vshll.u32 %v8321_v13, 16  ;;  %v4613_v45 = vshrl.u32 %v8321_v13, 16 }
 0x33a   : > { %v4515_v32 = vrot.slane %v4513_v30, 5  ;;  %v4519_v39 = vrot.slane %v4517_v50, 4 }
 0x33b   : > { %v3329_v63 = vpop.permute.xlu1 %3328  ;;  %v8290_v10 = vld [vmem:[#allocation2 + $0x38] sm:$0x1]  ;;  %v8342_v25 = vrot.slane %v4609_v41, 5  ;;  %v4615_v13 = vrot.slane %v4613_v45, 4  ;;  %v3445_v45 = vshll.u32 %v8338_v36, 16 }
 0x33c   : > { %3401 = vst.msk [vmem:[#allocation2 + $0x4c] sm:$0xf] %vm3380_vm6, %v3329_v63  ;;  %v4520_v56 = vor.u32 %v4519_v39, %v4515_v32  ;;  %v4523_v19 = vshll.u32 %v8290_v10, 16  ;;  %6692 = vmatmul.mubr.msk.bf16.vlgmr.msra.gmra.mrb[4].mxu1 %vm455_vm3, %v6340_v5  ;;  %v4554_v39 = vrot.slane %v4552_v44, 4  ;;  %v8305_v63 = vrot.slane %v3520_v9, 4 }
 0x33d   : > { %6695 = vmatprep.mubr.msk.bf16.mxu1 %vm455_vm3, %v6341_v60  ;;  %6708 = vmatpush3.bf16.msra.mxu1 %v8224_v53  ;;  %v8309_v5 = vrot.slane %v4585_v40, 5  ;;  %v3530_v53 = vor.u32 %v8283_v37, %v8281_v33  ;;  %v4534_v9 = vor.u32 %v4533_v42, %v4530_v35  ;;  %v4581_v60 = vrot.slane %v4579_v38, 5 }
 0x33e   : > { %v4521_v23 = vrot.slane %v4520_v56, 4  ;;  %v4525_v50 = vrot.slane %v4523_v19, 5  ;;  %6725 = vmatprep.subr.bf16.mxu1 %v8288_v49  ;;  %v4547_v19 = vshll.u32 %v8303_v20, 16  ;;  %v4516_v37 = vsel %vm8157_vm13, %v4511_v24, %v4515_v32 }
 0x33f   : > { %v3331_v2 = vpop.permute.xlu1 %3330  ;;  %v8307_v43 = vld [vmem:[#allocation2 + $0x40] sm:$0xf]  ;;  %v4592_v54 = vor.u32 %v4591_v31, %v8309_v5  ;;  %v4535_v26 = vrot.slane %v4534_v9, 4 }
 0x340   : > { %3402 = vst.msk [vmem:[#allocation2 + $0x50] sm:$0x1] %vm3383_vm7, %v3331_v2  ;;  %v4526_v44 = vsel %vm8157_vm13, %v4521_v23, %v4525_v50  ;;  %v4537_v56 = vshll.u32 %v8307_v43, 16  ;;  %v4541_v40 = vshrl.u32 %v8307_v43, 16  ;;  %v4600_v23 = vshrl.u32 %v4428_v48, 16 }
 0x341   : > { %v6342_v42 = vcombine.low %v4516_v37, %v4526_v44  ;;  %v4582_v44 = vor.u32 %v4581_v60, %v4578_v21  ;;  %v4603_v37 = vshll.u32 %v4428_v48, 16  ;;  %v4549_v17 = vrot.slane %v4547_v19, 5 }
 0x342   : > { %v4539_v30 = vrot.slane %v4537_v56, 5  ;;  %v4543_v2 = vrot.slane %v4541_v40, 4  ;;  %v4558_v56 = vor.u32 %v4557_v4, %v4554_v39  ;;  %v4595_v40 = vshll.u32 %v8326_v15, 16 }
 0x343   : > { %v3343_v35 = vpop.permute.xlu1 %3342  ;;  %v8328_v50 = vld [vmem:[#allocation2 + $0x4c] sm:$0xf]  ;;  %v4602_v16 = vrot.slane %v4600_v23, 4 }
 0x344   : > { %3408 = vst.msk [vmem:[#allocation2 + $0x68] sm:$0x1] %vm3383_vm7, %v3343_v35  ;;  %v4544_v38 = vor.u32 %v4543_v2, %v4539_v30  ;;  %v4561_v24 = vshll.u32 %v8328_v50, 16  ;;  %v4565_v32 = vshrl.u32 %v8328_v50, 16  ;;  %6696 = vmatmul.mubr.msk.bf16.gmra.mrb[8].mxu1 %vm455_vm3, %v6342_v42  ;;  %v4593_v2 = vrot.slane %v4592_v54, 4 }
 0x345   : > { %v4540_v4 = vsel %vm8157_vm13, %v4535_v26, %v4539_v30  ;;  %v4597_v19 = vrot.slane %v4595_v40, 5  ;;  %v4605_v42 = vrot.slane %v4603_v37, 5  ;;  %v3442_v54 = vshrl.u32 %v8338_v36, 16  ;;  %v8358_v40 = vld [vmem:[#allocation2 + $0x34] sm:$0xf] }
 0x346   : > { %v4545_v31 = vrot.slane %v4544_v38, 4  ;;  %v4563_v51 = vrot.slane %v4561_v24, 5  ;;  %v4567_v6 = vrot.slane %v4565_v32, 4  ;;  %v4559_v23 = vrot.slane %v4558_v56, 4 }
 0x347   : > { %v3293_v35 = vpop.permute.xlu1 %3292  ;;  %v8340_v9 = vld [vmem:[#allocation2 + $0x50] sm:$0x1]  ;;  %v4583_v30 = vrot.slane %v4582_v44, 4  ;;  %v4616_v26 = vor.u32 %v4615_v13, %v8342_v25  ;;  %v3531_v32 = vrot.slane %v3530_v53, 4  ;;  %v4606_v13 = vor.u32 %v4605_v42, %v4602_v16 }
 0x348   : > { %3382 = vst.msk [vmem:[#allocation2 + $0x4] sm:$0xf] %vm3380_vm6, %v3293_v35  ;;  %v4550_v21 = vsel %vm8157_vm13, %v4545_v31, %v4549_v17  ;;  %v4568_v39 = vor.u32 %v4567_v6, %v4563_v51  ;;  %v4571_v48 = vshll.u32 %v8340_v9, 16  ;;  %v4598_v17 = vsel %vm8157_vm13, %v4593_v2, %v4597_v19 }
 0x349   : > { %v6343_v60 = vcombine.low %v4540_v4, %v4550_v21  ;;  %v4564_v56 = vsel %vm8157_vm13, %v4559_v23, %v4563_v51  ;;  %v9107_v31 = vshrl.u32 %v8259_v29, 16  ;;  %v4588_v53 = vsel %vm8157_vm13, %v4583_v30, %v8309_v5 }
 0x34a   : > { %v4569_v41 = vrot.slane %v4568_v39, 4  ;;  %v4573_v38 = vrot.slane %v4571_v48, 5  ;;  %v3444_v4 = vrot.slane %v3442_v54, 4  ;;  %v6345_v21 = vcombine.low %v4588_v53, %v4598_v17  ;;  %v8373_v48 = vld [vmem:[#allocation2 + $0x8] sm:$0x1] }
 0x34b   : > { %v3345_v24 = vpop.permute.xlu1 %3344  ;;  %6699 = vmatprep.mubr.msk.bf16.mxu1 %vm455_vm3, %v6343_v60  ;;  %v8355_v6 = vld [vmem:[#allocation2 + $0x68] sm:$0x1]  ;;  %v8368_v35 = vrot.slane %v9107_v31, 4  ;;  %v3447_v51 = vrot.slane %v3445_v45, 5  ;;  %v3547_v60 = vshll.u32 %v8358_v40, 16  ;;  %v4617_v23 = vrot.slane %v4616_v26, 4 }
 0x34c   : > { %3409 = vst.msk [vmem:[#allocation2 + $0x6c] sm:$0xf] %vm3380_vm6, %v3345_v24  ;;  %v4574_v37 = vsel %vm8157_vm13, %v4569_v41, %v4573_v38  ;;  %v4619_v44 = vshll.u32 %v8355_v6, 16  ;;  %v3502_v5 = vsel %vm8157_vm13, %v8233_v0, %v8201_v1  ;;  %v9108_v16 = vrot.slane %v8137_v3, 5  ;;  %v8425_v53 = vld [vmem:[#allocation2 + $0x40] sm:$0xf] }
 0x34d   : > { %v6344_v2 = vcombine.low %v4564_v56, %v4574_v37  ;;  %v9109_v42 = vrot.slane %v8178_v46, 9  ;;  %v3551_v38 = vshrl.u32 %v8358_v40, 16  ;;  %v3512_v3 = vsel %vm8157_vm13, %v8240_v11, %v8117_v62 }
 0x34e   : > { %v4621_v39 = vrot.slane %v4619_v44, 5  ;;  %v9110_v46 = vrot.slane %v8186_v55, 5  ;;  %v4607_v0 = vrot.slane %v4606_v13, 4  ;;  %v3461_v30 = vshll.u32 %v8373_v48, 16  ;;  %v8415_v44 = vld [vmem:[#allocation2 + $0x30] sm:$0xe] }
 0x34f   : > { %v3349_v19 = vpop.permute.xlu1 %3348  ;;  %6700 = vmatmul.mubr.msk.bf16.gmra.mrb[12].mxu1 %vm455_vm3, %v6344_v2  ;;  %v8377_v41 = vld [vmem:[#allocation2 + $0x4] sm:$0xf]  ;;  %v8389_v54 = vsel %vm8129_vm12, %v9109_v42, %v9108_v16  ;;  %v3536_v17 = vsel %vm8157_vm13, %v3531_v32, %v8294_v58  ;;  %v9111_v26 = vshll.u32 %v8259_v29, 16  ;;  %v3448_v11 = vor.u32 %v3447_v51, %v3444_v4  ;;  %v8434_v51 = vld [vmem:[#allocation2 + $0x38] sm:$0x1] }
 0x350   : > { %3411 = vst.msk [vmem:[#allocation2 + $0x74] sm:$0x1] %vm3383_vm7, %v3349_v19  ;;  %6703 = vmatprep.mubr.msk.bf16.mxu1 %vm455_vm3, %v6345_v21  ;;  %v3451_v45 = vshll.u32 %v8377_v41, 16  ;;  %v3455_v24 = vshrl.u32 %v8377_v41, 16  ;;  %v8405_v1 = vsel %vm8129_vm12, %v8248_v52, %v9110_v46  ;;  %v4622_v62 = vsel %vm8157_vm13, %v4617_v23, %v4621_v39  ;;  %v8417_v52 = vld [vmem:[#allocation2 + $0x3c] sm:$0xf] }
 0x351   : > { %v3543_v56 = vrot.slane %v9111_v26, 5  ;;  %v6265_v31 = vcombine.low %v3502_v5, %v3512_v3  ;;  %v3526_v2 = vsel %vm8157_vm13, %v8305_v63, %v8281_v33  ;;  %v8423_v58 = vrot.slane %v3547_v60, 5  ;;  %v8438_v60 = vld [vmem:[#allocation2 + $0x4c] sm:$0xf]  ;;  %v8440_v42 = vld [vmem:[#allocation2 + $0x44] sm:$0x1] }
 0x352   : > { %v3453_v55 = vrot.slane %v3451_v45, 5  ;;  %v3457_v37 = vrot.slane %v3455_v24, 4  ;;  %v3553_v32 = vrot.slane %v3551_v38, 4  ;;  %v4612_v13 = vsel %vm8157_vm13, %v4607_v0, %v8342_v25  ;;  %v8457_v26 = vld [vmem:[#allocation2 + $0x3c] sm:$0xe] }
 0x353   : > { %v6366_v21 = vcombine.low %v8389_v54, %v8405_v1  ;;  %v8432_v39 = vcombine.low %v3526_v2, %v3536_v17  ;;  %v6346_v19 = vcombine.low %v4612_v13, %v4622_v62  ;;  %v3463_v23 = vrot.slane %v3461_v30, 5  ;;  %v8475_v13 = vld [vmem:[%s9061_s3 + $0x10] sm:$0xff]  }
 0x354   : > { %v3458_v4 = vor.u32 %v3457_v37, %v3453_v55  ;;  %v3562_v33 = vshrl.u32 %v8417_v52, 16  ;;  %v3565_v63 = vshll.u32 %v8417_v52, 16  ;;  %v3449_v5 = vrot.slane %v3448_v11, 4 }
 0x355   : > { %v3571_v25 = vshll.u32 %v8425_v53, 16  ;;  %v3575_v38 = vshrl.u32 %v8425_v53, 16  ;;  %v3544_v45 = vor.u32 %v3543_v56, %v8368_v35  ;;  %v3554_v24 = vor.u32 %v3553_v32, %v8423_v58  ;;  %v8459_v35 = vld [vmem:[#allocation2 + $0x48] sm:$0xf] }
 0x356   : > { %v3459_v16 = vrot.slane %v3458_v4, 4  ;;  %v3557_v3 = vshll.u32 %v8434_v51, 16  ;;  %v6359_v46 = vrot.slane %v8415_v44, 9  ;;  %v9112_v0 = vcombine.low %v8151_v22, %v8192_v61 }
 0x357   : > { %6704 = vmatmul.mubr.msk.bf16.gmra.mrb[0].mxu1 %vm455_vm3, %v6346_v19  ;;  %v3454_v30 = vsel %vm8157_vm13, %v3449_v5, %v3453_v55  ;;  %v3595_v56 = vshll.u32 %v8438_v60, 16  ;;  %v3599_v62 = vshrl.u32 %v8438_v60, 16  ;;  %v8463_v37 = vrot.slane %v3562_v33, 4 }
 0x358   : > { %6709 = vmatprep.mubr.msk.bf16.mxu1 %vm455_vm3, %v9112_v0  ;;  %v3464_v17 = vsel %vm8157_vm13, %v3459_v16, %v3463_v23  ;;  %v8465_v22 = vrot.slane %v3565_v63, 5  ;;  %v3581_v61 = vshll.u32 %v8440_v42, 16  ;;  %v4847_v55 = vrot.slane %v8265_v12, 5  ;;  %v8486_v16 = vld [vmem:[#allocation2 + $0x58] sm:$0xf] }
 0x359   : > { %v6263_v11 = vcombine.low %v3454_v30, %v3464_v17  ;;  %v4854_v44 = vrot.slane %v8307_v43, 5  ;;  %v8470_v2 = vrot.slane %v3571_v25, 5  ;;  %v3577_v32 = vrot.slane %v3575_v38, 4 }
 0x35a   : > { %v3555_v4 = vrot.slane %v3554_v24, 4  ;;  %v3559_v19 = vrot.slane %v3557_v3, 5  ;;  %v6360_v23 = vrot.slane %v8457_v26, 9  ;;  %v3586_v33 = vshrl.u32 %v8459_v35, 16  ;;  %v8493_v3 = vld [vmem:[#allocation2 + $0x50] sm:$0x1] }
 0x35b   : > { %6619 = vmatprep.mubr.msk.bf16.mxu0 %vm455_vm3, %v6263_v11  ;;  %v4857_v12 = vrot.slane %v8303_v20, 5  ;;  %v3589_v43 = vshll.u32 %v8459_v35, 16  ;;  %v8484_v63 = vrot.slane %v3595_v56, 5  ;;  %v3601_v5 = vrot.slane %v3599_v62, 4  ;;  %v8498_v20 = vld [vmem:[%s9061_s3 + $0x38] sm:$0xff]  }
 0x35c   : > { %6620 = vmatmul.mubr.msk.bf16.vlgmr.msra.gmra.mrb[24].mxu0 %vm455_vm3, %v8231_v7  ;;  %v3545_v25 = vrot.slane %v3544_v45, 4  ;;  %v4850_v38 = vrot.slane %v8290_v10, 5  ;;  %v3568_v24 = vor.u32 %v8465_v22, %v8463_v37  ;;  %v3583_v7 = vrot.slane %v3581_v61, 5  ;;  %v8519_v37 = vld [vmem:[#allocation2 + $0x54] sm:$0xf] }
 0x35d   : > { %6623 = vmatprep.mubr.msk.bf16.mxu0 %vm455_vm3, %v6265_v31  ;;  %6636 = vmatpush3.bf16.msra.mxu0 %v8083_v59  ;;  %v4849_v0 = vrot.slane %v4847_v55, 4  ;;  %v4856_v30 = vrot.slane %v4854_v44, 4  ;;  %v3578_v31 = vor.u32 %v3577_v32, %v8470_v2  ;;  %v9113_v59 = vrot.slane %v8099_v47, 5 }
 0x35e   : > { %6653 = vmatprep.subr.bf16.mxu0 %v8475_v13  ;;  %v9114_v45 = vcombine.low %v8244_v14, %v8271_v18  ;;  %v3560_v17 = vsel %vm8157_vm13, %v3555_v4, %v3559_v19  ;;  %v3588_v26 = vrot.slane %v3586_v33, 4  ;;  %v3619_v56 = vshll.u32 %v8486_v16, 16 }
 0x35f   : > { %v3991_v10 = vrot.slane %v9113_v59, 4  ;;  %v3623_v62 = vshrl.u32 %v8486_v16, 16  ;;  %v3591_v11 = vrot.slane %v3589_v43, 5  ;;  %v3602_v14 = vor.u32 %v3601_v5, %v8484_v63  ;;  %v4797_v59 = vld [vmem:[#allocation2 + $0x48] sm:$0xe] }
 0x360   : > { %6710 = vmatmul.mubr.msk.bf16.vlgmr.msra.gmra.mrb[4].mxu1 %vm455_vm3, %v9114_v45  ;;  %v3605_v18 = vshll.u32 %v8493_v3, 16  ;;  %v9115_v22 = vrot.slane %v8104_v34, 5  ;;  %v4848_v54 = vsel %vm8129_vm12, %v6359_v46, %v4847_v55  ;;  %v4851_v1 = vsel %vm8129_vm12, %v4849_v0, %v4850_v38  ;;  %v4798_v45 = vld [vmem:[#allocation2 + $0x54] sm:$0xe] }
 0x361   : > { %6726 = vmatpush3.bf16.msra.mxu1 %v8288_v49  ;;  %6713 = vmatprep.mubr.msk.bf16.mxu1 %vm455_vm3, %v6366_v21  ;;  %v3550_v49 = vsel %vm8157_vm13, %v3545_v25, %v8423_v58  ;;  %v4858_v32 = vsel %vm8129_vm12, %v4856_v30, %v4857_v12  ;;  %v3579_v4 = vrot.slane %v3578_v31, 4  ;;  %v4868_v19 = vrot.slane %v8279_v57, 5 }
 0x362   : > { %v8525_v61 = vsel %vm8129_vm12, %v3991_v10, %v9115_v22  ;;  %6743 = vmatprep.subr.bf16.mxu1 %v8498_v20  ;;  %v6267_v34 = vcombine.low %v3550_v49, %v3560_v17  ;;  %v3610_v58 = vshrl.u32 %v8519_v37, 16  ;;  %v3613_v33 = vshll.u32 %v8519_v37, 16 }
 0x363   : > { %v6306_v21 = vcombine.low %v8168_v28, %v8525_v61  ;;  %v3621_v46 = vrot.slane %v3619_v56, 5  ;;  %v3625_v55 = vrot.slane %v3623_v62, 4  ;;  %v3592_v43 = vor.u32 %v3591_v11, %v3588_v26 }
 0x364   : > { %6624 = vmatmul.mubr.msk.bf16.gmra.mrb[28].mxu0 %vm455_vm3, %v8432_v39  ;;  %v3603_v5 = vrot.slane %v3602_v14, 4  ;;  %v3607_v25 = vrot.slane %v3605_v18, 5  ;;  %v4861_v38 = vrot.slane %v8328_v50, 5  ;;  %v6367_v12 = vcombine.low %v4848_v54, %v4851_v1  ;;  %v8551_v39 = vld [vmem:[#allocation2 + $0x5c] sm:$0x1] }
 0x365   : > { %6627 = vmatprep.mubr.msk.bf16.mxu0 %vm455_vm3, %v6267_v34  ;;  %v4855_v57 = vsel %vm8129_vm12, %v6360_v23, %v4854_v44  ;;  %v3569_v30 = vrot.slane %v3568_v24, 4  ;;  %v3584_v31 = vsel %vm8157_vm13, %v3579_v4, %v3583_v7  ;;  %v4864_v10 = vrot.slane %v8340_v9, 5  ;;  %v9116_v4 = vld [vmem:[#allocation17_spill] sm:$0xff] }
 0x366   : > { %v6368_v0 = vcombine.low %v4855_v57, %v4858_v32  ;;  %v4870_v50 = vrot.slane %v4868_v19, 4  ;;  %v3612_v17 = vrot.slane %v3610_v58, 4  ;;  %v3615_v26 = vrot.slane %v3613_v33, 5  ;;  %v3957_v58 = vld [vmem:[#allocation2 + $0x30] sm:$0xe] }
 0x367   : > { %v3626_v56 = vor.u32 %v3625_v55, %v3621_v46  ;;  %v3593_v44 = vrot.slane %v3592_v43, 4  ;;  %v3608_v23 = vsel %vm8157_vm13, %v3603_v5, %v3607_v25  ;;  %v4863_v24 = vrot.slane %v4861_v38, 4  ;;  %v4799_v57 = vld [vmem:[#allocation2 + $0x60] sm:$0xe] }
 0x368   : > { %6714 = vmatmul.mubr.msk.bf16.gmra.mrb[8].mxu1 %vm455_vm3, %v6367_v12  ;;  %v3574_v9 = vsel %vm8157_vm13, %v3569_v30, %v8470_v2  ;;  %v6361_v7 = vrot.slane %v4797_v59, 9  ;;  %v4871_v62 = vrot.slane %v8326_v15, 5  ;;  %v3629_v11 = vshll.u32 %v8551_v39, 16 }
 0x369   : > { %6717 = vmatprep.mubr.msk.bf16.mxu1 %vm455_vm3, %v6368_v0  ;;  %v6268_v14 = vcombine.low %v3574_v9, %v3584_v31  ;;  %v3598_v18 = vsel %vm8157_vm13, %v3593_v44, %v8484_v63  ;;  %v4865_v22 = vsel %vm8129_vm12, %v4863_v24, %v4864_v10  ;;  %v6362_v49 = vrot.slane %v4798_v45, 9  ;;  %v7035_v44 = vld [vmem:[#allocation2 + $0x18] sm:$0xff]  }
 0x36a   : > { %v6269_v54 = vcombine.low %v3598_v18, %v3608_v23  ;;  %v4872_v1 = vsel %vm8129_vm12, %v4870_v50, %v4871_v62  ;;  %v3616_v34 = vor.u32 %v3615_v26, %v3612_v17  ;;  %v3627_v2 = vrot.slane %v3626_v56, 4  ;;  %v3959_v23 = vld [vmem:[#allocation2 + $0x48] sm:$0xe]  ;;  %v9117_v62 = vld [vmem:[#allocation13_spill] sm:$0xff] }
 0x36b   : > { %v4862_v15 = vsel %vm8129_vm12, %v6361_v7, %v4861_v38  ;;  %v4869_v32 = vsel %vm8129_vm12, %v6362_v49, %v4868_v19  ;;  %v4875_v63 = vrot.slane %v9116_v4, 5  ;;  %v3631_v55 = vrot.slane %v3629_v11, 5  ;;  %v7123_v7 = vld [vmem:[#allocation2 + $0xc] sm:$0xf]  ;;  %v7040_v49 = vld [vmem:[#allocation2 + $0x24] sm:$0xff]  }
 0x36c   : > { %6628 = vmatmul.mubr.msk.bf16.gmra.mrb[32].mxu0 %vm455_vm3, %v6268_v14  ;;  %v6369_v33 = vcombine.low %v4862_v15, %v4865_v22  ;;  %v4010_v43 = vrot.slane %v8358_v40, 5  ;;  %v4013_v5 = vrot.slane %v8434_v51, 5  ;;  %v6370_v25 = vcombine.low %v4869_v32, %v4872_v1  ;;  %v9118_v11 = vld [vmem:[#allocation12_spill] sm:$0xff] }
 0x36d   : > { %6631 = vmatprep.mubr.msk.bf16.mxu0 %vm455_vm3, %v6269_v54  ;;  %v4878_v12 = vrot.slane %v8355_v6, 5  ;;  %v3617_v38 = vrot.slane %v3616_v34, 4  ;;  %v3632_v19 = vsel %vm8157_vm13, %v3627_v2, %v3631_v55  ;;  %v6301_v0 = vrot.slane %v3957_v58, 9  ;;  %v5251_v54 = vld [vmem:[#allocation2 + $0x18] sm:$0xf]  ;;  %v7041_v34 = vld [vmem:[#allocation2 + $0x30] sm:$0xff]  }
 0x36e   : > { %v4012_v30 = vrot.slane %v4010_v43, 4  ;;  %v4877_v31 = vrot.slane %v4875_v63, 4  ;;  %v6363_v45 = vrot.slane %v4799_v57, 9  ;;  %v6280_v26 = vcombine.low %v8338_v36, %v8377_v41  ;;  %v8626_v2 = vld [vmem:[#allocation2 + $0x1c] sm:$0xf]  ;;  %v9119_v55 = vld [vmem:[#allocation16_spill] sm:$0xff] }
 0x36f   : > { %v3622_v59 = vsel %vm8157_vm13, %v3617_v38, %v3621_v46  ;;  %v8587_v51 = vsel %vm8129_vm12, %v6301_v0, %v4010_v43  ;;  %v4024_v24 = vrot.slane %v8438_v60, 5  ;;  %v4027_v9 = vrot.slane %v8493_v3, 5  ;;  %v8616_v3 = vld [vmem:[%s9061_s3 + $0x40] sm:$0xff]   ;;  %v9120_v43 = vld [vmem:[#allocation14_spill] sm:$0xff]  ;;  %v8652_v57 = vld [vmem:[#allocation2 + $0x34] sm:$0xf] }
 0x370   : > { %6718 = vmatmul.mubr.msk.bf16.gmra.mrb[12].mxu1 %vm455_vm3, %v6369_v33  ;;  %v8591_v6 = vsel %vm8129_vm12, %v4012_v30, %v4013_v5  ;;  %v6270_v10 = vcombine.low %v3622_v59, %v3632_v19  ;;  %v4879_v50 = vsel %vm8129_vm12, %v4877_v31, %v4878_v12  ;;  %v4876_v46 = vsel %vm8129_vm12, %v6363_v45, %v4875_v63  ;;  %v5254_v12 = vld [vmem:[#allocation2 + $0x24] sm:$0xf]  ;;  %v8650_v38 = vld [vmem:[#allocation2 + $0x20] sm:$0x1]  ;;  %v3953_v30 = vld [vmem:[#allocation2] sm:$0xe] }
 0x371   : > { %6721 = vmatprep.mubr.msk.bf16.mxu1 %vm455_vm3, %v6370_v25  ;;  %v6309_v17 = vcombine.low %v8587_v51, %v8591_v6  ;;  %v6371_v56 = vcombine.low %v4876_v46, %v4879_v50  ;;  %v6281_v36 = vcombine.low %v7123_v7, %v8099_v47  ;;  %v6282_v14 = vcombine.low %v9118_v11, %v9117_v62  ;;  %v7044_v0 = vld [vmem:[#allocation2 + $0x3c] sm:$0xff]  }
 0x372   : > { %v6303_v18 = vrot.slane %v3959_v23, 9  ;;  %v4026_v22 = vrot.slane %v4024_v24, 4  ;;  %v5276_v32 = vshrl.u32 %v5251_v54, 16  ;;  %v5279_v4 = vshll.u32 %v5251_v54, 16  ;;  %v3955_v54 = vld [vmem:[#allocation2 + $0x18] sm:$0xe] }
 0x373   : > { %v3982_v63 = vrot.slane %v8377_v41, 5  ;;  %v5285_v58 = vshll.u32 %v8626_v2, 16  ;;  %v5289_v33 = vshrl.u32 %v8626_v2, 16  ;;  %v6283_v5 = vcombine.low %v9120_v43, %v9119_v55 }
 0x374   : > { %6632 = vmatmul.mubr.msk.bf16.gmra.mrb[36].mxu0 %vm455_vm3, %v6270_v10  ;;  %v8620_v47 = vsel %vm8129_vm12, %v6303_v18, %v4024_v24  ;;  %v8624_v1 = vsel %vm8129_vm12, %v4026_v22, %v4027_v9  ;;  %v6284_v25 = vcombine.low %v8259_v29, %v8358_v40  ;;  %v5278_v41 = vrot.slane %v5276_v32, 4  ;;  %v7045_v29 = vld [vmem:[#allocation2 + $0x48] sm:$0xff]  }
 0x375   : > { %6637 = vmatprep.mubr.msk.bf16.mxu0 %vm455_vm3, %v6280_v26  ;;  %v6311_v15 = vcombine.low %v8620_v47, %v8624_v1  ;;  %v5281_v19 = vrot.slane %v5279_v4, 5  ;;  %v3984_v31 = vrot.slane %v3982_v63, 4  ;;  %v8655_v59 = vrot.slane %v5285_v58, 5  ;;  %v5636_v1 = vld [vmem:[#allocation2 + $0x18] sm:$0xe] }
 0x376   : > { %v5291_v10 = vrot.slane %v5289_v33, 4  ;;  %v5300_v40 = vshrl.u32 %v5254_v12, 16  ;;  %v5303_v45 = vshll.u32 %v5254_v12, 16  ;;  %v3985_v46 = vrot.slane %v8373_v48, 5 }
 0x377   : > { %v5337_v23 = vshrl.u32 %v8652_v57, 16  ;;  %v6285_v24 = vcombine.low %v8417_v52, %v8425_v53  ;;  %v5282_v9 = vor.u32 %v5281_v19, %v5278_v41  ;;  %v3996_v7 = vrot.slane %v9117_v62, 5  ;;  %v8680_v41 = vld [vmem:[#allocation2 + $0x38] sm:$0x1] }
 0x378   : > { %6722 = vmatmul.mubr.msk.bf16.gmra.mrb[0].mxu1 %vm455_vm3, %v6371_v56  ;;  %v5295_v56 = vshll.u32 %v8650_v38, 16  ;;  %v6286_v48 = vcombine.low %v8459_v35, %v8438_v60  ;;  %v6297_v18 = vrot.slane %v3953_v30, 9  ;;  %v3986_v22 = vsel %vm8129_vm12, %v3984_v31, %v3985_v46  ;;  %v7048_v19 = vld [vmem:[#allocation2 + $0x54] sm:$0xff]  }
 0x379   : > { %6727 = vmatprep.mubr.msk.bf16.mxu1 %vm455_vm3, %v7035_v44  ;;  %v5333_v44 = vshll.u32 %v8652_v57, 16  ;;  %v5302_v32 = vrot.slane %v5300_v40, 4  ;;  %v5305_v52 = vrot.slane %v5303_v45, 5  ;;  %v5283_v60 = vrot.slane %v5282_v9, 4  ;;  %v7049_v40 = vld [vmem:[#allocation2 + $0x60] sm:$0xff]  }
 0x37a   : > { %v5297_v35 = vrot.slane %v5295_v56, 5  ;;  %v3998_v12 = vrot.slane %v3996_v7, 4  ;;  %v3983_v30 = vsel %vm8129_vm12, %v6297_v18, %v3982_v63  ;;  %v8695_v56 = vld [vmem:[#allocation2 + $0x4c] sm:$0xf] }
 0x37b   : > { %v8677_v43 = vrot.slane %v5333_v44, 5  ;;  %v6305_v45 = vcombine.low %v3983_v30, %v3986_v22  ;;  %v5288_v9 = vsel %vm8157_vm13, %v5283_v60, %v8655_v59  ;;  %v5263_v22 = vld [vmem:[#allocation2 + $0x48] sm:$0xf]  ;;  %v8716_v60 = vld [vmem:[#allocation2 + $0x44] sm:$0x1]  ;;  %v7051_v30 = vld [vmem:[#allocation2 + $0x6c] sm:$0xff]  }
 0x37c   : > { %6638 = vmatmul.mubr.msk.bf16.vlgmr.msra.gmra.mrb[24].mxu0 %vm455_vm3, %v6281_v36  ;;  %v7125_v36 = vld [vmem:[#allocation2 + $0x20] sm:$0x1] }
 0x37d   : > { %6641 = vmatprep.mubr.msk.bf16.mxu0 %vm455_vm3, %v6282_v14  ;;  %6654 = vmatpush3.bf16.msra.mxu0 %v8475_v13  ;;  %v8631_v13 = vld [vmem:[%s9061_s3 + $0x18] sm:$0xff]   ;;  %v3999_v11 = vrot.slane %v7125_v36, 5  ;;  %v5257_v14 = vld [vmem:[#allocation2 + $0x30] sm:$0xf] }
 0x37e   : > { %6671 = vmatprep.subr.bf16.mxu0 %v8631_v13  ;;  %v5324_v58 = vshrl.u32 %v5257_v14, 16  ;;  %v5327_v33 = vshll.u32 %v5257_v14, 16 }
 0x380   : > { %6728 = vmatmul.mubr.msk.bf16.vlgmr.msra.gmra.mrb[4].mxu1 %vm455_vm3, %v7040_v49  ;;  %v5292_v49 = vor.u32 %v5291_v10, %v8655_v59  ;;  %v5329_v63 = vrot.slane %v5327_v33, 5 }
 0x381   : > { %6744 = vmatpush3.bf16.msra.mxu1 %v8498_v20  ;;  %6731 = vmatprep.mubr.msk.bf16.mxu1 %vm455_vm3, %v7041_v34  ;;  %v8647_v20 = vld [vmem:[#allocation2 + $0x28] sm:$0xf]  ;;  %v8673_v34 = vld [vmem:[#allocation2 + $0x2c] sm:$0x1] }
 0x382   : > { %6761 = vmatprep.subr.bf16.mxu1 %v8616_v3  ;;  %v5309_v50 = vshll.u32 %v8647_v20, 16  ;;  %v5313_v26 = vshrl.u32 %v8647_v20, 16  ;;  %v5293_v31 = vrot.slane %v5292_v49, 4  ;;  %v5319_v10 = vshll.u32 %v8673_v34, 16 }
 0x383   : > { %v5381_v49 = vshll.u32 %v8695_v56, 16 }
 0x384   : > { %6642 = vmatmul.mubr.msk.bf16.gmra.mrb[28].mxu0 %vm455_vm3, %v6283_v5  ;;  %v8675_v4 = vrot.slane %v5309_v50, 5  ;;  %v5315_v62 = vrot.slane %v5313_v26, 4  ;;  %v5339_v5 = vrot.slane %v5337_v23, 4  ;;  %v5306_v26 = vor.u32 %v5305_v52, %v5302_v32 }
 0x385   : > { %6645 = vmatprep.mubr.msk.bf16.mxu0 %vm455_vm3, %v6284_v25  ;;  %v6299_v25 = vrot.slane %v3955_v54, 9  ;;  %v5343_v23 = vshll.u32 %v8680_v41, 16  ;;  %v5321_v18 = vrot.slane %v5319_v10, 5  ;;  %v5385_v54 = vshrl.u32 %v8695_v56, 16 }
 0x386   : > { %v5316_v46 = vor.u32 %v5315_v62, %v8675_v4  ;;  %v5340_v44 = vor.u32 %v5339_v5, %v8677_v43  ;;  %v5307_v32 = vrot.slane %v5306_v26, 4  ;;  %v4003_v5 = vrot.slane %v9119_v55, 5 }
 0x387   : > { %v8692_v50 = vsel %vm8129_vm12, %v6299_v25, %v3996_v7  ;;  %v8706_v7 = vsel %vm8129_vm12, %v3998_v12, %v3999_v11  ;;  %v5345_v33 = vrot.slane %v5343_v23, 5  ;;  %v5372_v12 = vshrl.u32 %v5263_v22, 16 }
 0x388   : > { %6732 = vmatmul.mubr.msk.bf16.gmra.mrb[8].mxu1 %vm455_vm3, %v7044_v0  ;;  %v6287_v0 = vcombine.low %v8519_v37, %v8486_v16  ;;  %v5326_v37 = vrot.slane %v5324_v58, 4  ;;  %v5317_v52 = vrot.slane %v5316_v46, 4  ;;  %v5341_v11 = vrot.slane %v5340_v44, 4 }
 0x389   : > { %6735 = vmatprep.mubr.msk.bf16.mxu1 %vm455_vm3, %v7045_v29  ;;  %v8688_v29 = vld [vmem:[#allocation2 + $0x40] sm:$0xf]  ;;  %v6307_v10 = vcombine.low %v8692_v50, %v8706_v7  ;;  %v8725_v26 = vrot.slane %v5381_v49, 5  ;;  %v5387_v55 = vrot.slane %v5385_v54, 4  ;;  %v4005_v23 = vrot.slane %v4003_v5, 4 }
 0x38a   : > { %v5357_v36 = vshll.u32 %v8688_v29, 16  ;;  %v5361_v14 = vshrl.u32 %v8688_v29, 16  ;;  %v5330_v58 = vor.u32 %v5329_v63, %v5326_v37  ;;  %v5322_v46 = vsel %vm8157_vm13, %v5317_v52, %v5321_v18  ;;  %v3956_v37 = vld [vmem:[#allocation2 + $0x24] sm:$0xe] }
 0x38b   : > { %v5346_v50 = vsel %vm8157_vm13, %v5341_v11, %v5345_v33  ;;  %v5374_v7 = vrot.slane %v5372_v12, 4  ;;  %v6300_v18 = vrot.slane %v3956_v37, 9  ;;  %v5388_v54 = vor.u32 %v5387_v55, %v8725_v26  ;;  %v8748_v11 = vld [vmem:[#allocation2 + $0x64] sm:$0xf] }
 0x38c   : > { %6646 = vmatmul.mubr.msk.bf16.gmra.mrb[32].mxu0 %vm455_vm3, %v6285_v24  ;;  %v5260_v24 = vld [vmem:[#allocation2 + $0x3c] sm:$0xf]  ;;  %v5363_v25 = vrot.slane %v5361_v14, 4  ;;  %v5331_v44 = vrot.slane %v5330_v58, 4 }
 0x38d   : > { %6649 = vmatprep.mubr.msk.bf16.mxu0 %vm455_vm3, %v6286_v48  ;;  %v5298_v48 = vsel %vm8157_vm13, %v5293_v31, %v5297_v35  ;;  %v5348_v59 = vshrl.u32 %v5260_v24, 16  ;;  %v5351_v62 = vshll.u32 %v5260_v24, 16  ;;  %v8718_v35 = vrot.slane %v5357_v36, 5 }
 0x38e   : > { %v6398_v31 = vcombine.low %v5288_v9, %v5298_v48  ;;  %v5367_v24 = vshll.u32 %v8716_v60, 16  ;;  %v8736_v9 = vld [vmem:[#allocation2 + $0x58] sm:$0xf] }
 0x38f   : > { %v5350_v63 = vrot.slane %v5348_v59, 4  ;;  %v5266_v59 = vld [vmem:[#allocation2 + $0x54] sm:$0xf]  ;;  %v5409_v58 = vshrl.u32 %v8736_v9, 16 }
 0x390   : > { %6736 = vmatmul.mubr.msk.bf16.gmra.mrb[12].mxu1 %vm455_vm3, %v7048_v19  ;;  %v5375_v19 = vshll.u32 %v5263_v22, 16  ;;  %v9121_v22 = vld [vmem:[#allocation15_spill] sm:$0xff]  ;;  %v5396_v37 = vshrl.u32 %v5266_v59, 16  ;;  %v5399_v28 = vshll.u32 %v5266_v59, 16 }
 0x391   : > { %6739 = vmatprep.mubr.msk.bf16.mxu1 %vm455_vm3, %v7049_v40  ;;  %v8723_v40 = vld [vmem:[#allocation2 + $0x50] sm:$0x1]  ;;  %v4006_v49 = vrot.slane %v9121_v22, 5 }
 0x392   : > { %v5377_v36 = vrot.slane %v5375_v19, 5  ;;  %v5391_v14 = vshll.u32 %v8723_v40, 16  ;;  %v5369_v19 = vrot.slane %v5367_v24, 5  ;;  %v5272_v24 = vld [vmem:[#allocation2 + $0x6c] sm:$0xf]  ;;  %v5398_v22 = vrot.slane %v5396_v37, 4 }
 0x393   : > { %v4007_v12 = vsel %vm8129_vm12, %v4005_v23, %v4006_v49  ;;  %v5447_v59 = vshll.u32 %v5272_v24, 16 }
 0x394   : > { %6650 = vmatmul.mubr.msk.bf16.gmra.mrb[36].mxu0 %vm455_vm3, %v6287_v0  ;;  %v5312_v0 = vsel %vm8157_vm13, %v5307_v32, %v8675_v4  ;;  %v5364_v4 = vor.u32 %v5363_v25, %v8718_v35  ;;  %v5336_v32 = vsel %vm8157_vm13, %v5331_v44, %v8677_v43  ;;  %v4004_v25 = vsel %vm8129_vm12, %v6300_v18, %v4003_v5 }
 0x395   : > { %6655 = vmatprep.mubr.msk.bf16.mxu0 %vm455_vm3, %v6305_v45  ;;  %v5353_v45 = vrot.slane %v5351_v62, 5  ;;  %v6399_v48 = vcombine.low %v5312_v0, %v5322_v46  ;;  %v5405_v62 = vshll.u32 %v8736_v9, 16  ;;  %v6400_v33 = vcombine.low %v5336_v32, %v5346_v50  ;;  %v5269_v46 = vld [vmem:[#allocation2 + $0x60] sm:$0xf] }
 0x396   : > { %v5365_v43 = vrot.slane %v5364_v4, 4  ;;  %v5393_v55 = vrot.slane %v5391_v14, 5  ;;  %v4017_v0 = vrot.slane %v8425_v53, 5  ;;  %v5389_v5 = vrot.slane %v5388_v54, 4  ;;  %v8776_v14 = vld [vmem:[#allocation2 + $0x5c] sm:$0x1] }
 0x397   : > { %v5354_v52 = vor.u32 %v5353_v45, %v5350_v63  ;;  %v5429_v63 = vshll.u32 %v8748_v11, 16  ;;  %v5433_v45 = vshrl.u32 %v8748_v11, 16  ;;  %v8765_v61 = vrot.slane %v5405_v62, 5  ;;  %v8782_v54 = vld [vmem:[#allocation2 + $0x70] sm:$0xf] }
 0x398   : > { %6740 = vmatmul.mubr.msk.bf16.gmra.mrb[0].mxu1 %vm455_vm3, %v7051_v30  ;;  %v8754_v30 = vld [vmem:[#allocation2 + $0x3c] sm:$0xe]  ;;  %v6308_v50 = vcombine.low %v4004_v25, %v4007_v12  ;;  %v5420_v23 = vshrl.u32 %v5269_v46, 16  ;;  %v5370_v4 = vsel %vm8157_vm13, %v5365_v43, %v5369_v19  ;;  %v5394_v18 = vsel %vm8157_vm13, %v5389_v5, %v5393_v55 }
 0x399   : > { %6745 = vmatprep.mubr.msk.bf16.mxu1 %vm455_vm3, %v6398_v31  ;;  %v5378_v31 = vor.u32 %v5377_v36, %v5374_v7  ;;  %v5355_v44 = vrot.slane %v5354_v52, 4  ;;  %v6302_v53 = vrot.slane %v8754_v30, 9  ;;  %v4019_v36 = vrot.slane %v4017_v0, 4 }
 0x39a   : > { %v5435_v49 = vrot.slane %v5433_v45, 4  ;;  %v5401_v32 = vrot.slane %v5399_v28, 5  ;;  %v5444_v52 = vshrl.u32 %v5272_v24, 16  ;;  %v4020_v62 = vrot.slane %v8440_v42, 5 }
 0x39b   : > { %v5379_v7 = vrot.slane %v5378_v31, 4  ;;  %v5415_v19 = vshll.u32 %v8776_v14, 16  ;;  %v5453_v30 = vshll.u32 %v8782_v54, 16  ;;  %v5457_v43 = vshrl.u32 %v8782_v54, 16 }
 0x39c   : > { %6656 = vmatmul.mubr.msk.bf16.vlgmr.msra.gmra.mrb[24].mxu0 %vm455_vm3, %v6306_v21  ;;  %v5411_v21 = vrot.slane %v5409_v58, 4  ;;  %v5422_v58 = vrot.slane %v5420_v23, 4  ;;  %v4021_v55 = vsel %vm8129_vm12, %v4019_v36, %v4020_v62  ;;  %v5402_v5 = vor.u32 %v5401_v32, %v5398_v22 }
 0x39d   : > { %6659 = vmatprep.mubr.msk.bf16.mxu0 %vm455_vm3, %v6307_v10  ;;  %6672 = vmatpush3.bf16.msra.mxu0 %v8631_v13  ;;  %v5423_v10 = vshll.u32 %v5269_v46, 16  ;;  %v5360_v13 = vsel %vm8157_vm13, %v5355_v44, %v8718_v35  ;;  %v5384_v12 = vsel %vm8157_vm13, %v5379_v7, %v8725_v26  ;;  %v5446_v26 = vrot.slane %v5444_v52, 4 }
 0x39e   : > { %v5412_v35 = vor.u32 %v5411_v21, %v8765_v61  ;;  %v6401_v42 = vcombine.low %v5360_v13, %v5370_v4  ;;  %v6402_v31 = vcombine.low %v5384_v12, %v5394_v18  ;;  %v4031_v28 = vrot.slane %v8486_v16, 5  ;;  %v8802_v21 = vld [vmem:[#allocation2 + $0x74] sm:$0x1] }
 0x39f   : > { %v4018_v51 = vsel %vm8129_vm12, %v6302_v53, %v4017_v0  ;;  %v5417_v6 = vrot.slane %v5415_v19, 5  ;;  %v5403_v24 = vrot.slane %v5402_v5, 4  ;;  %v5463_v7 = vshll.u32 %v8802_v21, 16  ;;  %v3960_v53 = vld [vmem:[#allocation2 + $0x54] sm:$0xe] }
 0x3a0   : > { %6746 = vmatmul.mubr.msk.bf16.vlgmr.msra.gmra.mrb[4].mxu1 %vm455_vm3, %v6399_v48  ;;  %v8778_v48 = vld [vmem:[#allocation2 + $0x68] sm:$0x1]  ;;  %v5413_v37 = vrot.slane %v5412_v35, 4  ;;  %v6310_v23 = vcombine.low %v4018_v51, %v4021_v55  ;;  %v4033_v18 = vrot.slane %v4031_v28, 4  ;;  %v5670_v22 = vrot.slane %v8626_v2, 5 }
 0x3a1   : > { %6762 = vmatpush3.bf16.msra.mxu1 %v8616_v3  ;;  %6749 = vmatprep.mubr.msk.bf16.mxu1 %vm455_vm3, %v6400_v33  ;;  %v5431_v3 = vrot.slane %v5429_v63, 5  ;;  %v5425_v33 = vrot.slane %v5423_v10, 5  ;;  %v5439_v25 = vshll.u32 %v8778_v48, 16  ;;  %v5449_v63 = vrot.slane %v5447_v59, 5  ;;  %v7055_v51 = vld [vmem:[#allocation2 + $0x24] sm:$0xff]  }
 0x3a2   : > { %v5418_v13 = vsel %vm8157_vm13, %v5413_v37, %v5417_v6  ;;  %v5408_v0 = vsel %vm8157_vm13, %v5403_v24, %v8765_v61  ;;  %v4034_v52 = vrot.slane %v8551_v39, 5  ;;  %v5465_v62 = vrot.slane %v5463_v7, 5  ;;  %v5639_v24 = vld [vmem:[#allocation2 + $0x3c] sm:$0xe]  ;;  %v5640_v7 = vld [vmem:[#allocation2 + $0x48] sm:$0xe] }
 0x3a3   : > { %v5436_v46 = vor.u32 %v5435_v49, %v5431_v3  ;;  %v5426_v45 = vor.u32 %v5425_v33, %v5422_v58  ;;  %v5441_v44 = vrot.slane %v5439_v25, 5  ;;  %v5450_v4 = vor.u32 %v5449_v63, %v5446_v26  ;;  %v5638_v26 = vld [vmem:[#allocation2 + $0x30] sm:$0xe] }
 0x3a4   : > { %6660 = vmatmul.mubr.msk.bf16.gmra.mrb[28].mxu0 %vm455_vm3, %v6308_v50  ;;  %v5459_v50 = vrot.slane %v5457_v43, 4  ;;  %v6403_v32 = vcombine.low %v5408_v0, %v5418_v13  ;;  %v6304_v58 = vrot.slane %v3960_v53, 9  ;;  %v4035_v61 = vsel %vm8129_vm12, %v4033_v18, %v4034_v52  ;;  %v7057_v0 = vld [vmem:[#allocation2 + $0x3c] sm:$0xff]  }
 0x3a5   : > { %6663 = vmatprep.mubr.msk.bf16.mxu0 %vm455_vm3, %v6309_v17  ;;  %v5455_v17 = vrot.slane %v5453_v30, 5  ;;  %v5437_v10 = vrot.slane %v5436_v46, 4  ;;  %v5427_v16 = vrot.slane %v5426_v45, 4  ;;  %v5451_v59 = vrot.slane %v5450_v4, 4  ;;  %v7053_v30 = vld [vmem:[#allocation2 + $0xc] sm:$0xff]   ;;  %v7054_v45 = vld [vmem:[#allocation2 + $0x18] sm:$0xff]  }
 0x3a6   : > { %v5672_v33 = vrot.slane %v5670_v22, 4  ;;  %v5677_v19 = vrot.slane %v8647_v20, 5  ;;  %v6415_v43 = vrot.slane %v5636_v1, 9  ;;  %v5684_v55 = vrot.slane %v8652_v57, 5  ;;  %v5637_v20 = vld [vmem:[#allocation2 + $0x24] sm:$0xe] }
 0x3a7   : > { %v5442_v36 = vsel %vm8157_vm13, %v5437_v10, %v5441_v44  ;;  %v5460_v49 = vor.u32 %v5459_v50, %v5455_v17  ;;  %v5432_v35 = vsel %vm8157_vm13, %v5427_v16, %v5431_v3  ;;  %v5673_v3 = vrot.slane %v8650_v38, 5 }
 0x3a8   : > { %6750 = vmatmul.mubr.msk.bf16.gmra.mrb[8].mxu1 %vm455_vm3, %v6401_v42  ;;  %v6404_v2 = vcombine.low %v5432_v35, %v5442_v36  ;;  %v5456_v25 = vsel %vm8157_vm13, %v5451_v59, %v5455_v17  ;;  %v5671_v38 = vsel %vm8129_vm12, %v6415_v43, %v5670_v22  ;;  %v5679_v27 = vrot.slane %v5677_v19, 4  ;;  %v7056_v36 = vld [vmem:[#allocation2 + $0x30] sm:$0xff]  }
 0x3a9   : > { %6753 = vmatprep.mubr.msk.bf16.mxu1 %vm455_vm3, %v6402_v31  ;;  %v5461_v47 = vrot.slane %v5460_v49, 4  ;;  %v5674_v42 = vsel %vm8129_vm12, %v5672_v33, %v5673_v3  ;;  %v5687_v5 = vrot.slane %v8680_v41, 5  ;;  %v5680_v37 = vrot.slane %v8673_v34, 5  ;;  %v7058_v33 = vld [vmem:[#allocation2 + $0x48] sm:$0xff]  }
 0x3aa   : > { %v6423_v46 = vcombine.low %v5671_v38, %v5674_v42  ;;  %v5686_v63 = vrot.slane %v5684_v55, 4  ;;  %v6416_v44 = vrot.slane %v5637_v20, 9  ;;  %v5691_v57 = vrot.slane %v8688_v29, 5 }
 0x3ab   : > { %v5466_v12 = vsel %vm8157_vm13, %v5461_v47, %v5465_v62  ;;  %v6417_v6 = vrot.slane %v5638_v26, 9  ;;  %v5701_v13 = vrot.slane %v8723_v40, 5  ;;  %v5694_v4 = vrot.slane %v8716_v60, 5 }
 0x3ac   : > { %6664 = vmatmul.mubr.msk.bf16.gmra.mrb[32].mxu0 %vm455_vm3, %v6310_v23  ;;  %v6405_v31 = vcombine.low %v5456_v25, %v5466_v12  ;;  %v5688_v17 = vsel %vm8129_vm12, %v5686_v63, %v5687_v5  ;;  %v5678_v41 = vsel %vm8129_vm12, %v6416_v44, %v5677_v19  ;;  %v5698_v23 = vrot.slane %v8695_v56, 5  ;;  %v5643_v25 = vld [vmem:[#allocation2 + $0x6c] sm:$0xe] }
 0x3ad   : > { %6667 = vmatprep.mubr.msk.bf16.mxu0 %vm455_vm3, %v6311_v15  ;;  %v4032_v15 = vsel %vm8129_vm12, %v6304_v58, %v4031_v28  ;;  %v5681_v28 = vsel %vm8129_vm12, %v5679_v27, %v5680_v37  ;;  %v5685_v50 = vsel %vm8129_vm12, %v6417_v6, %v5684_v55  ;;  %v5693_v29 = vrot.slane %v5691_v57, 4  ;;  %v5642_v58 = vld [vmem:[#allocation2 + $0x60] sm:$0xe] }
 0x3ae   : > { %v6312_v39 = vcombine.low %v4032_v15, %v4035_v61  ;;  %v6424_v34 = vcombine.low %v5678_v41, %v5681_v28  ;;  %v6425_v10 = vcombine.low %v5685_v50, %v5688_v17  ;;  %v5700_v16 = vrot.slane %v5698_v23, 4 }
 0x3af   : > { %v6418_v18 = vrot.slane %v5639_v24, 9  ;;  %v5695_v22 = vsel %vm8129_vm12, %v5693_v29, %v5694_v4  ;;  %v5705_v56 = vrot.slane %v8736_v9, 5  ;;  %v6419_v53 = vrot.slane %v5640_v7, 9 }
 0x3b0   : > { %6754 = vmatmul.mubr.msk.bf16.gmra.mrb[12].mxu1 %vm455_vm3, %v6403_v32  ;;  %v5702_v49 = vsel %vm8129_vm12, %v5700_v16, %v5701_v13  ;;  %v5712_v35 = vrot.slane %v8748_v11, 5  ;;  %v5715_v59 = vrot.slane %v8778_v48, 5  ;;  %v5708_v62 = vrot.slane %v8776_v14, 5 }
 0x3b1   : > { %6757 = vmatprep.mubr.msk.bf16.mxu1 %vm455_vm3, %v6404_v2  ;;  %v5692_v40 = vsel %vm8129_vm12, %v6418_v18, %v5691_v57  ;;  %v5699_v32 = vsel %vm8129_vm12, %v6419_v53, %v5698_v23  ;;  %v5707_v9 = vrot.slane %v5705_v56, 4  ;;  %v5641_v2 = vld [vmem:[#allocation2 + $0x54] sm:$0xe]  ;;  %v6421_v15 = vrot.slane %v5642_v58, 9 }
 0x3b2   : > { %v6426_v60 = vcombine.low %v5692_v40, %v5695_v22  ;;  %v6427_v52 = vcombine.low %v5699_v32, %v5702_v49  ;;  %v5714_v61 = vrot.slane %v5712_v35, 4  ;;  %v6420_v47 = vrot.slane %v5641_v2, 9 }
 0x3b3   : > { %v5709_v1 = vsel %vm8129_vm12, %v5707_v9, %v5708_v62  ;;  %v5719_v3 = vrot.slane %v8782_v54, 5  ;;  %v5713_v14 = vsel %vm8129_vm12, %v6421_v15, %v5712_v35  ;;  %v5722_v19 = vrot.slane %v8802_v21, 5 }
 0x3b4   : > { %6668 = vmatmul.mubr.msk.bf16.gmra.mrb[36].mxu0 %vm455_vm3, %v6312_v39  ;;  %v5716_v11 = vsel %vm8129_vm12, %v5714_v61, %v5715_v59  ;;  %v5706_v48 = vsel %vm8129_vm12, %v6420_v47, %v5705_v56 }
 0x3b5   : > { %6673 = vmatprep.mubr.msk.bf16.mxu0 %vm455_vm3, %v7053_v30  ;;  %v6428_v39 = vcombine.low %v5706_v48, %v5709_v1  ;;  %v6429_v12 = vcombine.low %v5713_v14, %v5716_v11  ;;  %v6422_v30 = vrot.slane %v5643_v25, 9  ;;  %v5721_v43 = vrot.slane %v5719_v3, 4 }
 0x3b7   : > { %v5723_v42 = vsel %vm8129_vm12, %v5721_v43, %v5722_v19  ;;  %v5720_v54 = vsel %vm8129_vm12, %v6422_v30, %v5719_v3 }
 0x3b8   : > { %6758 = vmatmul.mubr.msk.bf16.gmra.mrb[0].mxu1 %vm455_vm3, %v6405_v31  ;;  %v6430_v31 = vcombine.low %v5720_v54, %v5723_v42 }
 0x3b9   : > { %6763 = vmatprep.mubr.msk.bf16.mxu1 %vm455_vm3, %v6423_v46 }
 0x3bc   : > { %6674 = vmatmul.mubr.msk.bf16.vlgmr.msra.gmra.mrb[24].mxu0 %vm455_vm3, %v7054_v45 }
 0x3bd   : > { %6677 = vmatprep.mubr.msk.bf16.mxu0 %vm455_vm3, %v7055_v51 }
 0x3c0   : > { %6764 = vmatmul.mubr.msk.bf16.vlgmr.msra.gmra.mrb[4].mxu1 %vm455_vm3, %v6424_v34 }
 0x3c1   : > { %6767 = vmatprep.mubr.msk.bf16.mxu1 %vm455_vm3, %v6425_v10 }
 0x3c4   : > { %6678 = vmatmul.mubr.msk.bf16.gmra.mrb[28].mxu0 %vm455_vm3, %v7056_v36 }
 0x3c5   : > { %6681 = vmatprep.mubr.msk.bf16.mxu0 %vm455_vm3, %v7057_v0 }
 0x3c8   : > { %6768 = vmatmul.mubr.msk.bf16.gmra.mrb[8].mxu1 %vm455_vm3, %v6426_v60 }
 0x3c9   : > { %6771 = vmatprep.mubr.msk.bf16.mxu1 %vm455_vm3, %v6427_v52 }
 0x3cc   : > { %6682 = vmatmul.mubr.msk.bf16.gmra.mrb[32].mxu0 %vm455_vm3, %v7058_v33 }
 0x3d0   : > { %6772 = vmatmul.mubr.msk.bf16.gmra.mrb[12].mxu1 %vm455_vm3, %v6428_v39 }
 0x3d1   : > { %6775 = vmatprep.mubr.msk.bf16.mxu1 %vm455_vm3, %v6429_v12 }
 0x3d8   : > { %6776 = vmatmul.mubr.msk.bf16.gmra.mrb[0].mxu1 %vm455_vm3, %v6430_v31 }
 0x487   : > { %v8897_v38 = vpop.f32.mrb[36].mxu0 }
 0x488   : > { %v8899_v55 = vpop.f32.mrb[37].mxu0 }
 0x489   : > { %v8901_v21 = vpop.f32.mrb[38].mxu0 }
 0x48a   : > { %v8903_v46 = vpop.f32.mrb[39].mxu0 }
 0x48f   : > { %v6675_v27 = vpop.f32.mrb[24].mxu0 }
 0x490   : > { %v4328_v20 = vpop.f32.mrb[25].mxu0 }
 0x491   : > { %v6676_v5 = vpop.f32.mrb[26].mxu0 }
 0x492   : > { %v4331_v37 = vpop.f32.mrb[27].mxu0 }
 0x493   : > { %v6765_v26 = vpop.f32.mrb[4].mxu1 }
 0x494   : > { %v6781_v63 = vadd.f32 %v6765_v26, %v6675_v27  ;;  %v5814_v45 = vpop.f32.mrb[5].mxu1 }
 0x495   : > { %v6782_v44 = vadd.f32 %v5814_v45, %v4328_v20  ;;  %v6766_v28 = vpop.f32.mrb[6].mxu1 }
 0x496   : > { %v8911_v57 = vadd.f32 %v6781_v63, %v8908_v8  ;;  %v6783_v51 = vadd.f32 %v6766_v28, %v6676_v5  ;;  %v5817_v6 = vpop.f32.mrb[7].mxu1 }
 0x497   : > { %v8914_v17 = vadd.f32 %v6782_v44, %v8908_v8  ;;  %v6784_v41 = vadd.f32 %v5817_v6, %v4331_v37  ;;  %v6679_v23 = vpop.f32.mrb[28].mxu0 }
 0x498   : > { %v5918_v34 = vsub.f32 0.0, %v8911_v57  ;;  %v8918_v50 = vadd.f32 %v6783_v51, %v8908_v8  ;;  %v4344_v24 = vpop.f32.mrb[29].mxu0 }
 0x499   : > { %v5916_v10 = vsub.f32 0.0, %v8914_v17  ;;  %v8922_v29 = vadd.f32 %v6784_v41, %v8908_v8  ;;  %v6680_v4 = vpop.f32.mrb[30].mxu0 }
 0x49a   : > { %v5936_v13 = vmul.f32 1.442695, %v5918_v34  ;;  %v5919_v16 = vsub.f32 0.0, %v8918_v50  ;;  %v4347_v18 = vpop.f32.mrb[31].mxu0 }
 0x49b   : > { %v5932_v7 = vmul.f32 1.442695, %v5916_v10  ;;  %v5917_v36 = vsub.f32 0.0, %v8922_v29  ;;  %v6769_v22 = vpop.f32.mrb[8].mxu1 }
 0x49c   : > { %v6785_v56 = vadd.f32 %v6769_v22, %v6679_v23  ;;  %v5830_v0 = vpop.f32.mrb[9].mxu1  ;;  %v5938_v35 = vmul.f32 1.442695, %v5919_v16 }
 0x49d   : > { %7059 = vpow2.f32 %v5932_v7  ;;  %v5934_v53 = vmul.f32 1.442695, %v5917_v36  ;;  %v6786_v49 = vadd.f32 %v5830_v0, %v4344_v24  ;;  %v6770_v40 = vpop.f32.mrb[10].mxu1 }
 0x49e   : > { %7061 = vpow2.f32 %v5936_v13  ;;  %v6787_v60 = vadd.f32 %v6770_v40, %v6680_v4  ;;  %v5833_v32 = vpop.f32.mrb[11].mxu1  ;;  %v8934_v61 = vadd.f32 %v6785_v56, %v8908_v8 }
 0x49f   : > { %7063 = vpow2.f32 %v5934_v53  ;;  %v8927_v52 = vadd.f32 %v6786_v49, %v8908_v8  ;;  %v6788_v9 = vadd.f32 %v5833_v32, %v4347_v18  ;;  %v6683_v2 = vpop.f32.mrb[32].mxu0 }
 0x4a0   : > { %v4360_v58 = vpop.f32.mrb[33].mxu0  ;;  %7065 = vpow2.f32 %v5938_v35  ;;  %v5922_v25 = vsub.f32 0.0, %v8934_v61  ;;  %v8939_v43 = vadd.f32 %v6787_v60, %v8908_v8 }
 0x4a1   : > { %v5920_v59 = vsub.f32 0.0, %v8927_v52  ;;  %v8931_v62 = vadd.f32 %v6788_v9, %v8908_v8  ;;  %v6684_v33 = vpop.f32.mrb[34].mxu0 }
 0x4a2   : > { %v4363_v15 = vpop.f32.mrb[35].mxu0  ;;  %v5944_v37 = vmul.f32 1.442695, %v5922_v25  ;;  %v5923_v26 = vsub.f32 0.0, %v8939_v43 }
 0x4a3   : > { %v5940_v47 = vmul.f32 1.442695, %v5920_v59  ;;  %v5921_v1 = vsub.f32 0.0, %v8931_v62  ;;  %v6773_v11 = vpop.f32.mrb[12].mxu1 }
 0x4a4   : > { %v6789_v48 = vadd.f32 %v6773_v11, %v6683_v2  ;;  %v5846_v3 = vpop.f32.mrb[13].mxu1  ;;  %v5946_v24 = vmul.f32 1.442695, %v5923_v26 }
 0x4a5   : > { %v6790_v39 = vadd.f32 %v5846_v3, %v4360_v58  ;;  %v6774_v14 = vpop.f32.mrb[14].mxu1  ;;  %7067 = vpow2.f32 %v5940_v47  ;;  %v5942_v42 = vmul.f32 1.442695, %v5921_v1 }
 0x4a6   : > { %v6791_v12 = vadd.f32 %v6774_v14, %v6684_v33  ;;  %v5849_v19 = vpop.f32.mrb[15].mxu1  ;;  %v8954_v36 = vadd.f32 %v6789_v48, %v8908_v8 }
 0x4a7   : > { %v7060_v30 = vpop.eup %7059  ;;  %v6792_v54 = vadd.f32 %v5849_v19, %v4363_v15  ;;  %v8943_v63 = vadd.f32 %v6790_v39, %v8908_v8 }
 0x4a8   : > { %v7062_v31 = vpop.eup %7061  ;;  %v5964_v27 = vadd.f32 1.0, %v7060_v30  ;;  %v5926_v49 = vsub.f32 0.0, %v8954_v36 }
 0x4a9   : > { %v7064_v20 = vpop.eup %7063  ;;  %v5966_v44 = vadd.f32 1.0, %v7062_v31  ;;  %v5924_v13 = vsub.f32 0.0, %v8943_v63  ;;  %v8950_v4 = vadd.f32 %v6792_v54, %v8908_v8 }
 0x4aa   : > { %7069 = vrcp.f32 %v5964_v27  ;;  %v5965_v5 = vadd.f32 1.0, %v7064_v20  ;;  %v7066_v6 = vpop.eup %7065  ;;  %v5952_v2 = vmul.f32 1.442695, %v5926_v49 }
 0x4ab   : > { %7071 = vpow2.f32 %v5942_v42  ;;  %v6777_v45 = vpop.f32.mrb[0].mxu1  ;;  %v5967_v16 = vadd.f32 1.0, %v7066_v6  ;;  %v5925_v18 = vsub.f32 0.0, %v8950_v4 }
 0x4ac   : > { %7073 = vrcp.f32 %v5965_v5  ;;  %v6793_v28 = vadd.f32 %v6777_v45, %v8897_v38  ;;  %v5862_v51 = vpop.f32.mrb[1].mxu1 }
 0x4ad   : > { %v6794_v41 = vadd.f32 %v5862_v51, %v8899_v55  ;;  %v6778_v34 = vpop.f32.mrb[2].mxu1  ;;  %7075 = vpow2.f32 %v5944_v37  ;;  %v5948_v55 = vmul.f32 1.442695, %v5924_v13  ;;  %v5950_v40 = vmul.f32 1.442695, %v5925_v18 }
 0x4ae   : > { %v6795_v23 = vadd.f32 %v6778_v34, %v8901_v21  ;;  %v5865_v10 = vpop.f32.mrb[3].mxu1  ;;  %7077 = vrcp.f32 %v5966_v44  ;;  %v8974_v25 = vadd.f32 %v6793_v28, %v8908_v8 }
 0x4af   : > { %v6796_v7 = vadd.f32 %v5865_v10, %v8903_v46  ;;  %v7068_v38 = vpop.eup %7067  ;;  %7079 = vpow2.f32 %v5946_v24  ;;  %v8960_v46 = vadd.f32 %v6791_v12, %v8908_v8 }
 0x4b0   : > { %7081 = vrcp.f32 %v5967_v16  ;;  %v5968_v22 = vadd.f32 1.0, %v7068_v38  ;;  %v5930_v31 = vsub.f32 0.0, %v8974_v25 }
 0x4b1   : > { %7083 = vpow2.f32 %v5948_v55  ;;  %v5927_v59 = vsub.f32 0.0, %v8960_v46 }
 0x4b2   : > { %7085 = vrcp.f32 %v5968_v22  ;;  %v5960_v45 = vmul.f32 1.442695, %v5930_v31 }
 0x4b3   : > { %7087 = vpow2.f32 %v5950_v40  ;;  %v5954_v15 = vmul.f32 1.442695, %v5927_v59 }
 0x4b4   : > { %v7070_v21 = vpop.eup %7069 }
 0x4b5   : > { %v7072_v56 = vpop.eup %7071  ;;  %v5996_v0 = vmul.f32 %v7070_v21, %v8914_v17  ;;  %v8965_v17 = vadd.f32 %v6794_v41, %v8908_v8 }
 0x4b6   : > { %v7074_v53 = vpop.eup %7073  ;;  %v5969_v32 = vadd.f32 1.0, %v7072_v56 }
 0x4b7   : > { %6012 = vxpose.xlu0.b32.start [1/16] (narrow) %v5996_v0, 8  ;;  %v7076_v60 = vpop.eup %7075  ;;  %v5997_v35 = vmul.f32 %v7074_v53, %v8922_v29  ;;  %v5928_v11 = vsub.f32 0.0, %v8965_v17  ;;  %v8970_v29 = vadd.f32 %v6796_v7, %v8908_v8 }
 0x4b8   : > { %v7078_v9 = vpop.eup %7077  ;;  %v5970_v58 = vadd.f32 1.0, %v7076_v60  ;;  %7089 = vrcp.f32 %v5969_v32 }
 0x4b9   : > { %v7080_v33 = vpop.eup %7079  ;;  %v5998_v47 = vmul.f32 %v7078_v9, %v8911_v57  ;;  %7091 = vpow2.f32 %v5952_v2  ;;  %v5956_v57 = vmul.f32 1.442695, %v5928_v11  ;;  %v5929_v12 = vsub.f32 0.0, %v8970_v29 }
 0x4ba   : > { %v7082_v1 = vpop.eup %7081  ;;  %7093 = vrcp.f32 %v5970_v58  ;;  %v5971_v48 = vadd.f32 1.0, %v7080_v33 }
 0x4bb   : > { %6013 = vxpose.xlu0.b32.cont [2/16] (narrow) %v5997_v35, 8  ;;  %v7084_v3 = vpop.eup %7083  ;;  %v5999_v39 = vmul.f32 %v7082_v1, %v8918_v50  ;;  %7095 = vpow2.f32 %v5954_v15  ;;  %v5915_v50 = vadd.f32 %v6795_v23, %v8908_v8  ;;  %v5958_v27 = vmul.f32 1.442695, %v5929_v12 }
 0x4bc   : > { %v7086_v14 = vpop.eup %7085  ;;  %7097 = vrcp.f32 %v5971_v48  ;;  %v5972_v19 = vadd.f32 1.0, %v7084_v3 }
 0x4bd   : > { %v7088_v30 = vpop.eup %7087  ;;  %v6000_v42 = vmul.f32 %v7086_v14, %v8927_v52  ;;  %7099 = vpow2.f32 %v5956_v57  ;;  %v5931_v44 = vsub.f32 0.0, %v5915_v50 }
 0x4be   : > { %7101 = vrcp.f32 %v5972_v19  ;;  %v5973_v20 = vadd.f32 1.0, %v7088_v30 }
 0x4bf   : > { %6014 = vxpose.xlu0.b32.cont [3/16] (narrow) %v5998_v47, 8  ;;  %7103 = vpow2.f32 %v5958_v27  ;;  %v5962_v8 = vmul.f32 1.442695, %v5931_v44 }
 0x4c0   : > { %7105 = vrcp.f32 %v5973_v20 }
 0x4c1   : > { %7107 = vpow2.f32 %v5960_v45 }
 0x4c2   : > { %v7090_v54 = vpop.eup %7089 }
 0x4c3   : > { %6015 = vxpose.xlu0.b32.cont [4/16] (narrow) %v5999_v39, 8  ;;  %v7092_v5 = vpop.eup %7091  ;;  %v6001_v37 = vmul.f32 %v7090_v54, %v8931_v62 }
 0x4c4   : > { %v7094_v26 = vpop.eup %7093  ;;  %v5974_v28 = vadd.f32 1.0, %v7092_v5 }
 0x4c5   : > { %v7096_v52 = vpop.eup %7095  ;;  %v6002_v51 = vmul.f32 %v7094_v26, %v8934_v61 }
 0x4c6   : > { %v7098_v6 = vpop.eup %7097  ;;  %7109 = vrcp.f32 %v5974_v28  ;;  %v5975_v41 = vadd.f32 1.0, %v7096_v52 }
 0x4c7   : > { %6016 = vxpose.xlu0.b32.cont [5/16] (narrow) %v6000_v42, 8  ;;  %v7100_v34 = vpop.eup %7099  ;;  %v6003_v23 = vmul.f32 %v7098_v6, %v8939_v43  ;;  %7111 = vpow2.f32 %v5962_v8 }
 0x4c8   : > { %v7102_v62 = vpop.eup %7101  ;;  %7113 = vrcp.f32 %v5975_v41  ;;  %v5976_v10 = vadd.f32 1.0, %v7100_v34 }
 0x4c9   : > { %v7104_v24 = vpop.eup %7103  ;;  %v6004_v13 = vmul.f32 %v7102_v62, %v8943_v63 }
 0x4ca   : > { %v7106_v7 = vpop.eup %7105  ;;  %7115 = vrcp.f32 %v5976_v10  ;;  %v5977_v61 = vadd.f32 1.0, %v7104_v24 }
 0x4cb   : > { %6017 = vxpose.xlu0.b32.cont [6/16] (narrow) %v6001_v37, 8  ;;  %v7108_v16 = vpop.eup %7107  ;;  %v6005_v38 = vmul.f32 %v7106_v7, %v8950_v4 }
 0x4cc   : > { %v5978_v18 = vadd.f32 1.0, %v7108_v16  ;;  %7117 = vrcp.f32 %v5977_v61 }
 0x4ce   : > { %7119 = vrcp.f32 %v5978_v18 }
 0x4cf   : > { %6018 = vxpose.xlu0.b32.cont [7/16] (narrow) %v6002_v51, 8 }
 0x4d0   : > { %v7110_v55 = vpop.eup %7109 }
 0x4d1   : > { %v7112_v43 = vpop.eup %7111  ;;  %v6006_v21 = vmul.f32 %v7110_v55, %v8954_v36 }
 0x4d2   : > { %v7114_v22 = vpop.eup %7113  ;;  %v5979_v56 = vadd.f32 1.0, %v7112_v43 }
 0x4d3   : > { %6019 = vxpose.xlu0.b32.cont [8/16] (narrow) %v6003_v23, 8  ;;  %v6007_v63 = vmul.f32 %v7114_v22, %v8960_v46 }
 0x4d4   : > { %v7116_v0 = vpop.eup %7115  ;;  %7121 = vrcp.f32 %v5979_v56 }
 0x4d5   : > { %v6008_v4 = vmul.f32 %v7116_v0, %v8965_v17 }
 0x4d6   : > { %v7118_v53 = vpop.eup %7117 }
 0x4d7   : > { %6020 = vxpose.xlu0.b32.cont [9/16] (narrow) %v6004_v13, 8  ;;  %v6009_v49 = vmul.f32 %v7118_v53, %v8970_v29 }
 0x4d8   : > { %v7120_v40 = vpop.eup %7119 }
 0x4d9   : > { %v6010_v36 = vmul.f32 %v7120_v40, %v8974_v25 }
 0x4db   : > { %6021 = vxpose.xlu0.b32.cont [10/16] (narrow) %v6005_v38, 8 }
 0x4de   : > { %v7122_v60 = vpop.eup %7121 }
 0x4df   : > { %6022 = vxpose.xlu0.b32.cont [11/16] (narrow) %v6006_v21, 8  ;;  %v6011_v32 = vmul.f32 %v7122_v60, %v5915_v50 }
 0x4e3   : > { %6023 = vxpose.xlu0.b32.cont [12/16] (narrow) %v6007_v63, 8 }
 0x4e7   : > { %6024 = vxpose.xlu0.b32.cont [13/16] (narrow) %v6008_v4, 8 }
 0x4eb   : > { %6025 = vxpose.xlu0.b32.cont [14/16] (narrow) %v6009_v49, 8 }
 0x4ef   : > { %6026 = vxpose.xlu0.b32.cont [15/16] (narrow) %v6010_v36, 8 }
 0x4f3   : > { %6027 = vxpose.xlu0.b32.end [16/16] (narrow) %v6011_v32, 8 }
 0x537   : > { %v6028_v46 = vpop.trf.xlu0 }
 0x538   : > { %6044 = vst [vmem:[%s256_s6] sm:$0xff] %v6028_v46 }
 0x539   : > { %7169 = shalt.err (!%p7166_p5)
}
 0x53a   : > { %s7170_s29 = scalar_lea.hbm %s8998_s7, 128  ;;  %s7174_s6 = scalar_lea.hbm %s9063_s5, 512 }
 0x53b   : > { %p7171_p8 = scmp.ne.s32.totalorder %s8998_s7, %s7170_s29  ;;  %p7175_p2 = scmp.lt.u32.totalorder %s8998_s7, %s9063_s5 }
 0x53c   : > { %p7176_p4 = scmp.lt.u32.totalorder %s7174_s6, %s7170_s29  ;;  %p7178_p0 = scmp.lt.u32.totalorder %s7170_s29, %s8998_s7 }
 0x53d   : > { %p7172_p10 = pnand %p7171_p8, %p9122_p1 }
 0x53e   : > { %p7177_p7 = por %p7176_p4, %p7175_p2 }
 0x53f   : > { %p7173_p12 = pneg %p7172_p10 }
 0x540   : > { %p7179_p6 = por %p7178_p0, %p7177_p7 }
 0x542   : > { %p7180_p9 = pnand %p7179_p6, %p7173_p12 }
 0x544   : > { %7183 = shalt.err (!%p7180_p9)
}
 0x545   : > { %6912 = dma.vmem_to_hbm [thread:$0]  (%p9122_p1), %s8993_s11, 128, %s8998_s7, %s6046_s9  }
 0x546 PF: > { %p6923_p3 = scmp.ge.s32.totalorder %s7278_s28, 2  ;;  %s6073_s12 = sand.u32 1, %s7238_s18  }
 0x547   : > { %p9123_p11 = scmp.ne.s32.totalorder %s9084_s21, 0  ;;  %s6074_s8 = scalar_lea.sflag [#allocation5], %s6073_s12 }
 0x549   : > { %p6919_p13 = pnand %p6923_p3, %p9123_p11 }
 0x54b   : > { %7233 = dma.done.wait (!%p6919_p13), %s6074_s8, 128  }
 0x54c   : > { %7235 = vsyncadd (!%p6919_p13), %s6074_s8, 4294967168  ;;  %s21_s28 = sadd.s32 1, %s7278_s28   ;;  %s9124_s25 = sld [smem:[#allocation9_spill]] }
 0x54d   : > { %p18_p5 = scmp.ge.s32.totalorder %s21_s28, 6   ;;  %s9125_s15 = sld [smem:[#allocation10_spill]] }
 0x54e   : > { %s9126_s27 = sld [smem:[#allocation11_spill]]  ;;  %s9127_s18 = smov %s7242_s19 }
 0x54f   : > { %s9128_s19 = smov %s7246_s20  ;;  %s9129_s20 = smov %s7416_s17 }
 0x550   : > { %s9130_s21 = smov %s7254_s22  ;;  %s9131_s22 = smov %s7258_s23 }
 0x551   : > { %s9132_s23 = smov %s7413_s16  ;;  %s9133_s24 = smov %s7270_s26 }
 0x552   :  { %20 = sbr.rel (!%p18_p5) target bundleno = 9 (0x9), region = 90 }
 0x553   : > { %s9134_s26 = smov %s9125_s15 }
 0x559   :  { %6079 = vsyncpa [#allocation4], 1 }
 0x55a   :  { %6081 = vsyncpa [#allocation4 + $0x1], 1 }
 0x55b   :  { %6082 = vsyncpa [#allocation5], 1 }
 0x55c   :  { %6084 = vsyncpa [#allocation5 + $0x1], 1 }

</bundles_post_ra>
